<compile_context>
chip_gen: v7x
topology: tpu7x:2x2x1
jax: 0.10.0
libtpu: 0.0.40
codegen_flags: <defaults>
</compile_context>

<pallas_src>
import jax
import jax.numpy as jnp
from jax.experimental import pallas as pl
from jax.experimental.pallas import tpu as pltpu

D_MODEL = 32
N_HEAD = 4
D_HEAD = D_MODEL // N_HEAD
D_FF = 64
N_LAYER = 2
EPS = 1e-5  # torch.nn.LayerNorm default


# ----------------------------------------------------------------------------
# Fused kernel: whole DualAttention stack in one body.
# ----------------------------------------------------------------------------
def _dual_attention_kernel(*refs):
    cell_ref, drug_ref = refs[0], refs[1]
    (p_wq, p_bq, p_wkv, p_bkv, p_wo, p_bo,            # attn_path params (stacked)
     s_wq, s_bq, s_wkv, s_bkv, s_wo, s_bo,            # attn_subs params (stacked)
     c_ln1g, c_ln1b, c_w1, c_fb1, c_w2, c_fb2, c_ln2g, c_ln2b,   # block_cell
     d_ln1g, d_ln1b, d_w1, d_fb1, d_w2, d_fb2, d_ln2g, d_ln2b    # block_drug
     ) = refs[2:30]
    cell_out_ref, drug_out_ref, attn_path_ref, attn_subs_ref = refs[30:34]

    n_layer = p_wq.shape[0]
    B, Sc, D = cell_ref.shape
    Sd = drug_ref.shape[1]
    scale = 1.0 / jnp.sqrt(jnp.float32(D_HEAD))

    # Flatten batch: row-wise ops and matmuls see (B*S, D).
    cell = cell_ref[...].astype(jnp.float32).reshape(B * Sc, D)
    drug = drug_ref[...].astype(jnp.float32).reshape(B * Sd, D)

    def mha(q_flat, kv_flat, sq, sk, wq, bq, wkv, bkv, wo, bo, want_attn):
        # q_flat: (B*sq, D), kv_flat: (B*sk, D)
        q = jnp.dot(q_flat, wq, preferred_element_type=jnp.float32) + bq
        kv = jnp.dot(kv_flat, wkv, preferred_element_type=jnp.float32) + bkv
        k = kv[:, :D]
        v = kv[:, D:]
        q3 = q.reshape(B, sq, D)
        k3 = k.reshape(B, sk, D)
        v3 = v.reshape(B, sk, D)

        out = jnp.zeros((B * sq, D), jnp.float32)
        attn_sum = jnp.zeros((B, sq, sk), jnp.float32)
        for h in range(N_HEAD):                        # static unrolled head loop
            lo, hi = h * D_HEAD, (h + 1) * D_HEAD
            qh, kh, vh = q3[:, :, lo:hi], k3[:, :, lo:hi], v3[:, :, lo:hi]
            s = jnp.einsum('bqd,bkd->bqk', qh, kh,
                           preferred_element_type=jnp.float32) * scale
            s = s - jnp.max(s, axis=-1, keepdims=True)
            p = jnp.exp(s)
            p = p * pl.reciprocal(jnp.sum(p, axis=-1, keepdims=True), approx=True)
            if want_attn:
                attn_sum = attn_sum + p
            ctx = jnp.einsum('bqk,bkd->bqd', p, vh,
                             preferred_element_type=jnp.float32)
            # Accumulate the output projection per head (avoids a lane-axis concat).
            out = out + jnp.dot(ctx.reshape(B * sq, D_HEAD), wo[lo:hi, :],
                                preferred_element_type=jnp.float32)
        out = out + bo
        attn_avg = attn_sum * (1.0 / N_HEAD) if want_attn else None
        return out, attn_avg

    def post_block(x, att, g1, beta1, w1, b1, w2, b2, g2, beta2):
        y = x + att
        mu = jnp.mean(y, axis=-1, keepdims=True)
        var = jnp.mean((y - mu) ** 2, axis=-1, keepdims=True)
        y = (y - mu) * jax.lax.rsqrt(var + EPS) * g1 + beta1
        h = jnp.dot(y, w1, preferred_element_type=jnp.float32) + b1
        h = jnp.maximum(h, 0.0)                         # ReLU
        z = jnp.dot(h, w2, preferred_element_type=jnp.float32) + b2
        # TODO(synk): Dropout omitted (inference-mode identity / p=0 default).
        z = y + z
        mu2 = jnp.mean(z, axis=-1, keepdims=True)
        var2 = jnp.mean((z - mu2) ** 2, axis=-1, keepdims=True)
        return (z - mu2) * jax.lax.rsqrt(var2 + EPS) * g2 + beta2

    for l in range(n_layer):                            # static in-kernel layer loop
        want_attn = (l == n_layer - 1)                  # only last layer's attn is returned
        c_att, attn_p = mha(cell, drug, Sc, Sd,
                            p_wq[l], p_bq[l], p_wkv[l], p_bkv[l], p_wo[l], p_bo[l],
                            want_attn)
        d_att, attn_s = mha(drug, cell, Sd, Sc,
                            s_wq[l], s_bq[l], s_wkv[l], s_bkv[l], s_wo[l], s_bo[l],
                            want_attn)
        cell = post_block(cell, c_att,
                          c_ln1g[l], c_ln1b[l], c_w1[l], c_fb1[l],
                          c_w2[l], c_fb2[l], c_ln2g[l], c_ln2b[l])
        drug = post_block(drug, d_att,
                          d_ln1g[l], d_ln1b[l], d_w1[l], d_fb1[l],
                          d_w2[l], d_fb2[l], d_ln2g[l], d_ln2b[l])
        if want_attn:
            attn_path_ref[...] = attn_p.astype(attn_path_ref.dtype)
            attn_subs_ref[...] = attn_s.astype(attn_subs_ref.dtype)

    cell_out_ref[...] = cell.reshape(B, Sc, D).astype(cell_out_ref.dtype)
    drug_out_ref[...] = drug.reshape(B, Sd, D).astype(drug_out_ref.dtype)


# ----------------------------------------------------------------------------
# Wrapper: stack per-layer params along a leading axis and launch one pallas_call.
# ----------------------------------------------------------------------------
_ATTN_KEYS = ("wq", "bq", "wkv", "bkv", "wo", "bo")
_BLOCK_KEYS = ("ln1_g", "ln1_b", "w1", "b1", "w2", "b2", "ln2_g", "ln2_b")


def _flatten_layer_params(p):
    arrs = []
    for grp, keys in (("attn_path", _ATTN_KEYS), ("attn_subs", _ATTN_KEYS),
                      ("block_cell", _BLOCK_KEYS), ("block_drug", _BLOCK_KEYS)):
        arrs.extend(p[grp][k] for k in keys)
    return arrs


def _full_spec(shape):
    ndim = len(shape)
    return pl.BlockSpec(shape, lambda i, _n=ndim: (0,) * _n)


def dual_attention(cell, drug, layer_params_list):
    """cell: (B, Sc, D), drug: (B, Sd, D) -> (cell, drug, attn_path, attn_subs)."""
    B, Sc, D = cell.shape
    Sd = drug.shape[1]

    per_layer = [_flatten_layer_params(p) for p in layer_params_list]
    stacked = [jnp.stack(arrs) for arrs in zip(*per_layer)]   # leading axis = n_layer

    in_specs = [_full_spec(cell.shape), _full_spec(drug.shape)]
    in_specs += [_full_spec(a.shape) for a in stacked]

    out_shape = (jax.ShapeDtypeStruct((B, Sc, D), jnp.float32),
                 jax.ShapeDtypeStruct((B, Sd, D), jnp.float32),
                 jax.ShapeDtypeStruct((B, Sc, Sd), jnp.float32),
                 jax.ShapeDtypeStruct((B, Sd, Sc), jnp.float32))
    out_specs = (_full_spec((B, Sc, D)),
                 _full_spec((B, Sd, D)),
                 _full_spec((B, Sc, Sd)),
                 _full_spec((B, Sd, Sc)))

    return pl.pallas_call(
        _dual_attention_kernel,
        out_shape=out_shape,
        grid=(1,),
        in_specs=in_specs,
        out_specs=out_specs,
        compiler_params=pltpu.CompilerParams(dimension_semantics=("arbitrary",)),
    )(cell, drug, *stacked)


# ----------------------------------------------------------------------------
# Deterministic parameter construction
# ----------------------------------------------------------------------------
def _make_mha_params(key):
    ks = jax.random.split(key, 3)
    s = 0.05
    return {
        "wq": s * jax.random.normal(ks[0], (D_MODEL, D_MODEL), jnp.float32),
        "bq": jnp.zeros((1, D_MODEL), jnp.float32),
        # Packed K/V projection: one (D, 2D) matmul instead of two (D, D) ones.
        "wkv": s * jax.random.normal(ks[1], (D_MODEL, 2 * D_MODEL), jnp.float32),
        "bkv": jnp.zeros((1, 2 * D_MODEL), jnp.float32),
        "wo": s * jax.random.normal(ks[2], (D_MODEL, D_MODEL), jnp.float32),
        "bo": jnp.zeros((1, D_MODEL), jnp.float32),
    }


def _make_block_params(key):
    k1, k2 = jax.random.split(key)
    s = 0.05
    return {
        "ln1_g": jnp.ones((1, D_MODEL), jnp.float32),
        "ln1_b": jnp.zeros((1, D_MODEL), jnp.float32),
        "w1": s * jax.random.normal(k1, (D_MODEL, D_FF), jnp.float32),
        "b1": jnp.zeros((1, D_FF), jnp.float32),
        "w2": s * jax.random.normal(k2, (D_FF, D_MODEL), jnp.float32),
        "b2": jnp.zeros((1, D_MODEL), jnp.float32),
        "ln2_g": jnp.ones((1, D_MODEL), jnp.float32),
        "ln2_b": jnp.zeros((1, D_MODEL), jnp.float32),
    }


def make_params(key):
    k1, k2, k3, k4 = jax.random.split(key, 4)
    layer = {
        "attn_path": _make_mha_params(k1),
        "attn_subs": _make_mha_params(k2),
        "block_cell": _make_block_params(k3),
        "block_drug": _make_block_params(k4),
    }
    # copy.deepcopy(attention_layer) -> identical params in every stacked layer.
    return [layer] * N_LAYER


if __name__ == "__main__":
    key = jax.random.PRNGKey(0)
    kc, kd, kp = jax.random.split(key, 3)

    B, S_CELL, S_DRUG = 2, 8, 8
    cell = jax.random.normal(kc, (B, S_CELL, D_MODEL), jnp.float32)
    drug = jax.random.normal(kd, (B, S_DRUG, D_MODEL), jnp.float32)
    params = make_params(kp)

    fwd = jax.jit(dual_attention)
    cell_out, drug_out, attn_path, attn_subs = fwd(cell, drug, params)
    jax.block_until_ready((cell_out, drug_out, attn_path, attn_subs))

    assert cell_out.shape == (B, S_CELL, D_MODEL)
    assert drug_out.shape == (B, S_DRUG, D_MODEL)
    assert attn_path.shape == (B, S_CELL, S_DRUG)
    assert attn_subs.shape == (B, S_DRUG, S_CELL)
    print("KERNEL_OK")
</pallas_src>

<mosaic_0001>
module attributes {stable_mosaic.version = 11 : i64} {
  func.func @_dual_attention_kernel(%arg0: i32, %arg1: memref<2x8x32xf32, #tpu.memory_space<vmem>>, %arg2: memref<2x8x32xf32, #tpu.memory_space<vmem>>, %arg3: memref<2x32x32xf32, #tpu.memory_space<vmem>>, %arg4: memref<2x1x32xf32, #tpu.memory_space<vmem>>, %arg5: memref<2x32x64xf32, #tpu.memory_space<vmem>>, %arg6: memref<2x1x64xf32, #tpu.memory_space<vmem>>, %arg7: memref<2x32x32xf32, #tpu.memory_space<vmem>>, %arg8: memref<2x1x32xf32, #tpu.memory_space<vmem>>, %arg9: memref<2x32x32xf32, #tpu.memory_space<vmem>>, %arg10: memref<2x1x32xf32, #tpu.memory_space<vmem>>, %arg11: memref<2x32x64xf32, #tpu.memory_space<vmem>>, %arg12: memref<2x1x64xf32, #tpu.memory_space<vmem>>, %arg13: memref<2x32x32xf32, #tpu.memory_space<vmem>>, %arg14: memref<2x1x32xf32, #tpu.memory_space<vmem>>, %arg15: memref<2x1x32xf32, #tpu.memory_space<vmem>>, %arg16: memref<2x1x32xf32, #tpu.memory_space<vmem>>, %arg17: memref<2x32x64xf32, #tpu.memory_space<vmem>>, %arg18: memref<2x1x64xf32, #tpu.memory_space<vmem>>, %arg19: memref<2x64x32xf32, #tpu.memory_space<vmem>>, %arg20: memref<2x1x32xf32, #tpu.memory_space<vmem>>, %arg21: memref<2x1x32xf32, #tpu.memory_space<vmem>>, %arg22: memref<2x1x32xf32, #tpu.memory_space<vmem>>, %arg23: memref<2x1x32xf32, #tpu.memory_space<vmem>>, %arg24: memref<2x1x32xf32, #tpu.memory_space<vmem>>, %arg25: memref<2x32x64xf32, #tpu.memory_space<vmem>>, %arg26: memref<2x1x64xf32, #tpu.memory_space<vmem>>, %arg27: memref<2x64x32xf32, #tpu.memory_space<vmem>>, %arg28: memref<2x1x32xf32, #tpu.memory_space<vmem>>, %arg29: memref<2x1x32xf32, #tpu.memory_space<vmem>>, %arg30: memref<2x1x32xf32, #tpu.memory_space<vmem>>, %arg31: memref<2x8x32xf32, #tpu.memory_space<vmem>>, %arg32: memref<2x8x32xf32, #tpu.memory_space<vmem>>, %arg33: memref<2x8x8xf32, #tpu.memory_space<vmem>>, %arg34: memref<2x8x8xf32, #tpu.memory_space<vmem>>) attributes {dimension_semantics = [#tpu.dimension_semantics<arbitrary>], iteration_bounds = array<i64: 1>, scalar_prefetch = 0 : i64, scratch_operands = 0 : i64, tpu.core_type = #tpu.core_type<tc>, window_params = [{pipeline_mode = #tpu.pipeline_mode<synchronous>, transform_indices = @transform_0, window_bounds = array<i64: 2, 8, 32>}, {pipeline_mode = #tpu.pipeline_mode<synchronous>, transform_indices = @transform_1, window_bounds = array<i64: 2, 8, 32>}, {pipeline_mode = #tpu.pipeline_mode<synchronous>, transform_indices = @transform_2, window_bounds = array<i64: 2, 32, 32>}, {pipeline_mode = #tpu.pipeline_mode<synchronous>, transform_indices = @transform_3, window_bounds = array<i64: 2, 1, 32>}, {pipeline_mode = #tpu.pipeline_mode<synchronous>, transform_indices = @transform_4, window_bounds = array<i64: 2, 32, 64>}, {pipeline_mode = #tpu.pipeline_mode<synchronous>, transform_indices = @transform_5, window_bounds = array<i64: 2, 1, 64>}, {pipeline_mode = #tpu.pipeline_mode<synchronous>, transform_indices = @transform_6, window_bounds = array<i64: 2, 32, 32>}, {pipeline_mode = #tpu.pipeline_mode<synchronous>, transform_indices = @transform_7, window_bounds = array<i64: 2, 1, 32>}, {pipeline_mode = #tpu.pipeline_mode<synchronous>, transform_indices = @transform_8, window_bounds = array<i64: 2, 32, 32>}, {pipeline_mode = #tpu.pipeline_mode<synchronous>, transform_indices = @transform_9, window_bounds = array<i64: 2, 1, 32>}, {pipeline_mode = #tpu.pipeline_mode<synchronous>, transform_indices = @transform_10, window_bounds = array<i64: 2, 32, 64>}, {pipeline_mode = #tpu.pipeline_mode<synchronous>, transform_indices = @transform_11, window_bounds = array<i64: 2, 1, 64>}, {pipeline_mode = #tpu.pipeline_mode<synchronous>, transform_indices = @transform_12, window_bounds = array<i64: 2, 32, 32>}, {pipeline_mode = #tpu.pipeline_mode<synchronous>, transform_indices = @transform_13, window_bounds = array<i64: 2, 1, 32>}, {pipeline_mode = #tpu.pipeline_mode<synchronous>, transform_indices = @transform_14, window_bounds = array<i64: 2, 1, 32>}, {pipeline_mode = #tpu.pipeline_mode<synchronous>, transform_indices = @transform_15, window_bounds = array<i64: 2, 1, 32>}, {pipeline_mode = #tpu.pipeline_mode<synchronous>, transform_indices = @transform_16, window_bounds = array<i64: 2, 32, 64>}, {pipeline_mode = #tpu.pipeline_mode<synchronous>, transform_indices = @transform_17, window_bounds = array<i64: 2, 1, 64>}, {pipeline_mode = #tpu.pipeline_mode<synchronous>, transform_indices = @transform_18, window_bounds = array<i64: 2, 64, 32>}, {pipeline_mode = #tpu.pipeline_mode<synchronous>, transform_indices = @transform_19, window_bounds = array<i64: 2, 1, 32>}, {pipeline_mode = #tpu.pipeline_mode<synchronous>, transform_indices = @transform_20, window_bounds = array<i64: 2, 1, 32>}, {pipeline_mode = #tpu.pipeline_mode<synchronous>, transform_indices = @transform_21, window_bounds = array<i64: 2, 1, 32>}, {pipeline_mode = #tpu.pipeline_mode<synchronous>, transform_indices = @transform_22, window_bounds = array<i64: 2, 1, 32>}, {pipeline_mode = #tpu.pipeline_mode<synchronous>, transform_indices = @transform_23, window_bounds = array<i64: 2, 1, 32>}, {pipeline_mode = #tpu.pipeline_mode<synchronous>, transform_indices = @transform_24, window_bounds = array<i64: 2, 32, 64>}, {pipeline_mode = #tpu.pipeline_mode<synchronous>, transform_indices = @transform_25, window_bounds = array<i64: 2, 1, 64>}, {pipeline_mode = #tpu.pipeline_mode<synchronous>, transform_indices = @transform_26, window_bounds = array<i64: 2, 64, 32>}, {pipeline_mode = #tpu.pipeline_mode<synchronous>, transform_indices = @transform_27, window_bounds = array<i64: 2, 1, 32>}, {pipeline_mode = #tpu.pipeline_mode<synchronous>, transform_indices = @transform_28, window_bounds = array<i64: 2, 1, 32>}, {pipeline_mode = #tpu.pipeline_mode<synchronous>, transform_indices = @transform_29, window_bounds = array<i64: 2, 1, 32>}, {pipeline_mode = #tpu.pipeline_mode<synchronous>, transform_indices = @transform_30, window_bounds = array<i64: 2, 8, 32>}, {pipeline_mode = #tpu.pipeline_mode<synchronous>, transform_indices = @transform_31, window_bounds = array<i64: 2, 8, 32>}, {pipeline_mode = #tpu.pipeline_mode<synchronous>, transform_indices = @transform_32, window_bounds = array<i64: 2, 8, 8>}, {pipeline_mode = #tpu.pipeline_mode<synchronous>, transform_indices = @transform_33, window_bounds = array<i64: 2, 8, 8>}]} {
    %cst = arith.constant 8.000000e+00 : f32
    %0 = math.sqrt %cst : f32
    %cst_0 = arith.constant 1.000000e+00 : f32
    %1 = arith.divf %cst_0, %0 : f32
    %c0 = arith.constant 0 : index
    %c0_1 = arith.constant 0 : index
    %c0_2 = arith.constant 0 : index
    %2 = vector.load %arg1[%c0, %c0_1, %c0_2] : memref<2x8x32xf32, #tpu.memory_space<vmem>>, vector<2x8x32xf32>
    %3 = vector.shape_cast %2 : vector<2x8x32xf32> to vector<16x32xf32>
    %c0_3 = arith.constant 0 : index
    %c0_4 = arith.constant 0 : index
    %c0_5 = arith.constant 0 : index
    %4 = vector.load %arg2[%c0_3, %c0_4, %c0_5] : memref<2x8x32xf32, #tpu.memory_space<vmem>>, vector<2x8x32xf32>
    %5 = vector.shape_cast %4 : vector<2x8x32xf32> to vector<16x32xf32>
    %c0_6 = arith.constant 0 : index
    %c0_7 = arith.constant 0 : index
    %c0_8 = arith.constant 0 : index
    %6 = vector.load %arg3[%c0_6, %c0_7, %c0_8] : memref<2x32x32xf32, #tpu.memory_space<vmem>>, vector<1x32x32xf32>
    %7 = vector.shape_cast %6 : vector<1x32x32xf32> to vector<32x32xf32>
    %c0_9 = arith.constant 0 : index
    %c0_10 = arith.constant 0 : index
    %c0_11 = arith.constant 0 : index
    %8 = vector.load %arg4[%c0_9, %c0_10, %c0_11] : memref<2x1x32xf32, #tpu.memory_space<vmem>>, vector<1x1x32xf32>
    %9 = vector.shape_cast %8 : vector<1x1x32xf32> to vector<1x32xf32>
    %c0_12 = arith.constant 0 : index
    %c0_13 = arith.constant 0 : index
    %c0_14 = arith.constant 0 : index
    %10 = vector.load %arg5[%c0_12, %c0_13, %c0_14] : memref<2x32x64xf32, #tpu.memory_space<vmem>>, vector<1x32x64xf32>
    %11 = vector.shape_cast %10 : vector<1x32x64xf32> to vector<32x64xf32>
    %c0_15 = arith.constant 0 : index
    %c0_16 = arith.constant 0 : index
    %c0_17 = arith.constant 0 : index
    %12 = vector.load %arg6[%c0_15, %c0_16, %c0_17] : memref<2x1x64xf32, #tpu.memory_space<vmem>>, vector<1x1x64xf32>
    %13 = vector.shape_cast %12 : vector<1x1x64xf32> to vector<1x64xf32>
    %c0_18 = arith.constant 0 : index
    %c0_19 = arith.constant 0 : index
    %c0_20 = arith.constant 0 : index
    %14 = vector.load %arg7[%c0_18, %c0_19, %c0_20] : memref<2x32x32xf32, #tpu.memory_space<vmem>>, vector<1x32x32xf32>
    %15 = vector.shape_cast %14 : vector<1x32x32xf32> to vector<32x32xf32>
    %c0_21 = arith.constant 0 : index
    %c0_22 = arith.constant 0 : index
    %c0_23 = arith.constant 0 : index
    %16 = vector.load %arg8[%c0_21, %c0_22, %c0_23] : memref<2x1x32xf32, #tpu.memory_space<vmem>>, vector<1x1x32xf32>
    %17 = vector.shape_cast %16 : vector<1x1x32xf32> to vector<1x32xf32>
    %cst_24 = arith.constant dense<0.000000e+00> : vector<16x32xf32>
    %18 = tpu.matmul %3, %7, %cst_24 {dimension_numbers = #tpu.dot_dimension_numbers<[1], [0], [0], [1], [0, 0, 1, 1], [], []>} : vector<16x32xf32>, vector<32x32xf32>, vector<16x32xf32> -> vector<16x32xf32>
    %19 = vector.broadcast %9 : vector<1x32xf32> to vector<16x32xf32>
    %20 = arith.addf %18, %19 : vector<16x32xf32>
    %cst_25 = arith.constant dense<0.000000e+00> : vector<16x64xf32>
    %21 = tpu.matmul %5, %11, %cst_25 {dimension_numbers = #tpu.dot_dimension_numbers<[1], [0], [0], [1], [0, 0, 1, 1], [], []>} : vector<16x32xf32>, vector<32x64xf32>, vector<16x64xf32> -> vector<16x64xf32>
    %22 = vector.broadcast %13 : vector<1x64xf32> to vector<16x64xf32>
    %23 = arith.addf %21, %22 : vector<16x64xf32>
    %24 = vector.extract_strided_slice %23 {offsets = [0, 0], sizes = [16, 32], strides = [1, 1]} : vector<16x64xf32> to vector<16x32xf32>
    %25 = vector.extract_strided_slice %23 {offsets = [0, 32], sizes = [16, 32], strides = [1, 1]} : vector<16x64xf32> to vector<16x32xf32>
    %26 = vector.shape_cast %20 : vector<16x32xf32> to vector<2x8x32xf32>
    %27 = vector.shape_cast %24 : vector<16x32xf32> to vector<2x8x32xf32>
    %28 = vector.shape_cast %25 : vector<16x32xf32> to vector<2x8x32xf32>
    %cst_26 = arith.constant 0.000000e+00 : f32
    %29 = vector.broadcast %cst_26 : f32 to vector<16x32xf32>
    %30 = vector.extract_strided_slice %26 {offsets = [0, 0, 0], sizes = [2, 8, 8], strides = [1, 1, 1]} : vector<2x8x32xf32> to vector<2x8x8xf32>
    %31 = vector.extract_strided_slice %27 {offsets = [0, 0, 0], sizes = [2, 8, 8], strides = [1, 1, 1]} : vector<2x8x32xf32> to vector<2x8x8xf32>
    %32 = vector.extract_strided_slice %28 {offsets = [0, 0, 0], sizes = [2, 8, 8], strides = [1, 1, 1]} : vector<2x8x32xf32> to vector<2x8x8xf32>
    "tpu.trace_start"() <{level = 10 : i32, message = "bqd,bkd->bqk"}> : () -> ()
    %cst_27 = arith.constant dense<0.000000e+00> : vector<2x8x8xf32>
    %33 = tpu.matmul %30, %31, %cst_27 {dimension_numbers = #tpu.dot_dimension_numbers<[2], [2], [1], [1], [0, 0, 0, 1, 1, 1], [0], [0]>} : vector<2x8x8xf32>, vector<2x8x8xf32>, vector<2x8x8xf32> -> vector<2x8x8xf32>
    "tpu.trace_stop"() : () -> ()
    %34 = vector.broadcast %1 : f32 to vector<2x8x8xf32>
    %35 = arith.mulf %33, %34 : vector<2x8x8xf32>
    %cst_28 = arith.constant dense<0xFF800000> : vector<2x8xf32>
    %36 = vector.multi_reduction <maximumf>, %35, %cst_28 [2] : vector<2x8x8xf32> to vector<2x8xf32>
    %37 = vector.shape_cast %36 : vector<2x8xf32> to vector<2x8x1xf32>
    %38 = vector.broadcast %37 : vector<2x8x1xf32> to vector<2x8x8xf32>
    %39 = arith.subf %35, %38 : vector<2x8x8xf32>
    %40 = math.exp %39 : vector<2x8x8xf32>
    %cst_29 = arith.constant dense<0.000000e+00> : vector<2x8xf32>
    %41 = vector.multi_reduction <add>, %40, %cst_29 [2] : vector<2x8x8xf32> to vector<2x8xf32>
    %42 = vector.shape_cast %41 : vector<2x8xf32> to vector<2x8x1xf32>
    %43 = tpu.reciprocal %42 {approx = true} : vector<2x8x1xf32> -> vector<2x8x1xf32>
    %44 = vector.broadcast %43 : vector<2x8x1xf32> to vector<2x8x8xf32>
    %45 = arith.mulf %40, %44 : vector<2x8x8xf32>
    "tpu.trace_start"() <{level = 10 : i32, message = "bqk,bkd->bqd"}> : () -> ()
    %cst_30 = arith.constant dense<0.000000e+00> : vector<2x8x8xf32>
    %46 = tpu.matmul %45, %32, %cst_30 {dimension_numbers = #tpu.dot_dimension_numbers<[2], [1], [1], [2], [0, 0, 0, 1, 1, 2], [0], [0]>} : vector<2x8x8xf32>, vector<2x8x8xf32>, vector<2x8x8xf32> -> vector<2x8x8xf32>
    "tpu.trace_stop"() : () -> ()
    %47 = vector.shape_cast %46 : vector<2x8x8xf32> to vector<16x8xf32>
    %48 = vector.extract_strided_slice %15 {offsets = [0, 0], sizes = [8, 32], strides = [1, 1]} : vector<32x32xf32> to vector<8x32xf32>
    %cst_31 = arith.constant dense<0.000000e+00> : vector<16x32xf32>
    %49 = tpu.matmul %47, %48, %cst_31 {dimension_numbers = #tpu.dot_dimension_numbers<[1], [0], [0], [1], [0, 0, 1, 1], [], []>} : vector<16x8xf32>, vector<8x32xf32>, vector<16x32xf32> -> vector<16x32xf32>
    %50 = arith.addf %29, %49 : vector<16x32xf32>
    %51 = vector.extract_strided_slice %26 {offsets = [0, 0, 8], sizes = [2, 8, 8], strides = [1, 1, 1]} : vector<2x8x32xf32> to vector<2x8x8xf32>
    %52 = vector.extract_strided_slice %27 {offsets = [0, 0, 8], sizes = [2, 8, 8], strides = [1, 1, 1]} : vector<2x8x32xf32> to vector<2x8x8xf32>
    %53 = vector.extract_strided_slice %28 {offsets = [0, 0, 8], sizes = [2, 8, 8], strides = [1, 1, 1]} : vector<2x8x32xf32> to vector<2x8x8xf32>
    "tpu.trace_start"() <{level = 10 : i32, message = "bqd,bkd->bqk"}> : () -> ()
    %cst_32 = arith.constant dense<0.000000e+00> : vector<2x8x8xf32>
    %54 = tpu.matmul %51, %52, %cst_32 {dimension_numbers = #tpu.dot_dimension_numbers<[2], [2], [1], [1], [0, 0, 0, 1, 1, 1], [0], [0]>} : vector<2x8x8xf32>, vector<2x8x8xf32>, vector<2x8x8xf32> -> vector<2x8x8xf32>
    "tpu.trace_stop"() : () -> ()
    %55 = vector.broadcast %1 : f32 to vector<2x8x8xf32>
    %56 = arith.mulf %54, %55 : vector<2x8x8xf32>
    %cst_33 = arith.constant dense<0xFF800000> : vector<2x8xf32>
    %57 = vector.multi_reduction <maximumf>, %56, %cst_33 [2] : vector<2x8x8xf32> to vector<2x8xf32>
    %58 = vector.shape_cast %57 : vector<2x8xf32> to vector<2x8x1xf32>
    %59 = vector.broadcast %58 : vector<2x8x1xf32> to vector<2x8x8xf32>
    %60 = arith.subf %56, %59 : vector<2x8x8xf32>
    %61 = math.exp %60 : vector<2x8x8xf32>
    %cst_34 = arith.constant dense<0.000000e+00> : vector<2x8xf32>
    %62 = vector.multi_reduction <add>, %61, %cst_34 [2] : vector<2x8x8xf32> to vector<2x8xf32>
    %63 = vector.shape_cast %62 : vector<2x8xf32> to vector<2x8x1xf32>
    %64 = tpu.reciprocal %63 {approx = true} : vector<2x8x1xf32> -> vector<2x8x1xf32>
    %65 = vector.broadcast %64 : vector<2x8x1xf32> to vector<2x8x8xf32>
    %66 = arith.mulf %61, %65 : vector<2x8x8xf32>
    "tpu.trace_start"() <{level = 10 : i32, message = "bqk,bkd->bqd"}> : () -> ()
    %cst_35 = arith.constant dense<0.000000e+00> : vector<2x8x8xf32>
    %67 = tpu.matmul %66, %53, %cst_35 {dimension_numbers = #tpu.dot_dimension_numbers<[2], [1], [1], [2], [0, 0, 0, 1, 1, 2], [0], [0]>} : vector<2x8x8xf32>, vector<2x8x8xf32>, vector<2x8x8xf32> -> vector<2x8x8xf32>
    "tpu.trace_stop"() : () -> ()
    %68 = vector.shape_cast %67 : vector<2x8x8xf32> to vector<16x8xf32>
    %69 = vector.extract_strided_slice %15 {offsets = [8, 0], sizes = [8, 32], strides = [1, 1]} : vector<32x32xf32> to vector<8x32xf32>
    %cst_36 = arith.constant dense<0.000000e+00> : vector<16x32xf32>
    %70 = tpu.matmul %68, %69, %cst_36 {dimension_numbers = #tpu.dot_dimension_numbers<[1], [0], [0], [1], [0, 0, 1, 1], [], []>} : vector<16x8xf32>, vector<8x32xf32>, vector<16x32xf32> -> vector<16x32xf32>
    %71 = arith.addf %50, %70 : vector<16x32xf32>
    %72 = vector.extract_strided_slice %26 {offsets = [0, 0, 16], sizes = [2, 8, 8], strides = [1, 1, 1]} : vector<2x8x32xf32> to vector<2x8x8xf32>
    %73 = vector.extract_strided_slice %27 {offsets = [0, 0, 16], sizes = [2, 8, 8], strides = [1, 1, 1]} : vector<2x8x32xf32> to vector<2x8x8xf32>
    %74 = vector.extract_strided_slice %28 {offsets = [0, 0, 16], sizes = [2, 8, 8], strides = [1, 1, 1]} : vector<2x8x32xf32> to vector<2x8x8xf32>
    "tpu.trace_start"() <{level = 10 : i32, message = "bqd,bkd->bqk"}> : () -> ()
    %cst_37 = arith.constant dense<0.000000e+00> : vector<2x8x8xf32>
    %75 = tpu.matmul %72, %73, %cst_37 {dimension_numbers = #tpu.dot_dimension_numbers<[2], [2], [1], [1], [0, 0, 0, 1, 1, 1], [0], [0]>} : vector<2x8x8xf32>, vector<2x8x8xf32>, vector<2x8x8xf32> -> vector<2x8x8xf32>
    "tpu.trace_stop"() : () -> ()
    %76 = vector.broadcast %1 : f32 to vector<2x8x8xf32>
    %77 = arith.mulf %75, %76 : vector<2x8x8xf32>
    %cst_38 = arith.constant dense<0xFF800000> : vector<2x8xf32>
    %78 = vector.multi_reduction <maximumf>, %77, %cst_38 [2] : vector<2x8x8xf32> to vector<2x8xf32>
    %79 = vector.shape_cast %78 : vector<2x8xf32> to vector<2x8x1xf32>
    %80 = vector.broadcast %79 : vector<2x8x1xf32> to vector<2x8x8xf32>
    %81 = arith.subf %77, %80 : vector<2x8x8xf32>
    %82 = math.exp %81 : vector<2x8x8xf32>
    %cst_39 = arith.constant dense<0.000000e+00> : vector<2x8xf32>
    %83 = vector.multi_reduction <add>, %82, %cst_39 [2] : vector<2x8x8xf32> to vector<2x8xf32>
    %84 = vector.shape_cast %83 : vector<2x8xf32> to vector<2x8x1xf32>
    %85 = tpu.reciprocal %84 {approx = true} : vector<2x8x1xf32> -> vector<2x8x1xf32>
    %86 = vector.broadcast %85 : vector<2x8x1xf32> to vector<2x8x8xf32>
    %87 = arith.mulf %82, %86 : vector<2x8x8xf32>
    "tpu.trace_start"() <{level = 10 : i32, message = "bqk,bkd->bqd"}> : () -> ()
    %cst_40 = arith.constant dense<0.000000e+00> : vector<2x8x8xf32>
    %88 = tpu.matmul %87, %74, %cst_40 {dimension_numbers = #tpu.dot_dimension_numbers<[2], [1], [1], [2], [0, 0, 0, 1, 1, 2], [0], [0]>} : vector<2x8x8xf32>, vector<2x8x8xf32>, vector<2x8x8xf32> -> vector<2x8x8xf32>
    "tpu.trace_stop"() : () -> ()
    %89 = vector.shape_cast %88 : vector<2x8x8xf32> to vector<16x8xf32>
    %90 = vector.extract_strided_slice %15 {offsets = [16, 0], sizes = [8, 32], strides = [1, 1]} : vector<32x32xf32> to vector<8x32xf32>
    %cst_41 = arith.constant dense<0.000000e+00> : vector<16x32xf32>
    %91 = tpu.matmul %89, %90, %cst_41 {dimension_numbers = #tpu.dot_dimension_numbers<[1], [0], [0], [1], [0, 0, 1, 1], [], []>} : vector<16x8xf32>, vector<8x32xf32>, vector<16x32xf32> -> vector<16x32xf32>
    %92 = arith.addf %71, %91 : vector<16x32xf32>
    %93 = vector.extract_strided_slice %26 {offsets = [0, 0, 24], sizes = [2, 8, 8], strides = [1, 1, 1]} : vector<2x8x32xf32> to vector<2x8x8xf32>
    %94 = vector.extract_strided_slice %27 {offsets = [0, 0, 24], sizes = [2, 8, 8], strides = [1, 1, 1]} : vector<2x8x32xf32> to vector<2x8x8xf32>
    %95 = vector.extract_strided_slice %28 {offsets = [0, 0, 24], sizes = [2, 8, 8], strides = [1, 1, 1]} : vector<2x8x32xf32> to vector<2x8x8xf32>
    "tpu.trace_start"() <{level = 10 : i32, message = "bqd,bkd->bqk"}> : () -> ()
    %cst_42 = arith.constant dense<0.000000e+00> : vector<2x8x8xf32>
    %96 = tpu.matmul %93, %94, %cst_42 {dimension_numbers = #tpu.dot_dimension_numbers<[2], [2], [1], [1], [0, 0, 0, 1, 1, 1], [0], [0]>} : vector<2x8x8xf32>, vector<2x8x8xf32>, vector<2x8x8xf32> -> vector<2x8x8xf32>
    "tpu.trace_stop"() : () -> ()
    %97 = vector.broadcast %1 : f32 to vector<2x8x8xf32>
    %98 = arith.mulf %96, %97 : vector<2x8x8xf32>
    %cst_43 = arith.constant dense<0xFF800000> : vector<2x8xf32>
    %99 = vector.multi_reduction <maximumf>, %98, %cst_43 [2] : vector<2x8x8xf32> to vector<2x8xf32>
    %100 = vector.shape_cast %99 : vector<2x8xf32> to vector<2x8x1xf32>
    %101 = vector.broadcast %100 : vector<2x8x1xf32> to vector<2x8x8xf32>
    %102 = arith.subf %98, %101 : vector<2x8x8xf32>
    %103 = math.exp %102 : vector<2x8x8xf32>
    %cst_44 = arith.constant dense<0.000000e+00> : vector<2x8xf32>
    %104 = vector.multi_reduction <add>, %103, %cst_44 [2] : vector<2x8x8xf32> to vector<2x8xf32>
    %105 = vector.shape_cast %104 : vector<2x8xf32> to vector<2x8x1xf32>
    %106 = tpu.reciprocal %105 {approx = true} : vector<2x8x1xf32> -> vector<2x8x1xf32>
    %107 = vector.broadcast %106 : vector<2x8x1xf32> to vector<2x8x8xf32>
    %108 = arith.mulf %103, %107 : vector<2x8x8xf32>
    "tpu.trace_start"() <{level = 10 : i32, message = "bqk,bkd->bqd"}> : () -> ()
    %cst_45 = arith.constant dense<0.000000e+00> : vector<2x8x8xf32>
    %109 = tpu.matmul %108, %95, %cst_45 {dimension_numbers = #tpu.dot_dimension_numbers<[2], [1], [1], [2], [0, 0, 0, 1, 1, 2], [0], [0]>} : vector<2x8x8xf32>, vector<2x8x8xf32>, vector<2x8x8xf32> -> vector<2x8x8xf32>
    "tpu.trace_stop"() : () -> ()
    %110 = vector.shape_cast %109 : vector<2x8x8xf32> to vector<16x8xf32>
    %111 = vector.extract_strided_slice %15 {offsets = [24, 0], sizes = [8, 32], strides = [1, 1]} : vector<32x32xf32> to vector<8x32xf32>
    %cst_46 = arith.constant dense<0.000000e+00> : vector<16x32xf32>
    %112 = tpu.matmul %110, %111, %cst_46 {dimension_numbers = #tpu.dot_dimension_numbers<[1], [0], [0], [1], [0, 0, 1, 1], [], []>} : vector<16x8xf32>, vector<8x32xf32>, vector<16x32xf32> -> vector<16x32xf32>
    %113 = arith.addf %92, %112 : vector<16x32xf32>
    %114 = vector.broadcast %17 : vector<1x32xf32> to vector<16x32xf32>
    %115 = arith.addf %113, %114 : vector<16x32xf32>
    %c0_47 = arith.constant 0 : index
    %c0_48 = arith.constant 0 : index
    %c0_49 = arith.constant 0 : index
    %116 = vector.load %arg9[%c0_47, %c0_48, %c0_49] : memref<2x32x32xf32, #tpu.memory_space<vmem>>, vector<1x32x32xf32>
    %117 = vector.shape_cast %116 : vector<1x32x32xf32> to vector<32x32xf32>
    %c0_50 = arith.constant 0 : index
    %c0_51 = arith.constant 0 : index
    %c0_52 = arith.constant 0 : index
    %118 = vector.load %arg10[%c0_50, %c0_51, %c0_52] : memref<2x1x32xf32, #tpu.memory_space<vmem>>, vector<1x1x32xf32>
    %119 = vector.shape_cast %118 : vector<1x1x32xf32> to vector<1x32xf32>
    %c0_53 = arith.constant 0 : index
    %c0_54 = arith.constant 0 : index
    %c0_55 = arith.constant 0 : index
    %120 = vector.load %arg11[%c0_53, %c0_54, %c0_55] : memref<2x32x64xf32, #tpu.memory_space<vmem>>, vector<1x32x64xf32>
    %121 = vector.shape_cast %120 : vector<1x32x64xf32> to vector<32x64xf32>
    %c0_56 = arith.constant 0 : index
    %c0_57 = arith.constant 0 : index
    %c0_58 = arith.constant 0 : index
    %122 = vector.load %arg12[%c0_56, %c0_57, %c0_58] : memref<2x1x64xf32, #tpu.memory_space<vmem>>, vector<1x1x64xf32>
    %123 = vector.shape_cast %122 : vector<1x1x64xf32> to vector<1x64xf32>
    %c0_59 = arith.constant 0 : index
    %c0_60 = arith.constant 0 : index
    %c0_61 = arith.constant 0 : index
    %124 = vector.load %arg13[%c0_59, %c0_60, %c0_61] : memref<2x32x32xf32, #tpu.memory_space<vmem>>, vector<1x32x32xf32>
    %125 = vector.shape_cast %124 : vector<1x32x32xf32> to vector<32x32xf32>
    %c0_62 = arith.constant 0 : index
    %c0_63 = arith.constant 0 : index
    %c0_64 = arith.constant 0 : index
    %126 = vector.load %arg14[%c0_62, %c0_63, %c0_64] : memref<2x1x32xf32, #tpu.memory_space<vmem>>, vector<1x1x32xf32>
    %127 = vector.shape_cast %126 : vector<1x1x32xf32> to vector<1x32xf32>
    %cst_65 = arith.constant dense<0.000000e+00> : vector<16x32xf32>
    %128 = tpu.matmul %5, %117, %cst_65 {dimension_numbers = #tpu.dot_dimension_numbers<[1], [0], [0], [1], [0, 0, 1, 1], [], []>} : vector<16x32xf32>, vector<32x32xf32>, vector<16x32xf32> -> vector<16x32xf32>
    %129 = vector.broadcast %119 : vector<1x32xf32> to vector<16x32xf32>
    %130 = arith.addf %128, %129 : vector<16x32xf32>
    %cst_66 = arith.constant dense<0.000000e+00> : vector<16x64xf32>
    %131 = tpu.matmul %3, %121, %cst_66 {dimension_numbers = #tpu.dot_dimension_numbers<[1], [0], [0], [1], [0, 0, 1, 1], [], []>} : vector<16x32xf32>, vector<32x64xf32>, vector<16x64xf32> -> vector<16x64xf32>
    %132 = vector.broadcast %123 : vector<1x64xf32> to vector<16x64xf32>
    %133 = arith.addf %131, %132 : vector<16x64xf32>
    %134 = vector.extract_strided_slice %133 {offsets = [0, 0], sizes = [16, 32], strides = [1, 1]} : vector<16x64xf32> to vector<16x32xf32>
    %135 = vector.extract_strided_slice %133 {offsets = [0, 32], sizes = [16, 32], strides = [1, 1]} : vector<16x64xf32> to vector<16x32xf32>
    %136 = vector.shape_cast %130 : vector<16x32xf32> to vector<2x8x32xf32>
    %137 = vector.shape_cast %134 : vector<16x32xf32> to vector<2x8x32xf32>
    %138 = vector.shape_cast %135 : vector<16x32xf32> to vector<2x8x32xf32>
    %cst_67 = arith.constant 0.000000e+00 : f32
    %139 = vector.broadcast %cst_67 : f32 to vector<16x32xf32>
    %140 = vector.extract_strided_slice %136 {offsets = [0, 0, 0], sizes = [2, 8, 8], strides = [1, 1, 1]} : vector<2x8x32xf32> to vector<2x8x8xf32>
    %141 = vector.extract_strided_slice %137 {offsets = [0, 0, 0], sizes = [2, 8, 8], strides = [1, 1, 1]} : vector<2x8x32xf32> to vector<2x8x8xf32>
    %142 = vector.extract_strided_slice %138 {offsets = [0, 0, 0], sizes = [2, 8, 8], strides = [1, 1, 1]} : vector<2x8x32xf32> to vector<2x8x8xf32>
    "tpu.trace_start"() <{level = 10 : i32, message = "bqd,bkd->bqk"}> : () -> ()
    %cst_68 = arith.constant dense<0.000000e+00> : vector<2x8x8xf32>
    %143 = tpu.matmul %140, %141, %cst_68 {dimension_numbers = #tpu.dot_dimension_numbers<[2], [2], [1], [1], [0, 0, 0, 1, 1, 1], [0], [0]>} : vector<2x8x8xf32>, vector<2x8x8xf32>, vector<2x8x8xf32> -> vector<2x8x8xf32>
    "tpu.trace_stop"() : () -> ()
    %144 = vector.broadcast %1 : f32 to vector<2x8x8xf32>
    %145 = arith.mulf %143, %144 : vector<2x8x8xf32>
    %cst_69 = arith.constant dense<0xFF800000> : vector<2x8xf32>
    %146 = vector.multi_reduction <maximumf>, %145, %cst_69 [2] : vector<2x8x8xf32> to vector<2x8xf32>
    %147 = vector.shape_cast %146 : vector<2x8xf32> to vector<2x8x1xf32>
    %148 = vector.broadcast %147 : vector<2x8x1xf32> to vector<2x8x8xf32>
    %149 = arith.subf %145, %148 : vector<2x8x8xf32>
    %150 = math.exp %149 : vector<2x8x8xf32>
    %cst_70 = arith.constant dense<0.000000e+00> : vector<2x8xf32>
    %151 = vector.multi_reduction <add>, %150, %cst_70 [2] : vector<2x8x8xf32> to vector<2x8xf32>
    %152 = vector.shape_cast %151 : vector<2x8xf32> to vector<2x8x1xf32>
    %153 = tpu.reciprocal %152 {approx = true} : vector<2x8x1xf32> -> vector<2x8x1xf32>
    %154 = vector.broadcast %153 : vector<2x8x1xf32> to vector<2x8x8xf32>
    %155 = arith.mulf %150, %154 : vector<2x8x8xf32>
    "tpu.trace_start"() <{level = 10 : i32, message = "bqk,bkd->bqd"}> : () -> ()
    %cst_71 = arith.constant dense<0.000000e+00> : vector<2x8x8xf32>
    %156 = tpu.matmul %155, %142, %cst_71 {dimension_numbers = #tpu.dot_dimension_numbers<[2], [1], [1], [2], [0, 0, 0, 1, 1, 2], [0], [0]>} : vector<2x8x8xf32>, vector<2x8x8xf32>, vector<2x8x8xf32> -> vector<2x8x8xf32>
    "tpu.trace_stop"() : () -> ()
    %157 = vector.shape_cast %156 : vector<2x8x8xf32> to vector<16x8xf32>
    %158 = vector.extract_strided_slice %125 {offsets = [0, 0], sizes = [8, 32], strides = [1, 1]} : vector<32x32xf32> to vector<8x32xf32>
    %cst_72 = arith.constant dense<0.000000e+00> : vector<16x32xf32>
    %159 = tpu.matmul %157, %158, %cst_72 {dimension_numbers = #tpu.dot_dimension_numbers<[1], [0], [0], [1], [0, 0, 1, 1], [], []>} : vector<16x8xf32>, vector<8x32xf32>, vector<16x32xf32> -> vector<16x32xf32>
    %160 = arith.addf %139, %159 : vector<16x32xf32>
    %161 = vector.extract_strided_slice %136 {offsets = [0, 0, 8], sizes = [2, 8, 8], strides = [1, 1, 1]} : vector<2x8x32xf32> to vector<2x8x8xf32>
    %162 = vector.extract_strided_slice %137 {offsets = [0, 0, 8], sizes = [2, 8, 8], strides = [1, 1, 1]} : vector<2x8x32xf32> to vector<2x8x8xf32>
    %163 = vector.extract_strided_slice %138 {offsets = [0, 0, 8], sizes = [2, 8, 8], strides = [1, 1, 1]} : vector<2x8x32xf32> to vector<2x8x8xf32>
    "tpu.trace_start"() <{level = 10 : i32, message = "bqd,bkd->bqk"}> : () -> ()
    %cst_73 = arith.constant dense<0.000000e+00> : vector<2x8x8xf32>
    %164 = tpu.matmul %161, %162, %cst_73 {dimension_numbers = #tpu.dot_dimension_numbers<[2], [2], [1], [1], [0, 0, 0, 1, 1, 1], [0], [0]>} : vector<2x8x8xf32>, vector<2x8x8xf32>, vector<2x8x8xf32> -> vector<2x8x8xf32>
    "tpu.trace_stop"() : () -> ()
    %165 = vector.broadcast %1 : f32 to vector<2x8x8xf32>
    %166 = arith.mulf %164, %165 : vector<2x8x8xf32>
    %cst_74 = arith.constant dense<0xFF800000> : vector<2x8xf32>
    %167 = vector.multi_reduction <maximumf>, %166, %cst_74 [2] : vector<2x8x8xf32> to vector<2x8xf32>
    %168 = vector.shape_cast %167 : vector<2x8xf32> to vector<2x8x1xf32>
    %169 = vector.broadcast %168 : vector<2x8x1xf32> to vector<2x8x8xf32>
    %170 = arith.subf %166, %169 : vector<2x8x8xf32>
    %171 = math.exp %170 : vector<2x8x8xf32>
    %cst_75 = arith.constant dense<0.000000e+00> : vector<2x8xf32>
    %172 = vector.multi_reduction <add>, %171, %cst_75 [2] : vector<2x8x8xf32> to vector<2x8xf32>
    %173 = vector.shape_cast %172 : vector<2x8xf32> to vector<2x8x1xf32>
    %174 = tpu.reciprocal %173 {approx = true} : vector<2x8x1xf32> -> vector<2x8x1xf32>
    %175 = vector.broadcast %174 : vector<2x8x1xf32> to vector<2x8x8xf32>
    %176 = arith.mulf %171, %175 : vector<2x8x8xf32>
    "tpu.trace_start"() <{level = 10 : i32, message = "bqk,bkd->bqd"}> : () -> ()
    %cst_76 = arith.constant dense<0.000000e+00> : vector<2x8x8xf32>
    %177 = tpu.matmul %176, %163, %cst_76 {dimension_numbers = #tpu.dot_dimension_numbers<[2], [1], [1], [2], [0, 0, 0, 1, 1, 2], [0], [0]>} : vector<2x8x8xf32>, vector<2x8x8xf32>, vector<2x8x8xf32> -> vector<2x8x8xf32>
    "tpu.trace_stop"() : () -> ()
    %178 = vector.shape_cast %177 : vector<2x8x8xf32> to vector<16x8xf32>
    %179 = vector.extract_strided_slice %125 {offsets = [8, 0], sizes = [8, 32], strides = [1, 1]} : vector<32x32xf32> to vector<8x32xf32>
    %cst_77 = arith.constant dense<0.000000e+00> : vector<16x32xf32>
    %180 = tpu.matmul %178, %179, %cst_77 {dimension_numbers = #tpu.dot_dimension_numbers<[1], [0], [0], [1], [0, 0, 1, 1], [], []>} : vector<16x8xf32>, vector<8x32xf32>, vector<16x32xf32> -> vector<16x32xf32>
    %181 = arith.addf %160, %180 : vector<16x32xf32>
    %182 = vector.extract_strided_slice %136 {offsets = [0, 0, 16], sizes = [2, 8, 8], strides = [1, 1, 1]} : vector<2x8x32xf32> to vector<2x8x8xf32>
    %183 = vector.extract_strided_slice %137 {offsets = [0, 0, 16], sizes = [2, 8, 8], strides = [1, 1, 1]} : vector<2x8x32xf32> to vector<2x8x8xf32>
    %184 = vector.extract_strided_slice %138 {offsets = [0, 0, 16], sizes = [2, 8, 8], strides = [1, 1, 1]} : vector<2x8x32xf32> to vector<2x8x8xf32>
    "tpu.trace_start"() <{level = 10 : i32, message = "bqd,bkd->bqk"}> : () -> ()
    %cst_78 = arith.constant dense<0.000000e+00> : vector<2x8x8xf32>
    %185 = tpu.matmul %182, %183, %cst_78 {dimension_numbers = #tpu.dot_dimension_numbers<[2], [2], [1], [1], [0, 0, 0, 1, 1, 1], [0], [0]>} : vector<2x8x8xf32>, vector<2x8x8xf32>, vector<2x8x8xf32> -> vector<2x8x8xf32>
    "tpu.trace_stop"() : () -> ()
    %186 = vector.broadcast %1 : f32 to vector<2x8x8xf32>
    %187 = arith.mulf %185, %186 : vector<2x8x8xf32>
    %cst_79 = arith.constant dense<0xFF800000> : vector<2x8xf32>
    %188 = vector.multi_reduction <maximumf>, %187, %cst_79 [2] : vector<2x8x8xf32> to vector<2x8xf32>
    %189 = vector.shape_cast %188 : vector<2x8xf32> to vector<2x8x1xf32>
    %190 = vector.broadcast %189 : vector<2x8x1xf32> to vector<2x8x8xf32>
    %191 = arith.subf %187, %190 : vector<2x8x8xf32>
    %192 = math.exp %191 : vector<2x8x8xf32>
    %cst_80 = arith.constant dense<0.000000e+00> : vector<2x8xf32>
    %193 = vector.multi_reduction <add>, %192, %cst_80 [2] : vector<2x8x8xf32> to vector<2x8xf32>
    %194 = vector.shape_cast %193 : vector<2x8xf32> to vector<2x8x1xf32>
    %195 = tpu.reciprocal %194 {approx = true} : vector<2x8x1xf32> -> vector<2x8x1xf32>
    %196 = vector.broadcast %195 : vector<2x8x1xf32> to vector<2x8x8xf32>
    %197 = arith.mulf %192, %196 : vector<2x8x8xf32>
    "tpu.trace_start"() <{level = 10 : i32, message = "bqk,bkd->bqd"}> : () -> ()
    %cst_81 = arith.constant dense<0.000000e+00> : vector<2x8x8xf32>
    %198 = tpu.matmul %197, %184, %cst_81 {dimension_numbers = #tpu.dot_dimension_numbers<[2], [1], [1], [2], [0, 0, 0, 1, 1, 2], [0], [0]>} : vector<2x8x8xf32>, vector<2x8x8xf32>, vector<2x8x8xf32> -> vector<2x8x8xf32>
    "tpu.trace_stop"() : () -> ()
    %199 = vector.shape_cast %198 : vector<2x8x8xf32> to vector<16x8xf32>
    %200 = vector.extract_strided_slice %125 {offsets = [16, 0], sizes = [8, 32], strides = [1, 1]} : vector<32x32xf32> to vector<8x32xf32>
    %cst_82 = arith.constant dense<0.000000e+00> : vector<16x32xf32>
    %201 = tpu.matmul %199, %200, %cst_82 {dimension_numbers = #tpu.dot_dimension_numbers<[1], [0], [0], [1], [0, 0, 1, 1], [], []>} : vector<16x8xf32>, vector<8x32xf32>, vector<16x32xf32> -> vector<16x32xf32>
    %202 = arith.addf %181, %201 : vector<16x32xf32>
    %203 = vector.extract_strided_slice %136 {offsets = [0, 0, 24], sizes = [2, 8, 8], strides = [1, 1, 1]} : vector<2x8x32xf32> to vector<2x8x8xf32>
    %204 = vector.extract_strided_slice %137 {offsets = [0, 0, 24], sizes = [2, 8, 8], strides = [1, 1, 1]} : vector<2x8x32xf32> to vector<2x8x8xf32>
    %205 = vector.extract_strided_slice %138 {offsets = [0, 0, 24], sizes = [2, 8, 8], strides = [1, 1, 1]} : vector<2x8x32xf32> to vector<2x8x8xf32>
    "tpu.trace_start"() <{level = 10 : i32, message = "bqd,bkd->bqk"}> : () -> ()
    %cst_83 = arith.constant dense<0.000000e+00> : vector<2x8x8xf32>
    %206 = tpu.matmul %203, %204, %cst_83 {dimension_numbers = #tpu.dot_dimension_numbers<[2], [2], [1], [1], [0, 0, 0, 1, 1, 1], [0], [0]>} : vector<2x8x8xf32>, vector<2x8x8xf32>, vector<2x8x8xf32> -> vector<2x8x8xf32>
    "tpu.trace_stop"() : () -> ()
    %207 = vector.broadcast %1 : f32 to vector<2x8x8xf32>
    %208 = arith.mulf %206, %207 : vector<2x8x8xf32>
    %cst_84 = arith.constant dense<0xFF800000> : vector<2x8xf32>
    %209 = vector.multi_reduction <maximumf>, %208, %cst_84 [2] : vector<2x8x8xf32> to vector<2x8xf32>
    %210 = vector.shape_cast %209 : vector<2x8xf32> to vector<2x8x1xf32>
    %211 = vector.broadcast %210 : vector<2x8x1xf32> to vector<2x8x8xf32>
    %212 = arith.subf %208, %211 : vector<2x8x8xf32>
    %213 = math.exp %212 : vector<2x8x8xf32>
    %cst_85 = arith.constant dense<0.000000e+00> : vector<2x8xf32>
    %214 = vector.multi_reduction <add>, %213, %cst_85 [2] : vector<2x8x8xf32> to vector<2x8xf32>
    %215 = vector.shape_cast %214 : vector<2x8xf32> to vector<2x8x1xf32>
    %216 = tpu.reciprocal %215 {approx = true} : vector<2x8x1xf32> -> vector<2x8x1xf32>
    %217 = vector.broadcast %216 : vector<2x8x1xf32> to vector<2x8x8xf32>
    %218 = arith.mulf %213, %217 : vector<2x8x8xf32>
    "tpu.trace_start"() <{level = 10 : i32, message = "bqk,bkd->bqd"}> : () -> ()
    %cst_86 = arith.constant dense<0.000000e+00> : vector<2x8x8xf32>
    %219 = tpu.matmul %218, %205, %cst_86 {dimension_numbers = #tpu.dot_dimension_numbers<[2], [1], [1], [2], [0, 0, 0, 1, 1, 2], [0], [0]>} : vector<2x8x8xf32>, vector<2x8x8xf32>, vector<2x8x8xf32> -> vector<2x8x8xf32>
    "tpu.trace_stop"() : () -> ()
    %220 = vector.shape_cast %219 : vector<2x8x8xf32> to vector<16x8xf32>
    %221 = vector.extract_strided_slice %125 {offsets = [24, 0], sizes = [8, 32], strides = [1, 1]} : vector<32x32xf32> to vector<8x32xf32>
    %cst_87 = arith.constant dense<0.000000e+00> : vector<16x32xf32>
    %222 = tpu.matmul %220, %221, %cst_87 {dimension_numbers = #tpu.dot_dimension_numbers<[1], [0], [0], [1], [0, 0, 1, 1], [], []>} : vector<16x8xf32>, vector<8x32xf32>, vector<16x32xf32> -> vector<16x32xf32>
    %223 = arith.addf %202, %222 : vector<16x32xf32>
    %224 = vector.broadcast %127 : vector<1x32xf32> to vector<16x32xf32>
    %225 = arith.addf %223, %224 : vector<16x32xf32>
    %c0_88 = arith.constant 0 : index
    %c0_89 = arith.constant 0 : index
    %c0_90 = arith.constant 0 : index
    %226 = vector.load %arg15[%c0_88, %c0_89, %c0_90] : memref<2x1x32xf32, #tpu.memory_space<vmem>>, vector<1x1x32xf32>
    %227 = vector.shape_cast %226 : vector<1x1x32xf32> to vector<1x32xf32>
    %c0_91 = arith.constant 0 : index
    %c0_92 = arith.constant 0 : index
    %c0_93 = arith.constant 0 : index
    %228 = vector.load %arg16[%c0_91, %c0_92, %c0_93] : memref<2x1x32xf32, #tpu.memory_space<vmem>>, vector<1x1x32xf32>
    %229 = vector.shape_cast %228 : vector<1x1x32xf32> to vector<1x32xf32>
    %c0_94 = arith.constant 0 : index
    %c0_95 = arith.constant 0 : index
    %c0_96 = arith.constant 0 : index
    %230 = vector.load %arg17[%c0_94, %c0_95, %c0_96] : memref<2x32x64xf32, #tpu.memory_space<vmem>>, vector<1x32x64xf32>
    %231 = vector.shape_cast %230 : vector<1x32x64xf32> to vector<32x64xf32>
    %c0_97 = arith.constant 0 : index
    %c0_98 = arith.constant 0 : index
    %c0_99 = arith.constant 0 : index
    %232 = vector.load %arg18[%c0_97, %c0_98, %c0_99] : memref<2x1x64xf32, #tpu.memory_space<vmem>>, vector<1x1x64xf32>
    %233 = vector.shape_cast %232 : vector<1x1x64xf32> to vector<1x64xf32>
    %c0_100 = arith.constant 0 : index
    %c0_101 = arith.constant 0 : index
    %c0_102 = arith.constant 0 : index
    %234 = vector.load %arg19[%c0_100, %c0_101, %c0_102] : memref<2x64x32xf32, #tpu.memory_space<vmem>>, vector<1x64x32xf32>
    %235 = vector.shape_cast %234 : vector<1x64x32xf32> to vector<64x32xf32>
    %c0_103 = arith.constant 0 : index
    %c0_104 = arith.constant 0 : index
    %c0_105 = arith.constant 0 : index
    %236 = vector.load %arg20[%c0_103, %c0_104, %c0_105] : memref<2x1x32xf32, #tpu.memory_space<vmem>>, vector<1x1x32xf32>
    %237 = vector.shape_cast %236 : vector<1x1x32xf32> to vector<1x32xf32>
    %c0_106 = arith.constant 0 : index
    %c0_107 = arith.constant 0 : index
    %c0_108 = arith.constant 0 : index
    %238 = vector.load %arg21[%c0_106, %c0_107, %c0_108] : memref<2x1x32xf32, #tpu.memory_space<vmem>>, vector<1x1x32xf32>
    %239 = vector.shape_cast %238 : vector<1x1x32xf32> to vector<1x32xf32>
    %c0_109 = arith.constant 0 : index
    %c0_110 = arith.constant 0 : index
    %c0_111 = arith.constant 0 : index
    %240 = vector.load %arg22[%c0_109, %c0_110, %c0_111] : memref<2x1x32xf32, #tpu.memory_space<vmem>>, vector<1x1x32xf32>
    %241 = vector.shape_cast %240 : vector<1x1x32xf32> to vector<1x32xf32>
    %242 = arith.addf %3, %115 : vector<16x32xf32>
    %cst_112 = arith.constant dense<0.000000e+00> : vector<16xf32>
    %243 = vector.multi_reduction <add>, %242, %cst_112 [1] : vector<16x32xf32> to vector<16xf32>
    %244 = vector.shape_cast %243 : vector<16xf32> to vector<16x1xf32>
    %cst_113 = arith.constant 3.200000e+01 : f32
    %245 = vector.broadcast %cst_113 : f32 to vector<16x1xf32>
    %246 = arith.divf %244, %245 : vector<16x1xf32>
    %247 = vector.broadcast %246 : vector<16x1xf32> to vector<16x32xf32>
    %248 = arith.subf %242, %247 : vector<16x32xf32>
    %249 = arith.mulf %248, %248 : vector<16x32xf32>
    %cst_114 = arith.constant dense<0.000000e+00> : vector<16xf32>
    %250 = vector.multi_reduction <add>, %249, %cst_114 [1] : vector<16x32xf32> to vector<16xf32>
    %251 = vector.shape_cast %250 : vector<16xf32> to vector<16x1xf32>
    %cst_115 = arith.constant 3.200000e+01 : f32
    %252 = vector.broadcast %cst_115 : f32 to vector<16x1xf32>
    %253 = arith.divf %251, %252 : vector<16x1xf32>
    %254 = vector.broadcast %246 : vector<16x1xf32> to vector<16x32xf32>
    %255 = arith.subf %242, %254 : vector<16x32xf32>
    %cst_116 = arith.constant 9.99999974E-6 : f32
    %256 = vector.broadcast %cst_116 : f32 to vector<16x1xf32>
    %257 = arith.addf %253, %256 : vector<16x1xf32>
    %258 = math.rsqrt %257 : vector<16x1xf32>
    %259 = vector.broadcast %258 : vector<16x1xf32> to vector<16x32xf32>
    %260 = arith.mulf %255, %259 : vector<16x32xf32>
    %261 = vector.broadcast %227 : vector<1x32xf32> to vector<16x32xf32>
    %262 = arith.mulf %260, %261 : vector<16x32xf32>
    %263 = vector.broadcast %229 : vector<1x32xf32> to vector<16x32xf32>
    %264 = arith.addf %262, %263 : vector<16x32xf32>
    %cst_117 = arith.constant dense<0.000000e+00> : vector<16x64xf32>
    %265 = tpu.matmul %264, %231, %cst_117 {dimension_numbers = #tpu.dot_dimension_numbers<[1], [0], [0], [1], [0, 0, 1, 1], [], []>} : vector<16x32xf32>, vector<32x64xf32>, vector<16x64xf32> -> vector<16x64xf32>
    %266 = vector.broadcast %233 : vector<1x64xf32> to vector<16x64xf32>
    %267 = arith.addf %265, %266 : vector<16x64xf32>
    %cst_118 = arith.constant 0.000000e+00 : f32
    %268 = vector.broadcast %cst_118 : f32 to vector<16x64xf32>
    %269 = arith.maximumf %267, %268 : vector<16x64xf32>
    %cst_119 = arith.constant dense<0.000000e+00> : vector<16x32xf32>
    %270 = tpu.matmul %269, %235, %cst_119 {dimension_numbers = #tpu.dot_dimension_numbers<[1], [0], [0], [1], [0, 0, 1, 1], [], []>} : vector<16x64xf32>, vector<64x32xf32>, vector<16x32xf32> -> vector<16x32xf32>
    %271 = vector.broadcast %237 : vector<1x32xf32> to vector<16x32xf32>
    %272 = arith.addf %270, %271 : vector<16x32xf32>
    %273 = arith.addf %264, %272 : vector<16x32xf32>
    %cst_120 = arith.constant dense<0.000000e+00> : vector<16xf32>
    %274 = vector.multi_reduction <add>, %273, %cst_120 [1] : vector<16x32xf32> to vector<16xf32>
    %275 = vector.shape_cast %274 : vector<16xf32> to vector<16x1xf32>
    %cst_121 = arith.constant 3.200000e+01 : f32
    %276 = vector.broadcast %cst_121 : f32 to vector<16x1xf32>
    %277 = arith.divf %275, %276 : vector<16x1xf32>
    %278 = vector.broadcast %277 : vector<16x1xf32> to vector<16x32xf32>
    %279 = arith.subf %273, %278 : vector<16x32xf32>
    %280 = arith.mulf %279, %279 : vector<16x32xf32>
    %cst_122 = arith.constant dense<0.000000e+00> : vector<16xf32>
    %281 = vector.multi_reduction <add>, %280, %cst_122 [1] : vector<16x32xf32> to vector<16xf32>
    %282 = vector.shape_cast %281 : vector<16xf32> to vector<16x1xf32>
    %cst_123 = arith.constant 3.200000e+01 : f32
    %283 = vector.broadcast %cst_123 : f32 to vector<16x1xf32>
    %284 = arith.divf %282, %283 : vector<16x1xf32>
    %285 = vector.broadcast %277 : vector<16x1xf32> to vector<16x32xf32>
    %286 = arith.subf %273, %285 : vector<16x32xf32>
    %cst_124 = arith.constant 9.99999974E-6 : f32
    %287 = vector.broadcast %cst_124 : f32 to vector<16x1xf32>
    %288 = arith.addf %284, %287 : vector<16x1xf32>
    %289 = math.rsqrt %288 : vector<16x1xf32>
    %290 = vector.broadcast %289 : vector<16x1xf32> to vector<16x32xf32>
    %291 = arith.mulf %286, %290 : vector<16x32xf32>
    %292 = vector.broadcast %239 : vector<1x32xf32> to vector<16x32xf32>
    %293 = arith.mulf %291, %292 : vector<16x32xf32>
    %294 = vector.broadcast %241 : vector<1x32xf32> to vector<16x32xf32>
    %295 = arith.addf %293, %294 : vector<16x32xf32>
    %c0_125 = arith.constant 0 : index
    %c0_126 = arith.constant 0 : index
    %c0_127 = arith.constant 0 : index
    %296 = vector.load %arg23[%c0_125, %c0_126, %c0_127] : memref<2x1x32xf32, #tpu.memory_space<vmem>>, vector<1x1x32xf32>
    %297 = vector.shape_cast %296 : vector<1x1x32xf32> to vector<1x32xf32>
    %c0_128 = arith.constant 0 : index
    %c0_129 = arith.constant 0 : index
    %c0_130 = arith.constant 0 : index
    %298 = vector.load %arg24[%c0_128, %c0_129, %c0_130] : memref<2x1x32xf32, #tpu.memory_space<vmem>>, vector<1x1x32xf32>
    %299 = vector.shape_cast %298 : vector<1x1x32xf32> to vector<1x32xf32>
    %c0_131 = arith.constant 0 : index
    %c0_132 = arith.constant 0 : index
    %c0_133 = arith.constant 0 : index
    %300 = vector.load %arg25[%c0_131, %c0_132, %c0_133] : memref<2x32x64xf32, #tpu.memory_space<vmem>>, vector<1x32x64xf32>
    %301 = vector.shape_cast %300 : vector<1x32x64xf32> to vector<32x64xf32>
    %c0_134 = arith.constant 0 : index
    %c0_135 = arith.constant 0 : index
    %c0_136 = arith.constant 0 : index
    %302 = vector.load %arg26[%c0_134, %c0_135, %c0_136] : memref<2x1x64xf32, #tpu.memory_space<vmem>>, vector<1x1x64xf32>
    %303 = vector.shape_cast %302 : vector<1x1x64xf32> to vector<1x64xf32>
    %c0_137 = arith.constant 0 : index
    %c0_138 = arith.constant 0 : index
    %c0_139 = arith.constant 0 : index
    %304 = vector.load %arg27[%c0_137, %c0_138, %c0_139] : memref<2x64x32xf32, #tpu.memory_space<vmem>>, vector<1x64x32xf32>
    %305 = vector.shape_cast %304 : vector<1x64x32xf32> to vector<64x32xf32>
    %c0_140 = arith.constant 0 : index
    %c0_141 = arith.constant 0 : index
    %c0_142 = arith.constant 0 : index
    %306 = vector.load %arg28[%c0_140, %c0_141, %c0_142] : memref<2x1x32xf32, #tpu.memory_space<vmem>>, vector<1x1x32xf32>
    %307 = vector.shape_cast %306 : vector<1x1x32xf32> to vector<1x32xf32>
    %c0_143 = arith.constant 0 : index
    %c0_144 = arith.constant 0 : index
    %c0_145 = arith.constant 0 : index
    %308 = vector.load %arg29[%c0_143, %c0_144, %c0_145] : memref<2x1x32xf32, #tpu.memory_space<vmem>>, vector<1x1x32xf32>
    %309 = vector.shape_cast %308 : vector<1x1x32xf32> to vector<1x32xf32>
    %c0_146 = arith.constant 0 : index
    %c0_147 = arith.constant 0 : index
    %c0_148 = arith.constant 0 : index
    %310 = vector.load %arg30[%c0_146, %c0_147, %c0_148] : memref<2x1x32xf32, #tpu.memory_space<vmem>>, vector<1x1x32xf32>
    %311 = vector.shape_cast %310 : vector<1x1x32xf32> to vector<1x32xf32>
    %312 = arith.addf %5, %225 : vector<16x32xf32>
    %cst_149 = arith.constant dense<0.000000e+00> : vector<16xf32>
    %313 = vector.multi_reduction <add>, %312, %cst_149 [1] : vector<16x32xf32> to vector<16xf32>
    %314 = vector.shape_cast %313 : vector<16xf32> to vector<16x1xf32>
    %cst_150 = arith.constant 3.200000e+01 : f32
    %315 = vector.broadcast %cst_150 : f32 to vector<16x1xf32>
    %316 = arith.divf %314, %315 : vector<16x1xf32>
    %317 = vector.broadcast %316 : vector<16x1xf32> to vector<16x32xf32>
    %318 = arith.subf %312, %317 : vector<16x32xf32>
    %319 = arith.mulf %318, %318 : vector<16x32xf32>
    %cst_151 = arith.constant dense<0.000000e+00> : vector<16xf32>
    %320 = vector.multi_reduction <add>, %319, %cst_151 [1] : vector<16x32xf32> to vector<16xf32>
    %321 = vector.shape_cast %320 : vector<16xf32> to vector<16x1xf32>
    %cst_152 = arith.constant 3.200000e+01 : f32
    %322 = vector.broadcast %cst_152 : f32 to vector<16x1xf32>
    %323 = arith.divf %321, %322 : vector<16x1xf32>
    %324 = vector.broadcast %316 : vector<16x1xf32> to vector<16x32xf32>
    %325 = arith.subf %312, %324 : vector<16x32xf32>
    %cst_153 = arith.constant 9.99999974E-6 : f32
    %326 = vector.broadcast %cst_153 : f32 to vector<16x1xf32>
    %327 = arith.addf %323, %326 : vector<16x1xf32>
    %328 = math.rsqrt %327 : vector<16x1xf32>
    %329 = vector.broadcast %328 : vector<16x1xf32> to vector<16x32xf32>
    %330 = arith.mulf %325, %329 : vector<16x32xf32>
    %331 = vector.broadcast %297 : vector<1x32xf32> to vector<16x32xf32>
    %332 = arith.mulf %330, %331 : vector<16x32xf32>
    %333 = vector.broadcast %299 : vector<1x32xf32> to vector<16x32xf32>
    %334 = arith.addf %332, %333 : vector<16x32xf32>
    %cst_154 = arith.constant dense<0.000000e+00> : vector<16x64xf32>
    %335 = tpu.matmul %334, %301, %cst_154 {dimension_numbers = #tpu.dot_dimension_numbers<[1], [0], [0], [1], [0, 0, 1, 1], [], []>} : vector<16x32xf32>, vector<32x64xf32>, vector<16x64xf32> -> vector<16x64xf32>
    %336 = vector.broadcast %303 : vector<1x64xf32> to vector<16x64xf32>
    %337 = arith.addf %335, %336 : vector<16x64xf32>
    %cst_155 = arith.constant 0.000000e+00 : f32
    %338 = vector.broadcast %cst_155 : f32 to vector<16x64xf32>
    %339 = arith.maximumf %337, %338 : vector<16x64xf32>
    %cst_156 = arith.constant dense<0.000000e+00> : vector<16x32xf32>
    %340 = tpu.matmul %339, %305, %cst_156 {dimension_numbers = #tpu.dot_dimension_numbers<[1], [0], [0], [1], [0, 0, 1, 1], [], []>} : vector<16x64xf32>, vector<64x32xf32>, vector<16x32xf32> -> vector<16x32xf32>
    %341 = vector.broadcast %307 : vector<1x32xf32> to vector<16x32xf32>
    %342 = arith.addf %340, %341 : vector<16x32xf32>
    %343 = arith.addf %334, %342 : vector<16x32xf32>
    %cst_157 = arith.constant dense<0.000000e+00> : vector<16xf32>
    %344 = vector.multi_reduction <add>, %343, %cst_157 [1] : vector<16x32xf32> to vector<16xf32>
    %345 = vector.shape_cast %344 : vector<16xf32> to vector<16x1xf32>
    %cst_158 = arith.constant 3.200000e+01 : f32
    %346 = vector.broadcast %cst_158 : f32 to vector<16x1xf32>
    %347 = arith.divf %345, %346 : vector<16x1xf32>
    %348 = vector.broadcast %347 : vector<16x1xf32> to vector<16x32xf32>
    %349 = arith.subf %343, %348 : vector<16x32xf32>
    %350 = arith.mulf %349, %349 : vector<16x32xf32>
    %cst_159 = arith.constant dense<0.000000e+00> : vector<16xf32>
    %351 = vector.multi_reduction <add>, %350, %cst_159 [1] : vector<16x32xf32> to vector<16xf32>
    %352 = vector.shape_cast %351 : vector<16xf32> to vector<16x1xf32>
    %cst_160 = arith.constant 3.200000e+01 : f32
    %353 = vector.broadcast %cst_160 : f32 to vector<16x1xf32>
    %354 = arith.divf %352, %353 : vector<16x1xf32>
    %355 = vector.broadcast %347 : vector<16x1xf32> to vector<16x32xf32>
    %356 = arith.subf %343, %355 : vector<16x32xf32>
    %cst_161 = arith.constant 9.99999974E-6 : f32
    %357 = vector.broadcast %cst_161 : f32 to vector<16x1xf32>
    %358 = arith.addf %354, %357 : vector<16x1xf32>
    %359 = math.rsqrt %358 : vector<16x1xf32>
    %360 = vector.broadcast %359 : vector<16x1xf32> to vector<16x32xf32>
    %361 = arith.mulf %356, %360 : vector<16x32xf32>
    %362 = vector.broadcast %309 : vector<1x32xf32> to vector<16x32xf32>
    %363 = arith.mulf %361, %362 : vector<16x32xf32>
    %364 = vector.broadcast %311 : vector<1x32xf32> to vector<16x32xf32>
    %365 = arith.addf %363, %364 : vector<16x32xf32>
    %c1 = arith.constant 1 : index
    %c0_162 = arith.constant 0 : index
    %c0_163 = arith.constant 0 : index
    %366 = vector.load %arg3[%c1, %c0_162, %c0_163] : memref<2x32x32xf32, #tpu.memory_space<vmem>>, vector<1x32x32xf32>
    %367 = vector.shape_cast %366 : vector<1x32x32xf32> to vector<32x32xf32>
    %c1_164 = arith.constant 1 : index
    %c0_165 = arith.constant 0 : index
    %c0_166 = arith.constant 0 : index
    %368 = vector.load %arg4[%c1_164, %c0_165, %c0_166] : memref<2x1x32xf32, #tpu.memory_space<vmem>>, vector<1x1x32xf32>
    %369 = vector.shape_cast %368 : vector<1x1x32xf32> to vector<1x32xf32>
    %c1_167 = arith.constant 1 : index
    %c0_168 = arith.constant 0 : index
    %c0_169 = arith.constant 0 : index
    %370 = vector.load %arg5[%c1_167, %c0_168, %c0_169] : memref<2x32x64xf32, #tpu.memory_space<vmem>>, vector<1x32x64xf32>
    %371 = vector.shape_cast %370 : vector<1x32x64xf32> to vector<32x64xf32>
    %c1_170 = arith.constant 1 : index
    %c0_171 = arith.constant 0 : index
    %c0_172 = arith.constant 0 : index
    %372 = vector.load %arg6[%c1_170, %c0_171, %c0_172] : memref<2x1x64xf32, #tpu.memory_space<vmem>>, vector<1x1x64xf32>
    %373 = vector.shape_cast %372 : vector<1x1x64xf32> to vector<1x64xf32>
    %c1_173 = arith.constant 1 : index
    %c0_174 = arith.constant 0 : index
    %c0_175 = arith.constant 0 : index
    %374 = vector.load %arg7[%c1_173, %c0_174, %c0_175] : memref<2x32x32xf32, #tpu.memory_space<vmem>>, vector<1x32x32xf32>
    %375 = vector.shape_cast %374 : vector<1x32x32xf32> to vector<32x32xf32>
    %c1_176 = arith.constant 1 : index
    %c0_177 = arith.constant 0 : index
    %c0_178 = arith.constant 0 : index
    %376 = vector.load %arg8[%c1_176, %c0_177, %c0_178] : memref<2x1x32xf32, #tpu.memory_space<vmem>>, vector<1x1x32xf32>
    %377 = vector.shape_cast %376 : vector<1x1x32xf32> to vector<1x32xf32>
    %cst_179 = arith.constant dense<0.000000e+00> : vector<16x32xf32>
    %378 = tpu.matmul %295, %367, %cst_179 {dimension_numbers = #tpu.dot_dimension_numbers<[1], [0], [0], [1], [0, 0, 1, 1], [], []>} : vector<16x32xf32>, vector<32x32xf32>, vector<16x32xf32> -> vector<16x32xf32>
    %379 = vector.broadcast %369 : vector<1x32xf32> to vector<16x32xf32>
    %380 = arith.addf %378, %379 : vector<16x32xf32>
    %cst_180 = arith.constant dense<0.000000e+00> : vector<16x64xf32>
    %381 = tpu.matmul %365, %371, %cst_180 {dimension_numbers = #tpu.dot_dimension_numbers<[1], [0], [0], [1], [0, 0, 1, 1], [], []>} : vector<16x32xf32>, vector<32x64xf32>, vector<16x64xf32> -> vector<16x64xf32>
    %382 = vector.broadcast %373 : vector<1x64xf32> to vector<16x64xf32>
    %383 = arith.addf %381, %382 : vector<16x64xf32>
    %384 = vector.extract_strided_slice %383 {offsets = [0, 0], sizes = [16, 32], strides = [1, 1]} : vector<16x64xf32> to vector<16x32xf32>
    %385 = vector.extract_strided_slice %383 {offsets = [0, 32], sizes = [16, 32], strides = [1, 1]} : vector<16x64xf32> to vector<16x32xf32>
    %386 = vector.shape_cast %380 : vector<16x32xf32> to vector<2x8x32xf32>
    %387 = vector.shape_cast %384 : vector<16x32xf32> to vector<2x8x32xf32>
    %388 = vector.shape_cast %385 : vector<16x32xf32> to vector<2x8x32xf32>
    %cst_181 = arith.constant 0.000000e+00 : f32
    %389 = vector.broadcast %cst_181 : f32 to vector<16x32xf32>
    %cst_182 = arith.constant 0.000000e+00 : f32
    %390 = vector.broadcast %cst_182 : f32 to vector<2x8x8xf32>
    %391 = vector.extract_strided_slice %386 {offsets = [0, 0, 0], sizes = [2, 8, 8], strides = [1, 1, 1]} : vector<2x8x32xf32> to vector<2x8x8xf32>
    %392 = vector.extract_strided_slice %387 {offsets = [0, 0, 0], sizes = [2, 8, 8], strides = [1, 1, 1]} : vector<2x8x32xf32> to vector<2x8x8xf32>
    %393 = vector.extract_strided_slice %388 {offsets = [0, 0, 0], sizes = [2, 8, 8], strides = [1, 1, 1]} : vector<2x8x32xf32> to vector<2x8x8xf32>
    "tpu.trace_start"() <{level = 10 : i32, message = "bqd,bkd->bqk"}> : () -> ()
    %cst_183 = arith.constant dense<0.000000e+00> : vector<2x8x8xf32>
    %394 = tpu.matmul %391, %392, %cst_183 {dimension_numbers = #tpu.dot_dimension_numbers<[2], [2], [1], [1], [0, 0, 0, 1, 1, 1], [0], [0]>} : vector<2x8x8xf32>, vector<2x8x8xf32>, vector<2x8x8xf32> -> vector<2x8x8xf32>
    "tpu.trace_stop"() : () -> ()
    %395 = vector.broadcast %1 : f32 to vector<2x8x8xf32>
    %396 = arith.mulf %394, %395 : vector<2x8x8xf32>
    %cst_184 = arith.constant dense<0xFF800000> : vector<2x8xf32>
    %397 = vector.multi_reduction <maximumf>, %396, %cst_184 [2] : vector<2x8x8xf32> to vector<2x8xf32>
    %398 = vector.shape_cast %397 : vector<2x8xf32> to vector<2x8x1xf32>
    %399 = vector.broadcast %398 : vector<2x8x1xf32> to vector<2x8x8xf32>
    %400 = arith.subf %396, %399 : vector<2x8x8xf32>
    %401 = math.exp %400 : vector<2x8x8xf32>
    %cst_185 = arith.constant dense<0.000000e+00> : vector<2x8xf32>
    %402 = vector.multi_reduction <add>, %401, %cst_185 [2] : vector<2x8x8xf32> to vector<2x8xf32>
    %403 = vector.shape_cast %402 : vector<2x8xf32> to vector<2x8x1xf32>
    %404 = tpu.reciprocal %403 {approx = true} : vector<2x8x1xf32> -> vector<2x8x1xf32>
    %405 = vector.broadcast %404 : vector<2x8x1xf32> to vector<2x8x8xf32>
    %406 = arith.mulf %401, %405 : vector<2x8x8xf32>
    %407 = arith.addf %390, %406 : vector<2x8x8xf32>
    "tpu.trace_start"() <{level = 10 : i32, message = "bqk,bkd->bqd"}> : () -> ()
    %cst_186 = arith.constant dense<0.000000e+00> : vector<2x8x8xf32>
    %408 = tpu.matmul %406, %393, %cst_186 {dimension_numbers = #tpu.dot_dimension_numbers<[2], [1], [1], [2], [0, 0, 0, 1, 1, 2], [0], [0]>} : vector<2x8x8xf32>, vector<2x8x8xf32>, vector<2x8x8xf32> -> vector<2x8x8xf32>
    "tpu.trace_stop"() : () -> ()
    %409 = vector.shape_cast %408 : vector<2x8x8xf32> to vector<16x8xf32>
    %410 = vector.extract_strided_slice %375 {offsets = [0, 0], sizes = [8, 32], strides = [1, 1]} : vector<32x32xf32> to vector<8x32xf32>
    %cst_187 = arith.constant dense<0.000000e+00> : vector<16x32xf32>
    %411 = tpu.matmul %409, %410, %cst_187 {dimension_numbers = #tpu.dot_dimension_numbers<[1], [0], [0], [1], [0, 0, 1, 1], [], []>} : vector<16x8xf32>, vector<8x32xf32>, vector<16x32xf32> -> vector<16x32xf32>
    %412 = arith.addf %389, %411 : vector<16x32xf32>
    %413 = vector.extract_strided_slice %386 {offsets = [0, 0, 8], sizes = [2, 8, 8], strides = [1, 1, 1]} : vector<2x8x32xf32> to vector<2x8x8xf32>
    %414 = vector.extract_strided_slice %387 {offsets = [0, 0, 8], sizes = [2, 8, 8], strides = [1, 1, 1]} : vector<2x8x32xf32> to vector<2x8x8xf32>
    %415 = vector.extract_strided_slice %388 {offsets = [0, 0, 8], sizes = [2, 8, 8], strides = [1, 1, 1]} : vector<2x8x32xf32> to vector<2x8x8xf32>
    "tpu.trace_start"() <{level = 10 : i32, message = "bqd,bkd->bqk"}> : () -> ()
    %cst_188 = arith.constant dense<0.000000e+00> : vector<2x8x8xf32>
    %416 = tpu.matmul %413, %414, %cst_188 {dimension_numbers = #tpu.dot_dimension_numbers<[2], [2], [1], [1], [0, 0, 0, 1, 1, 1], [0], [0]>} : vector<2x8x8xf32>, vector<2x8x8xf32>, vector<2x8x8xf32> -> vector<2x8x8xf32>
    "tpu.trace_stop"() : () -> ()
    %417 = vector.broadcast %1 : f32 to vector<2x8x8xf32>
    %418 = arith.mulf %416, %417 : vector<2x8x8xf32>
    %cst_189 = arith.constant dense<0xFF800000> : vector<2x8xf32>
    %419 = vector.multi_reduction <maximumf>, %418, %cst_189 [2] : vector<2x8x8xf32> to vector<2x8xf32>
    %420 = vector.shape_cast %419 : vector<2x8xf32> to vector<2x8x1xf32>
    %421 = vector.broadcast %420 : vector<2x8x1xf32> to vector<2x8x8xf32>
    %422 = arith.subf %418, %421 : vector<2x8x8xf32>
    %423 = math.exp %422 : vector<2x8x8xf32>
    %cst_190 = arith.constant dense<0.000000e+00> : vector<2x8xf32>
    %424 = vector.multi_reduction <add>, %423, %cst_190 [2] : vector<2x8x8xf32> to vector<2x8xf32>
    %425 = vector.shape_cast %424 : vector<2x8xf32> to vector<2x8x1xf32>
    %426 = tpu.reciprocal %425 {approx = true} : vector<2x8x1xf32> -> vector<2x8x1xf32>
    %427 = vector.broadcast %426 : vector<2x8x1xf32> to vector<2x8x8xf32>
    %428 = arith.mulf %423, %427 : vector<2x8x8xf32>
    %429 = arith.addf %407, %428 : vector<2x8x8xf32>
    "tpu.trace_start"() <{level = 10 : i32, message = "bqk,bkd->bqd"}> : () -> ()
    %cst_191 = arith.constant dense<0.000000e+00> : vector<2x8x8xf32>
    %430 = tpu.matmul %428, %415, %cst_191 {dimension_numbers = #tpu.dot_dimension_numbers<[2], [1], [1], [2], [0, 0, 0, 1, 1, 2], [0], [0]>} : vector<2x8x8xf32>, vector<2x8x8xf32>, vector<2x8x8xf32> -> vector<2x8x8xf32>
    "tpu.trace_stop"() : () -> ()
    %431 = vector.shape_cast %430 : vector<2x8x8xf32> to vector<16x8xf32>
    %432 = vector.extract_strided_slice %375 {offsets = [8, 0], sizes = [8, 32], strides = [1, 1]} : vector<32x32xf32> to vector<8x32xf32>
    %cst_192 = arith.constant dense<0.000000e+00> : vector<16x32xf32>
    %433 = tpu.matmul %431, %432, %cst_192 {dimension_numbers = #tpu.dot_dimension_numbers<[1], [0], [0], [1], [0, 0, 1, 1], [], []>} : vector<16x8xf32>, vector<8x32xf32>, vector<16x32xf32> -> vector<16x32xf32>
    %434 = arith.addf %412, %433 : vector<16x32xf32>
    %435 = vector.extract_strided_slice %386 {offsets = [0, 0, 16], sizes = [2, 8, 8], strides = [1, 1, 1]} : vector<2x8x32xf32> to vector<2x8x8xf32>
    %436 = vector.extract_strided_slice %387 {offsets = [0, 0, 16], sizes = [2, 8, 8], strides = [1, 1, 1]} : vector<2x8x32xf32> to vector<2x8x8xf32>
    %437 = vector.extract_strided_slice %388 {offsets = [0, 0, 16], sizes = [2, 8, 8], strides = [1, 1, 1]} : vector<2x8x32xf32> to vector<2x8x8xf32>
    "tpu.trace_start"() <{level = 10 : i32, message = "bqd,bkd->bqk"}> : () -> ()
    %cst_193 = arith.constant dense<0.000000e+00> : vector<2x8x8xf32>
    %438 = tpu.matmul %435, %436, %cst_193 {dimension_numbers = #tpu.dot_dimension_numbers<[2], [2], [1], [1], [0, 0, 0, 1, 1, 1], [0], [0]>} : vector<2x8x8xf32>, vector<2x8x8xf32>, vector<2x8x8xf32> -> vector<2x8x8xf32>
    "tpu.trace_stop"() : () -> ()
    %439 = vector.broadcast %1 : f32 to vector<2x8x8xf32>
    %440 = arith.mulf %438, %439 : vector<2x8x8xf32>
    %cst_194 = arith.constant dense<0xFF800000> : vector<2x8xf32>
    %441 = vector.multi_reduction <maximumf>, %440, %cst_194 [2] : vector<2x8x8xf32> to vector<2x8xf32>
    %442 = vector.shape_cast %441 : vector<2x8xf32> to vector<2x8x1xf32>
    %443 = vector.broadcast %442 : vector<2x8x1xf32> to vector<2x8x8xf32>
    %444 = arith.subf %440, %443 : vector<2x8x8xf32>
    %445 = math.exp %444 : vector<2x8x8xf32>
    %cst_195 = arith.constant dense<0.000000e+00> : vector<2x8xf32>
    %446 = vector.multi_reduction <add>, %445, %cst_195 [2] : vector<2x8x8xf32> to vector<2x8xf32>
    %447 = vector.shape_cast %446 : vector<2x8xf32> to vector<2x8x1xf32>
    %448 = tpu.reciprocal %447 {approx = true} : vector<2x8x1xf32> -> vector<2x8x1xf32>
    %449 = vector.broadcast %448 : vector<2x8x1xf32> to vector<2x8x8xf32>
    %450 = arith.mulf %445, %449 : vector<2x8x8xf32>
    %451 = arith.addf %429, %450 : vector<2x8x8xf32>
    "tpu.trace_start"() <{level = 10 : i32, message = "bqk,bkd->bqd"}> : () -> ()
    %cst_196 = arith.constant dense<0.000000e+00> : vector<2x8x8xf32>
    %452 = tpu.matmul %450, %437, %cst_196 {dimension_numbers = #tpu.dot_dimension_numbers<[2], [1], [1], [2], [0, 0, 0, 1, 1, 2], [0], [0]>} : vector<2x8x8xf32>, vector<2x8x8xf32>, vector<2x8x8xf32> -> vector<2x8x8xf32>
    "tpu.trace_stop"() : () -> ()
    %453 = vector.shape_cast %452 : vector<2x8x8xf32> to vector<16x8xf32>
    %454 = vector.extract_strided_slice %375 {offsets = [16, 0], sizes = [8, 32], strides = [1, 1]} : vector<32x32xf32> to vector<8x32xf32>
    %cst_197 = arith.constant dense<0.000000e+00> : vector<16x32xf32>
    %455 = tpu.matmul %453, %454, %cst_197 {dimension_numbers = #tpu.dot_dimension_numbers<[1], [0], [0], [1], [0, 0, 1, 1], [], []>} : vector<16x8xf32>, vector<8x32xf32>, vector<16x32xf32> -> vector<16x32xf32>
    %456 = arith.addf %434, %455 : vector<16x32xf32>
    %457 = vector.extract_strided_slice %386 {offsets = [0, 0, 24], sizes = [2, 8, 8], strides = [1, 1, 1]} : vector<2x8x32xf32> to vector<2x8x8xf32>
    %458 = vector.extract_strided_slice %387 {offsets = [0, 0, 24], sizes = [2, 8, 8], strides = [1, 1, 1]} : vector<2x8x32xf32> to vector<2x8x8xf32>
    %459 = vector.extract_strided_slice %388 {offsets = [0, 0, 24], sizes = [2, 8, 8], strides = [1, 1, 1]} : vector<2x8x32xf32> to vector<2x8x8xf32>
    "tpu.trace_start"() <{level = 10 : i32, message = "bqd,bkd->bqk"}> : () -> ()
    %cst_198 = arith.constant dense<0.000000e+00> : vector<2x8x8xf32>
    %460 = tpu.matmul %457, %458, %cst_198 {dimension_numbers = #tpu.dot_dimension_numbers<[2], [2], [1], [1], [0, 0, 0, 1, 1, 1], [0], [0]>} : vector<2x8x8xf32>, vector<2x8x8xf32>, vector<2x8x8xf32> -> vector<2x8x8xf32>
    "tpu.trace_stop"() : () -> ()
    %461 = vector.broadcast %1 : f32 to vector<2x8x8xf32>
    %462 = arith.mulf %460, %461 : vector<2x8x8xf32>
    %cst_199 = arith.constant dense<0xFF800000> : vector<2x8xf32>
    %463 = vector.multi_reduction <maximumf>, %462, %cst_199 [2] : vector<2x8x8xf32> to vector<2x8xf32>
    %464 = vector.shape_cast %463 : vector<2x8xf32> to vector<2x8x1xf32>
    %465 = vector.broadcast %464 : vector<2x8x1xf32> to vector<2x8x8xf32>
    %466 = arith.subf %462, %465 : vector<2x8x8xf32>
    %467 = math.exp %466 : vector<2x8x8xf32>
    %cst_200 = arith.constant dense<0.000000e+00> : vector<2x8xf32>
    %468 = vector.multi_reduction <add>, %467, %cst_200 [2] : vector<2x8x8xf32> to vector<2x8xf32>
    %469 = vector.shape_cast %468 : vector<2x8xf32> to vector<2x8x1xf32>
    %470 = tpu.reciprocal %469 {approx = true} : vector<2x8x1xf32> -> vector<2x8x1xf32>
    %471 = vector.broadcast %470 : vector<2x8x1xf32> to vector<2x8x8xf32>
    %472 = arith.mulf %467, %471 : vector<2x8x8xf32>
    %473 = arith.addf %451, %472 : vector<2x8x8xf32>
    "tpu.trace_start"() <{level = 10 : i32, message = "bqk,bkd->bqd"}> : () -> ()
    %cst_201 = arith.constant dense<0.000000e+00> : vector<2x8x8xf32>
    %474 = tpu.matmul %472, %459, %cst_201 {dimension_numbers = #tpu.dot_dimension_numbers<[2], [1], [1], [2], [0, 0, 0, 1, 1, 2], [0], [0]>} : vector<2x8x8xf32>, vector<2x8x8xf32>, vector<2x8x8xf32> -> vector<2x8x8xf32>
    "tpu.trace_stop"() : () -> ()
    %475 = vector.shape_cast %474 : vector<2x8x8xf32> to vector<16x8xf32>
    %476 = vector.extract_strided_slice %375 {offsets = [24, 0], sizes = [8, 32], strides = [1, 1]} : vector<32x32xf32> to vector<8x32xf32>
    %cst_202 = arith.constant dense<0.000000e+00> : vector<16x32xf32>
    %477 = tpu.matmul %475, %476, %cst_202 {dimension_numbers = #tpu.dot_dimension_numbers<[1], [0], [0], [1], [0, 0, 1, 1], [], []>} : vector<16x8xf32>, vector<8x32xf32>, vector<16x32xf32> -> vector<16x32xf32>
    %478 = arith.addf %456, %477 : vector<16x32xf32>
    %479 = vector.broadcast %377 : vector<1x32xf32> to vector<16x32xf32>
    %480 = arith.addf %478, %479 : vector<16x32xf32>
    %cst_203 = arith.constant 2.500000e-01 : f32
    %481 = vector.broadcast %cst_203 : f32 to vector<2x8x8xf32>
    %482 = arith.mulf %473, %481 : vector<2x8x8xf32>
    %c1_204 = arith.constant 1 : index
    %c0_205 = arith.constant 0 : index
    %c0_206 = arith.constant 0 : index
    %483 = vector.load %arg9[%c1_204, %c0_205, %c0_206] : memref<2x32x32xf32, #tpu.memory_space<vmem>>, vector<1x32x32xf32>
    %484 = vector.shape_cast %483 : vector<1x32x32xf32> to vector<32x32xf32>
    %c1_207 = arith.constant 1 : index
    %c0_208 = arith.constant 0 : index
    %c0_209 = arith.constant 0 : index
    %485 = vector.load %arg10[%c1_207, %c0_208, %c0_209] : memref<2x1x32xf32, #tpu.memory_space<vmem>>, vector<1x1x32xf32>
    %486 = vector.shape_cast %485 : vector<1x1x32xf32> to vector<1x32xf32>
    %c1_210 = arith.constant 1 : index
    %c0_211 = arith.constant 0 : index
    %c0_212 = arith.constant 0 : index
    %487 = vector.load %arg11[%c1_210, %c0_211, %c0_212] : memref<2x32x64xf32, #tpu.memory_space<vmem>>, vector<1x32x64xf32>
    %488 = vector.shape_cast %487 : vector<1x32x64xf32> to vector<32x64xf32>
    %c1_213 = arith.constant 1 : index
    %c0_214 = arith.constant 0 : index
    %c0_215 = arith.constant 0 : index
    %489 = vector.load %arg12[%c1_213, %c0_214, %c0_215] : memref<2x1x64xf32, #tpu.memory_space<vmem>>, vector<1x1x64xf32>
    %490 = vector.shape_cast %489 : vector<1x1x64xf32> to vector<1x64xf32>
    %c1_216 = arith.constant 1 : index
    %c0_217 = arith.constant 0 : index
    %c0_218 = arith.constant 0 : index
    %491 = vector.load %arg13[%c1_216, %c0_217, %c0_218] : memref<2x32x32xf32, #tpu.memory_space<vmem>>, vector<1x32x32xf32>
    %492 = vector.shape_cast %491 : vector<1x32x32xf32> to vector<32x32xf32>
    %c1_219 = arith.constant 1 : index
    %c0_220 = arith.constant 0 : index
    %c0_221 = arith.constant 0 : index
    %493 = vector.load %arg14[%c1_219, %c0_220, %c0_221] : memref<2x1x32xf32, #tpu.memory_space<vmem>>, vector<1x1x32xf32>
    %494 = vector.shape_cast %493 : vector<1x1x32xf32> to vector<1x32xf32>
    %cst_222 = arith.constant dense<0.000000e+00> : vector<16x32xf32>
    %495 = tpu.matmul %365, %484, %cst_222 {dimension_numbers = #tpu.dot_dimension_numbers<[1], [0], [0], [1], [0, 0, 1, 1], [], []>} : vector<16x32xf32>, vector<32x32xf32>, vector<16x32xf32> -> vector<16x32xf32>
    %496 = vector.broadcast %486 : vector<1x32xf32> to vector<16x32xf32>
    %497 = arith.addf %495, %496 : vector<16x32xf32>
    %cst_223 = arith.constant dense<0.000000e+00> : vector<16x64xf32>
    %498 = tpu.matmul %295, %488, %cst_223 {dimension_numbers = #tpu.dot_dimension_numbers<[1], [0], [0], [1], [0, 0, 1, 1], [], []>} : vector<16x32xf32>, vector<32x64xf32>, vector<16x64xf32> -> vector<16x64xf32>
    %499 = vector.broadcast %490 : vector<1x64xf32> to vector<16x64xf32>
    %500 = arith.addf %498, %499 : vector<16x64xf32>
    %501 = vector.extract_strided_slice %500 {offsets = [0, 0], sizes = [16, 32], strides = [1, 1]} : vector<16x64xf32> to vector<16x32xf32>
    %502 = vector.extract_strided_slice %500 {offsets = [0, 32], sizes = [16, 32], strides = [1, 1]} : vector<16x64xf32> to vector<16x32xf32>
    %503 = vector.shape_cast %497 : vector<16x32xf32> to vector<2x8x32xf32>
    %504 = vector.shape_cast %501 : vector<16x32xf32> to vector<2x8x32xf32>
    %505 = vector.shape_cast %502 : vector<16x32xf32> to vector<2x8x32xf32>
    %cst_224 = arith.constant 0.000000e+00 : f32
    %506 = vector.broadcast %cst_224 : f32 to vector<16x32xf32>
    %cst_225 = arith.constant 0.000000e+00 : f32
    %507 = vector.broadcast %cst_225 : f32 to vector<2x8x8xf32>
    %508 = vector.extract_strided_slice %503 {offsets = [0, 0, 0], sizes = [2, 8, 8], strides = [1, 1, 1]} : vector<2x8x32xf32> to vector<2x8x8xf32>
    %509 = vector.extract_strided_slice %504 {offsets = [0, 0, 0], sizes = [2, 8, 8], strides = [1, 1, 1]} : vector<2x8x32xf32> to vector<2x8x8xf32>
    %510 = vector.extract_strided_slice %505 {offsets = [0, 0, 0], sizes = [2, 8, 8], strides = [1, 1, 1]} : vector<2x8x32xf32> to vector<2x8x8xf32>
    "tpu.trace_start"() <{level = 10 : i32, message = "bqd,bkd->bqk"}> : () -> ()
    %cst_226 = arith.constant dense<0.000000e+00> : vector<2x8x8xf32>
    %511 = tpu.matmul %508, %509, %cst_226 {dimension_numbers = #tpu.dot_dimension_numbers<[2], [2], [1], [1], [0, 0, 0, 1, 1, 1], [0], [0]>} : vector<2x8x8xf32>, vector<2x8x8xf32>, vector<2x8x8xf32> -> vector<2x8x8xf32>
    "tpu.trace_stop"() : () -> ()
    %512 = vector.broadcast %1 : f32 to vector<2x8x8xf32>
    %513 = arith.mulf %511, %512 : vector<2x8x8xf32>
    %cst_227 = arith.constant dense<0xFF800000> : vector<2x8xf32>
    %514 = vector.multi_reduction <maximumf>, %513, %cst_227 [2] : vector<2x8x8xf32> to vector<2x8xf32>
    %515 = vector.shape_cast %514 : vector<2x8xf32> to vector<2x8x1xf32>
    %516 = vector.broadcast %515 : vector<2x8x1xf32> to vector<2x8x8xf32>
    %517 = arith.subf %513, %516 : vector<2x8x8xf32>
    %518 = math.exp %517 : vector<2x8x8xf32>
    %cst_228 = arith.constant dense<0.000000e+00> : vector<2x8xf32>
    %519 = vector.multi_reduction <add>, %518, %cst_228 [2] : vector<2x8x8xf32> to vector<2x8xf32>
    %520 = vector.shape_cast %519 : vector<2x8xf32> to vector<2x8x1xf32>
    %521 = tpu.reciprocal %520 {approx = true} : vector<2x8x1xf32> -> vector<2x8x1xf32>
    %522 = vector.broadcast %521 : vector<2x8x1xf32> to vector<2x8x8xf32>
    %523 = arith.mulf %518, %522 : vector<2x8x8xf32>
    %524 = arith.addf %507, %523 : vector<2x8x8xf32>
    "tpu.trace_start"() <{level = 10 : i32, message = "bqk,bkd->bqd"}> : () -> ()
    %cst_229 = arith.constant dense<0.000000e+00> : vector<2x8x8xf32>
    %525 = tpu.matmul %523, %510, %cst_229 {dimension_numbers = #tpu.dot_dimension_numbers<[2], [1], [1], [2], [0, 0, 0, 1, 1, 2], [0], [0]>} : vector<2x8x8xf32>, vector<2x8x8xf32>, vector<2x8x8xf32> -> vector<2x8x8xf32>
    "tpu.trace_stop"() : () -> ()
    %526 = vector.shape_cast %525 : vector<2x8x8xf32> to vector<16x8xf32>
    %527 = vector.extract_strided_slice %492 {offsets = [0, 0], sizes = [8, 32], strides = [1, 1]} : vector<32x32xf32> to vector<8x32xf32>
    %cst_230 = arith.constant dense<0.000000e+00> : vector<16x32xf32>
    %528 = tpu.matmul %526, %527, %cst_230 {dimension_numbers = #tpu.dot_dimension_numbers<[1], [0], [0], [1], [0, 0, 1, 1], [], []>} : vector<16x8xf32>, vector<8x32xf32>, vector<16x32xf32> -> vector<16x32xf32>
    %529 = arith.addf %506, %528 : vector<16x32xf32>
    %530 = vector.extract_strided_slice %503 {offsets = [0, 0, 8], sizes = [2, 8, 8], strides = [1, 1, 1]} : vector<2x8x32xf32> to vector<2x8x8xf32>
    %531 = vector.extract_strided_slice %504 {offsets = [0, 0, 8], sizes = [2, 8, 8], strides = [1, 1, 1]} : vector<2x8x32xf32> to vector<2x8x8xf32>
    %532 = vector.extract_strided_slice %505 {offsets = [0, 0, 8], sizes = [2, 8, 8], strides = [1, 1, 1]} : vector<2x8x32xf32> to vector<2x8x8xf32>
    "tpu.trace_start"() <{level = 10 : i32, message = "bqd,bkd->bqk"}> : () -> ()
    %cst_231 = arith.constant dense<0.000000e+00> : vector<2x8x8xf32>
    %533 = tpu.matmul %530, %531, %cst_231 {dimension_numbers = #tpu.dot_dimension_numbers<[2], [2], [1], [1], [0, 0, 0, 1, 1, 1], [0], [0]>} : vector<2x8x8xf32>, vector<2x8x8xf32>, vector<2x8x8xf32> -> vector<2x8x8xf32>
    "tpu.trace_stop"() : () -> ()
    %534 = vector.broadcast %1 : f32 to vector<2x8x8xf32>
    %535 = arith.mulf %533, %534 : vector<2x8x8xf32>
    %cst_232 = arith.constant dense<0xFF800000> : vector<2x8xf32>
    %536 = vector.multi_reduction <maximumf>, %535, %cst_232 [2] : vector<2x8x8xf32> to vector<2x8xf32>
    %537 = vector.shape_cast %536 : vector<2x8xf32> to vector<2x8x1xf32>
    %538 = vector.broadcast %537 : vector<2x8x1xf32> to vector<2x8x8xf32>
    %539 = arith.subf %535, %538 : vector<2x8x8xf32>
    %540 = math.exp %539 : vector<2x8x8xf32>
    %cst_233 = arith.constant dense<0.000000e+00> : vector<2x8xf32>
    %541 = vector.multi_reduction <add>, %540, %cst_233 [2] : vector<2x8x8xf32> to vector<2x8xf32>
    %542 = vector.shape_cast %541 : vector<2x8xf32> to vector<2x8x1xf32>
    %543 = tpu.reciprocal %542 {approx = true} : vector<2x8x1xf32> -> vector<2x8x1xf32>
    %544 = vector.broadcast %543 : vector<2x8x1xf32> to vector<2x8x8xf32>
    %545 = arith.mulf %540, %544 : vector<2x8x8xf32>
    %546 = arith.addf %524, %545 : vector<2x8x8xf32>
    "tpu.trace_start"() <{level = 10 : i32, message = "bqk,bkd->bqd"}> : () -> ()
    %cst_234 = arith.constant dense<0.000000e+00> : vector<2x8x8xf32>
    %547 = tpu.matmul %545, %532, %cst_234 {dimension_numbers = #tpu.dot_dimension_numbers<[2], [1], [1], [2], [0, 0, 0, 1, 1, 2], [0], [0]>} : vector<2x8x8xf32>, vector<2x8x8xf32>, vector<2x8x8xf32> -> vector<2x8x8xf32>
    "tpu.trace_stop"() : () -> ()
    %548 = vector.shape_cast %547 : vector<2x8x8xf32> to vector<16x8xf32>
    %549 = vector.extract_strided_slice %492 {offsets = [8, 0], sizes = [8, 32], strides = [1, 1]} : vector<32x32xf32> to vector<8x32xf32>
    %cst_235 = arith.constant dense<0.000000e+00> : vector<16x32xf32>
    %550 = tpu.matmul %548, %549, %cst_235 {dimension_numbers = #tpu.dot_dimension_numbers<[1], [0], [0], [1], [0, 0, 1, 1], [], []>} : vector<16x8xf32>, vector<8x32xf32>, vector<16x32xf32> -> vector<16x32xf32>
    %551 = arith.addf %529, %550 : vector<16x32xf32>
    %552 = vector.extract_strided_slice %503 {offsets = [0, 0, 16], sizes = [2, 8, 8], strides = [1, 1, 1]} : vector<2x8x32xf32> to vector<2x8x8xf32>
    %553 = vector.extract_strided_slice %504 {offsets = [0, 0, 16], sizes = [2, 8, 8], strides = [1, 1, 1]} : vector<2x8x32xf32> to vector<2x8x8xf32>
    %554 = vector.extract_strided_slice %505 {offsets = [0, 0, 16], sizes = [2, 8, 8], strides = [1, 1, 1]} : vector<2x8x32xf32> to vector<2x8x8xf32>
    "tpu.trace_start"() <{level = 10 : i32, message = "bqd,bkd->bqk"}> : () -> ()
    %cst_236 = arith.constant dense<0.000000e+00> : vector<2x8x8xf32>
    %555 = tpu.matmul %552, %553, %cst_236 {dimension_numbers = #tpu.dot_dimension_numbers<[2], [2], [1], [1], [0, 0, 0, 1, 1, 1], [0], [0]>} : vector<2x8x8xf32>, vector<2x8x8xf32>, vector<2x8x8xf32> -> vector<2x8x8xf32>
    "tpu.trace_stop"() : () -> ()
    %556 = vector.broadcast %1 : f32 to vector<2x8x8xf32>
    %557 = arith.mulf %555, %556 : vector<2x8x8xf32>
    %cst_237 = arith.constant dense<0xFF800000> : vector<2x8xf32>
    %558 = vector.multi_reduction <maximumf>, %557, %cst_237 [2] : vector<2x8x8xf32> to vector<2x8xf32>
    %559 = vector.shape_cast %558 : vector<2x8xf32> to vector<2x8x1xf32>
    %560 = vector.broadcast %559 : vector<2x8x1xf32> to vector<2x8x8xf32>
    %561 = arith.subf %557, %560 : vector<2x8x8xf32>
    %562 = math.exp %561 : vector<2x8x8xf32>
    %cst_238 = arith.constant dense<0.000000e+00> : vector<2x8xf32>
    %563 = vector.multi_reduction <add>, %562, %cst_238 [2] : vector<2x8x8xf32> to vector<2x8xf32>
    %564 = vector.shape_cast %563 : vector<2x8xf32> to vector<2x8x1xf32>
    %565 = tpu.reciprocal %564 {approx = true} : vector<2x8x1xf32> -> vector<2x8x1xf32>
    %566 = vector.broadcast %565 : vector<2x8x1xf32> to vector<2x8x8xf32>
    %567 = arith.mulf %562, %566 : vector<2x8x8xf32>
    %568 = arith.addf %546, %567 : vector<2x8x8xf32>
    "tpu.trace_start"() <{level = 10 : i32, message = "bqk,bkd->bqd"}> : () -> ()
    %cst_239 = arith.constant dense<0.000000e+00> : vector<2x8x8xf32>
    %569 = tpu.matmul %567, %554, %cst_239 {dimension_numbers = #tpu.dot_dimension_numbers<[2], [1], [1], [2], [0, 0, 0, 1, 1, 2], [0], [0]>} : vector<2x8x8xf32>, vector<2x8x8xf32>, vector<2x8x8xf32> -> vector<2x8x8xf32>
    "tpu.trace_stop"() : () -> ()
    %570 = vector.shape_cast %569 : vector<2x8x8xf32> to vector<16x8xf32>
    %571 = vector.extract_strided_slice %492 {offsets = [16, 0], sizes = [8, 32], strides = [1, 1]} : vector<32x32xf32> to vector<8x32xf32>
    %cst_240 = arith.constant dense<0.000000e+00> : vector<16x32xf32>
    %572 = tpu.matmul %570, %571, %cst_240 {dimension_numbers = #tpu.dot_dimension_numbers<[1], [0], [0], [1], [0, 0, 1, 1], [], []>} : vector<16x8xf32>, vector<8x32xf32>, vector<16x32xf32> -> vector<16x32xf32>
    %573 = arith.addf %551, %572 : vector<16x32xf32>
    %574 = vector.extract_strided_slice %503 {offsets = [0, 0, 24], sizes = [2, 8, 8], strides = [1, 1, 1]} : vector<2x8x32xf32> to vector<2x8x8xf32>
    %575 = vector.extract_strided_slice %504 {offsets = [0, 0, 24], sizes = [2, 8, 8], strides = [1, 1, 1]} : vector<2x8x32xf32> to vector<2x8x8xf32>
    %576 = vector.extract_strided_slice %505 {offsets = [0, 0, 24], sizes = [2, 8, 8], strides = [1, 1, 1]} : vector<2x8x32xf32> to vector<2x8x8xf32>
    "tpu.trace_start"() <{level = 10 : i32, message = "bqd,bkd->bqk"}> : () -> ()
    %cst_241 = arith.constant dense<0.000000e+00> : vector<2x8x8xf32>
    %577 = tpu.matmul %574, %575, %cst_241 {dimension_numbers = #tpu.dot_dimension_numbers<[2], [2], [1], [1], [0, 0, 0, 1, 1, 1], [0], [0]>} : vector<2x8x8xf32>, vector<2x8x8xf32>, vector<2x8x8xf32> -> vector<2x8x8xf32>
    "tpu.trace_stop"() : () -> ()
    %578 = vector.broadcast %1 : f32 to vector<2x8x8xf32>
    %579 = arith.mulf %577, %578 : vector<2x8x8xf32>
    %cst_242 = arith.constant dense<0xFF800000> : vector<2x8xf32>
    %580 = vector.multi_reduction <maximumf>, %579, %cst_242 [2] : vector<2x8x8xf32> to vector<2x8xf32>
    %581 = vector.shape_cast %580 : vector<2x8xf32> to vector<2x8x1xf32>
    %582 = vector.broadcast %581 : vector<2x8x1xf32> to vector<2x8x8xf32>
    %583 = arith.subf %579, %582 : vector<2x8x8xf32>
    %584 = math.exp %583 : vector<2x8x8xf32>
    %cst_243 = arith.constant dense<0.000000e+00> : vector<2x8xf32>
    %585 = vector.multi_reduction <add>, %584, %cst_243 [2] : vector<2x8x8xf32> to vector<2x8xf32>
    %586 = vector.shape_cast %585 : vector<2x8xf32> to vector<2x8x1xf32>
    %587 = tpu.reciprocal %586 {approx = true} : vector<2x8x1xf32> -> vector<2x8x1xf32>
    %588 = vector.broadcast %587 : vector<2x8x1xf32> to vector<2x8x8xf32>
    %589 = arith.mulf %584, %588 : vector<2x8x8xf32>
    %590 = arith.addf %568, %589 : vector<2x8x8xf32>
    "tpu.trace_start"() <{level = 10 : i32, message = "bqk,bkd->bqd"}> : () -> ()
    %cst_244 = arith.constant dense<0.000000e+00> : vector<2x8x8xf32>
    %591 = tpu.matmul %589, %576, %cst_244 {dimension_numbers = #tpu.dot_dimension_numbers<[2], [1], [1], [2], [0, 0, 0, 1, 1, 2], [0], [0]>} : vector<2x8x8xf32>, vector<2x8x8xf32>, vector<2x8x8xf32> -> vector<2x8x8xf32>
    "tpu.trace_stop"() : () -> ()
    %592 = vector.shape_cast %591 : vector<2x8x8xf32> to vector<16x8xf32>
    %593 = vector.extract_strided_slice %492 {offsets = [24, 0], sizes = [8, 32], strides = [1, 1]} : vector<32x32xf32> to vector<8x32xf32>
    %cst_245 = arith.constant dense<0.000000e+00> : vector<16x32xf32>
    %594 = tpu.matmul %592, %593, %cst_245 {dimension_numbers = #tpu.dot_dimension_numbers<[1], [0], [0], [1], [0, 0, 1, 1], [], []>} : vector<16x8xf32>, vector<8x32xf32>, vector<16x32xf32> -> vector<16x32xf32>
    %595 = arith.addf %573, %594 : vector<16x32xf32>
    %596 = vector.broadcast %494 : vector<1x32xf32> to vector<16x32xf32>
    %597 = arith.addf %595, %596 : vector<16x32xf32>
    %cst_246 = arith.constant 2.500000e-01 : f32
    %598 = vector.broadcast %cst_246 : f32 to vector<2x8x8xf32>
    %599 = arith.mulf %590, %598 : vector<2x8x8xf32>
    %c1_247 = arith.constant 1 : index
    %c0_248 = arith.constant 0 : index
    %c0_249 = arith.constant 0 : index
    %600 = vector.load %arg15[%c1_247, %c0_248, %c0_249] : memref<2x1x32xf32, #tpu.memory_space<vmem>>, vector<1x1x32xf32>
    %601 = vector.shape_cast %600 : vector<1x1x32xf32> to vector<1x32xf32>
    %c1_250 = arith.constant 1 : index
    %c0_251 = arith.constant 0 : index
    %c0_252 = arith.constant 0 : index
    %602 = vector.load %arg16[%c1_250, %c0_251, %c0_252] : memref<2x1x32xf32, #tpu.memory_space<vmem>>, vector<1x1x32xf32>
    %603 = vector.shape_cast %602 : vector<1x1x32xf32> to vector<1x32xf32>
    %c1_253 = arith.constant 1 : index
    %c0_254 = arith.constant 0 : index
    %c0_255 = arith.constant 0 : index
    %604 = vector.load %arg17[%c1_253, %c0_254, %c0_255] : memref<2x32x64xf32, #tpu.memory_space<vmem>>, vector<1x32x64xf32>
    %605 = vector.shape_cast %604 : vector<1x32x64xf32> to vector<32x64xf32>
    %c1_256 = arith.constant 1 : index
    %c0_257 = arith.constant 0 : index
    %c0_258 = arith.constant 0 : index
    %606 = vector.load %arg18[%c1_256, %c0_257, %c0_258] : memref<2x1x64xf32, #tpu.memory_space<vmem>>, vector<1x1x64xf32>
    %607 = vector.shape_cast %606 : vector<1x1x64xf32> to vector<1x64xf32>
    %c1_259 = arith.constant 1 : index
    %c0_260 = arith.constant 0 : index
    %c0_261 = arith.constant 0 : index
    %608 = vector.load %arg19[%c1_259, %c0_260, %c0_261] : memref<2x64x32xf32, #tpu.memory_space<vmem>>, vector<1x64x32xf32>
    %609 = vector.shape_cast %608 : vector<1x64x32xf32> to vector<64x32xf32>
    %c1_262 = arith.constant 1 : index
    %c0_263 = arith.constant 0 : index
    %c0_264 = arith.constant 0 : index
    %610 = vector.load %arg20[%c1_262, %c0_263, %c0_264] : memref<2x1x32xf32, #tpu.memory_space<vmem>>, vector<1x1x32xf32>
    %611 = vector.shape_cast %610 : vector<1x1x32xf32> to vector<1x32xf32>
    %c1_265 = arith.constant 1 : index
    %c0_266 = arith.constant 0 : index
    %c0_267 = arith.constant 0 : index
    %612 = vector.load %arg21[%c1_265, %c0_266, %c0_267] : memref<2x1x32xf32, #tpu.memory_space<vmem>>, vector<1x1x32xf32>
    %613 = vector.shape_cast %612 : vector<1x1x32xf32> to vector<1x32xf32>
    %c1_268 = arith.constant 1 : index
    %c0_269 = arith.constant 0 : index
    %c0_270 = arith.constant 0 : index
    %614 = vector.load %arg22[%c1_268, %c0_269, %c0_270] : memref<2x1x32xf32, #tpu.memory_space<vmem>>, vector<1x1x32xf32>
    %615 = vector.shape_cast %614 : vector<1x1x32xf32> to vector<1x32xf32>
    %616 = arith.addf %295, %480 : vector<16x32xf32>
    %cst_271 = arith.constant dense<0.000000e+00> : vector<16xf32>
    %617 = vector.multi_reduction <add>, %616, %cst_271 [1] : vector<16x32xf32> to vector<16xf32>
    %618 = vector.shape_cast %617 : vector<16xf32> to vector<16x1xf32>
    %cst_272 = arith.constant 3.200000e+01 : f32
    %619 = vector.broadcast %cst_272 : f32 to vector<16x1xf32>
    %620 = arith.divf %618, %619 : vector<16x1xf32>
    %621 = vector.broadcast %620 : vector<16x1xf32> to vector<16x32xf32>
    %622 = arith.subf %616, %621 : vector<16x32xf32>
    %623 = arith.mulf %622, %622 : vector<16x32xf32>
    %cst_273 = arith.constant dense<0.000000e+00> : vector<16xf32>
    %624 = vector.multi_reduction <add>, %623, %cst_273 [1] : vector<16x32xf32> to vector<16xf32>
    %625 = vector.shape_cast %624 : vector<16xf32> to vector<16x1xf32>
    %cst_274 = arith.constant 3.200000e+01 : f32
    %626 = vector.broadcast %cst_274 : f32 to vector<16x1xf32>
    %627 = arith.divf %625, %626 : vector<16x1xf32>
    %628 = vector.broadcast %620 : vector<16x1xf32> to vector<16x32xf32>
    %629 = arith.subf %616, %628 : vector<16x32xf32>
    %cst_275 = arith.constant 9.99999974E-6 : f32
    %630 = vector.broadcast %cst_275 : f32 to vector<16x1xf32>
    %631 = arith.addf %627, %630 : vector<16x1xf32>
    %632 = math.rsqrt %631 : vector<16x1xf32>
    %633 = vector.broadcast %632 : vector<16x1xf32> to vector<16x32xf32>
    %634 = arith.mulf %629, %633 : vector<16x32xf32>
    %635 = vector.broadcast %601 : vector<1x32xf32> to vector<16x32xf32>
    %636 = arith.mulf %634, %635 : vector<16x32xf32>
    %637 = vector.broadcast %603 : vector<1x32xf32> to vector<16x32xf32>
    %638 = arith.addf %636, %637 : vector<16x32xf32>
    %cst_276 = arith.constant dense<0.000000e+00> : vector<16x64xf32>
    %639 = tpu.matmul %638, %605, %cst_276 {dimension_numbers = #tpu.dot_dimension_numbers<[1], [0], [0], [1], [0, 0, 1, 1], [], []>} : vector<16x32xf32>, vector<32x64xf32>, vector<16x64xf32> -> vector<16x64xf32>
    %640 = vector.broadcast %607 : vector<1x64xf32> to vector<16x64xf32>
    %641 = arith.addf %639, %640 : vector<16x64xf32>
    %cst_277 = arith.constant 0.000000e+00 : f32
    %642 = vector.broadcast %cst_277 : f32 to vector<16x64xf32>
    %643 = arith.maximumf %641, %642 : vector<16x64xf32>
    %cst_278 = arith.constant dense<0.000000e+00> : vector<16x32xf32>
    %644 = tpu.matmul %643, %609, %cst_278 {dimension_numbers = #tpu.dot_dimension_numbers<[1], [0], [0], [1], [0, 0, 1, 1], [], []>} : vector<16x64xf32>, vector<64x32xf32>, vector<16x32xf32> -> vector<16x32xf32>
    %645 = vector.broadcast %611 : vector<1x32xf32> to vector<16x32xf32>
    %646 = arith.addf %644, %645 : vector<16x32xf32>
    %647 = arith.addf %638, %646 : vector<16x32xf32>
    %cst_279 = arith.constant dense<0.000000e+00> : vector<16xf32>
    %648 = vector.multi_reduction <add>, %647, %cst_279 [1] : vector<16x32xf32> to vector<16xf32>
    %649 = vector.shape_cast %648 : vector<16xf32> to vector<16x1xf32>
    %cst_280 = arith.constant 3.200000e+01 : f32
    %650 = vector.broadcast %cst_280 : f32 to vector<16x1xf32>
    %651 = arith.divf %649, %650 : vector<16x1xf32>
    %652 = vector.broadcast %651 : vector<16x1xf32> to vector<16x32xf32>
    %653 = arith.subf %647, %652 : vector<16x32xf32>
    %654 = arith.mulf %653, %653 : vector<16x32xf32>
    %cst_281 = arith.constant dense<0.000000e+00> : vector<16xf32>
    %655 = vector.multi_reduction <add>, %654, %cst_281 [1] : vector<16x32xf32> to vector<16xf32>
    %656 = vector.shape_cast %655 : vector<16xf32> to vector<16x1xf32>
    %cst_282 = arith.constant 3.200000e+01 : f32
    %657 = vector.broadcast %cst_282 : f32 to vector<16x1xf32>
    %658 = arith.divf %656, %657 : vector<16x1xf32>
    %659 = vector.broadcast %651 : vector<16x1xf32> to vector<16x32xf32>
    %660 = arith.subf %647, %659 : vector<16x32xf32>
    %cst_283 = arith.constant 9.99999974E-6 : f32
    %661 = vector.broadcast %cst_283 : f32 to vector<16x1xf32>
    %662 = arith.addf %658, %661 : vector<16x1xf32>
    %663 = math.rsqrt %662 : vector<16x1xf32>
    %664 = vector.broadcast %663 : vector<16x1xf32> to vector<16x32xf32>
    %665 = arith.mulf %660, %664 : vector<16x32xf32>
    %666 = vector.broadcast %613 : vector<1x32xf32> to vector<16x32xf32>
    %667 = arith.mulf %665, %666 : vector<16x32xf32>
    %668 = vector.broadcast %615 : vector<1x32xf32> to vector<16x32xf32>
    %669 = arith.addf %667, %668 : vector<16x32xf32>
    %c1_284 = arith.constant 1 : index
    %c0_285 = arith.constant 0 : index
    %c0_286 = arith.constant 0 : index
    %670 = vector.load %arg23[%c1_284, %c0_285, %c0_286] : memref<2x1x32xf32, #tpu.memory_space<vmem>>, vector<1x1x32xf32>
    %671 = vector.shape_cast %670 : vector<1x1x32xf32> to vector<1x32xf32>
    %c1_287 = arith.constant 1 : index
    %c0_288 = arith.constant 0 : index
    %c0_289 = arith.constant 0 : index
    %672 = vector.load %arg24[%c1_287, %c0_288, %c0_289] : memref<2x1x32xf32, #tpu.memory_space<vmem>>, vector<1x1x32xf32>
    %673 = vector.shape_cast %672 : vector<1x1x32xf32> to vector<1x32xf32>
    %c1_290 = arith.constant 1 : index
    %c0_291 = arith.constant 0 : index
    %c0_292 = arith.constant 0 : index
    %674 = vector.load %arg25[%c1_290, %c0_291, %c0_292] : memref<2x32x64xf32, #tpu.memory_space<vmem>>, vector<1x32x64xf32>
    %675 = vector.shape_cast %674 : vector<1x32x64xf32> to vector<32x64xf32>
    %c1_293 = arith.constant 1 : index
    %c0_294 = arith.constant 0 : index
    %c0_295 = arith.constant 0 : index
    %676 = vector.load %arg26[%c1_293, %c0_294, %c0_295] : memref<2x1x64xf32, #tpu.memory_space<vmem>>, vector<1x1x64xf32>
    %677 = vector.shape_cast %676 : vector<1x1x64xf32> to vector<1x64xf32>
    %c1_296 = arith.constant 1 : index
    %c0_297 = arith.constant 0 : index
    %c0_298 = arith.constant 0 : index
    %678 = vector.load %arg27[%c1_296, %c0_297, %c0_298] : memref<2x64x32xf32, #tpu.memory_space<vmem>>, vector<1x64x32xf32>
    %679 = vector.shape_cast %678 : vector<1x64x32xf32> to vector<64x32xf32>
    %c1_299 = arith.constant 1 : index
    %c0_300 = arith.constant 0 : index
    %c0_301 = arith.constant 0 : index
    %680 = vector.load %arg28[%c1_299, %c0_300, %c0_301] : memref<2x1x32xf32, #tpu.memory_space<vmem>>, vector<1x1x32xf32>
    %681 = vector.shape_cast %680 : vector<1x1x32xf32> to vector<1x32xf32>
    %c1_302 = arith.constant 1 : index
    %c0_303 = arith.constant 0 : index
    %c0_304 = arith.constant 0 : index
    %682 = vector.load %arg29[%c1_302, %c0_303, %c0_304] : memref<2x1x32xf32, #tpu.memory_space<vmem>>, vector<1x1x32xf32>
    %683 = vector.shape_cast %682 : vector<1x1x32xf32> to vector<1x32xf32>
    %c1_305 = arith.constant 1 : index
    %c0_306 = arith.constant 0 : index
    %c0_307 = arith.constant 0 : index
    %684 = vector.load %arg30[%c1_305, %c0_306, %c0_307] : memref<2x1x32xf32, #tpu.memory_space<vmem>>, vector<1x1x32xf32>
    %685 = vector.shape_cast %684 : vector<1x1x32xf32> to vector<1x32xf32>
    %686 = arith.addf %365, %597 : vector<16x32xf32>
    %cst_308 = arith.constant dense<0.000000e+00> : vector<16xf32>
    %687 = vector.multi_reduction <add>, %686, %cst_308 [1] : vector<16x32xf32> to vector<16xf32>
    %688 = vector.shape_cast %687 : vector<16xf32> to vector<16x1xf32>
    %cst_309 = arith.constant 3.200000e+01 : f32
    %689 = vector.broadcast %cst_309 : f32 to vector<16x1xf32>
    %690 = arith.divf %688, %689 : vector<16x1xf32>
    %691 = vector.broadcast %690 : vector<16x1xf32> to vector<16x32xf32>
    %692 = arith.subf %686, %691 : vector<16x32xf32>
    %693 = arith.mulf %692, %692 : vector<16x32xf32>
    %cst_310 = arith.constant dense<0.000000e+00> : vector<16xf32>
    %694 = vector.multi_reduction <add>, %693, %cst_310 [1] : vector<16x32xf32> to vector<16xf32>
    %695 = vector.shape_cast %694 : vector<16xf32> to vector<16x1xf32>
    %cst_311 = arith.constant 3.200000e+01 : f32
    %696 = vector.broadcast %cst_311 : f32 to vector<16x1xf32>
    %697 = arith.divf %695, %696 : vector<16x1xf32>
    %698 = vector.broadcast %690 : vector<16x1xf32> to vector<16x32xf32>
    %699 = arith.subf %686, %698 : vector<16x32xf32>
    %cst_312 = arith.constant 9.99999974E-6 : f32
    %700 = vector.broadcast %cst_312 : f32 to vector<16x1xf32>
    %701 = arith.addf %697, %700 : vector<16x1xf32>
    %702 = math.rsqrt %701 : vector<16x1xf32>
    %703 = vector.broadcast %702 : vector<16x1xf32> to vector<16x32xf32>
    %704 = arith.mulf %699, %703 : vector<16x32xf32>
    %705 = vector.broadcast %671 : vector<1x32xf32> to vector<16x32xf32>
    %706 = arith.mulf %704, %705 : vector<16x32xf32>
    %707 = vector.broadcast %673 : vector<1x32xf32> to vector<16x32xf32>
    %708 = arith.addf %706, %707 : vector<16x32xf32>
    %cst_313 = arith.constant dense<0.000000e+00> : vector<16x64xf32>
    %709 = tpu.matmul %708, %675, %cst_313 {dimension_numbers = #tpu.dot_dimension_numbers<[1], [0], [0], [1], [0, 0, 1, 1], [], []>} : vector<16x32xf32>, vector<32x64xf32>, vector<16x64xf32> -> vector<16x64xf32>
    %710 = vector.broadcast %677 : vector<1x64xf32> to vector<16x64xf32>
    %711 = arith.addf %709, %710 : vector<16x64xf32>
    %cst_314 = arith.constant 0.000000e+00 : f32
    %712 = vector.broadcast %cst_314 : f32 to vector<16x64xf32>
    %713 = arith.maximumf %711, %712 : vector<16x64xf32>
    %cst_315 = arith.constant dense<0.000000e+00> : vector<16x32xf32>
    %714 = tpu.matmul %713, %679, %cst_315 {dimension_numbers = #tpu.dot_dimension_numbers<[1], [0], [0], [1], [0, 0, 1, 1], [], []>} : vector<16x64xf32>, vector<64x32xf32>, vector<16x32xf32> -> vector<16x32xf32>
    %715 = vector.broadcast %681 : vector<1x32xf32> to vector<16x32xf32>
    %716 = arith.addf %714, %715 : vector<16x32xf32>
    %717 = arith.addf %708, %716 : vector<16x32xf32>
    %cst_316 = arith.constant dense<0.000000e+00> : vector<16xf32>
    %718 = vector.multi_reduction <add>, %717, %cst_316 [1] : vector<16x32xf32> to vector<16xf32>
    %719 = vector.shape_cast %718 : vector<16xf32> to vector<16x1xf32>
    %cst_317 = arith.constant 3.200000e+01 : f32
    %720 = vector.broadcast %cst_317 : f32 to vector<16x1xf32>
    %721 = arith.divf %719, %720 : vector<16x1xf32>
    %722 = vector.broadcast %721 : vector<16x1xf32> to vector<16x32xf32>
    %723 = arith.subf %717, %722 : vector<16x32xf32>
    %724 = arith.mulf %723, %723 : vector<16x32xf32>
    %cst_318 = arith.constant dense<0.000000e+00> : vector<16xf32>
    %725 = vector.multi_reduction <add>, %724, %cst_318 [1] : vector<16x32xf32> to vector<16xf32>
    %726 = vector.shape_cast %725 : vector<16xf32> to vector<16x1xf32>
    %cst_319 = arith.constant 3.200000e+01 : f32
    %727 = vector.broadcast %cst_319 : f32 to vector<16x1xf32>
    %728 = arith.divf %726, %727 : vector<16x1xf32>
    %729 = vector.broadcast %721 : vector<16x1xf32> to vector<16x32xf32>
    %730 = arith.subf %717, %729 : vector<16x32xf32>
    %cst_320 = arith.constant 9.99999974E-6 : f32
    %731 = vector.broadcast %cst_320 : f32 to vector<16x1xf32>
    %732 = arith.addf %728, %731 : vector<16x1xf32>
    %733 = math.rsqrt %732 : vector<16x1xf32>
    %734 = vector.broadcast %733 : vector<16x1xf32> to vector<16x32xf32>
    %735 = arith.mulf %730, %734 : vector<16x32xf32>
    %736 = vector.broadcast %683 : vector<1x32xf32> to vector<16x32xf32>
    %737 = arith.mulf %735, %736 : vector<16x32xf32>
    %738 = vector.broadcast %685 : vector<1x32xf32> to vector<16x32xf32>
    %739 = arith.addf %737, %738 : vector<16x32xf32>
    %c0_321 = arith.constant 0 : index
    %c0_322 = arith.constant 0 : index
    %c0_323 = arith.constant 0 : index
    %740 = vector.load %arg33[%c0_321, %c0_322, %c0_323] : memref<2x8x8xf32, #tpu.memory_space<vmem>>, vector<2x8x8xf32>
    tpu.vector_store %arg33[%c0_321, %c0_322, %c0_323], %482 {strides = array<i32>} : memref<2x8x8xf32, #tpu.memory_space<vmem>>, vector<2x8x8xf32>,
    %c0_324 = arith.constant 0 : index
    %c0_325 = arith.constant 0 : index
    %c0_326 = arith.constant 0 : index
    %741 = vector.load %arg34[%c0_324, %c0_325, %c0_326] : memref<2x8x8xf32, #tpu.memory_space<vmem>>, vector<2x8x8xf32>
    tpu.vector_store %arg34[%c0_324, %c0_325, %c0_326], %599 {strides = array<i32>} : memref<2x8x8xf32, #tpu.memory_space<vmem>>, vector<2x8x8xf32>,
    %742 = vector.shape_cast %669 : vector<16x32xf32> to vector<2x8x32xf32>
    %c0_327 = arith.constant 0 : index
    %c0_328 = arith.constant 0 : index
    %c0_329 = arith.constant 0 : index
    %743 = vector.load %arg31[%c0_327, %c0_328, %c0_329] : memref<2x8x32xf32, #tpu.memory_space<vmem>>, vector<2x8x32xf32>
    tpu.vector_store %arg31[%c0_327, %c0_328, %c0_329], %742 {strides = array<i32>} : memref<2x8x32xf32, #tpu.memory_space<vmem>>, vector<2x8x32xf32>,
    %744 = vector.shape_cast %739 : vector<16x32xf32> to vector<2x8x32xf32>
    %c0_330 = arith.constant 0 : index
    %c0_331 = arith.constant 0 : index
    %c0_332 = arith.constant 0 : index
    %745 = vector.load %arg32[%c0_330, %c0_331, %c0_332] : memref<2x8x32xf32, #tpu.memory_space<vmem>>, vector<2x8x32xf32>
    tpu.vector_store %arg32[%c0_330, %c0_331, %c0_332], %744 {strides = array<i32>} : memref<2x8x32xf32, #tpu.memory_space<vmem>>, vector<2x8x32xf32>,
    return
  }
  func.func @transform_0(%arg0: i32) -> (i32, i32, i32) {
    %c0_i32 = arith.constant 0 : i32
    %c0_i32_0 = arith.constant 0 : i32
    %c0_i32_1 = arith.constant 0 : i32
    %c0_i32_2 = arith.constant 0 : i32
    return %c0_i32, %c0_i32_0, %c0_i32_1 : i32, i32, i32
  }
  func.func @transform_1(%arg0: i32) -> (i32, i32, i32) {
    %c0_i32 = arith.constant 0 : i32
    %c0_i32_0 = arith.constant 0 : i32
    %c0_i32_1 = arith.constant 0 : i32
    %c0_i32_2 = arith.constant 0 : i32
    return %c0_i32, %c0_i32_0, %c0_i32_1 : i32, i32, i32
  }
  func.func @transform_2(%arg0: i32) -> (i32, i32, i32) {
    %c0_i32 = arith.constant 0 : i32
    %c0_i32_0 = arith.constant 0 : i32
    %c0_i32_1 = arith.constant 0 : i32
    %c0_i32_2 = arith.constant 0 : i32
    return %c0_i32, %c0_i32_0, %c0_i32_1 : i32, i32, i32
  }
  func.func @transform_3(%arg0: i32) -> (i32, i32, i32) {
    %c0_i32 = arith.constant 0 : i32
    %c0_i32_0 = arith.constant 0 : i32
    %c0_i32_1 = arith.constant 0 : i32
    %c0_i32_2 = arith.constant 0 : i32
    return %c0_i32, %c0_i32_0, %c0_i32_1 : i32, i32, i32
  }
  func.func @transform_4(%arg0: i32) -> (i32, i32, i32) {
    %c0_i32 = arith.constant 0 : i32
    %c0_i32_0 = arith.constant 0 : i32
    %c0_i32_1 = arith.constant 0 : i32
    %c0_i32_2 = arith.constant 0 : i32
    return %c0_i32, %c0_i32_0, %c0_i32_1 : i32, i32, i32
  }
  func.func @transform_5(%arg0: i32) -> (i32, i32, i32) {
    %c0_i32 = arith.constant 0 : i32
    %c0_i32_0 = arith.constant 0 : i32
    %c0_i32_1 = arith.constant 0 : i32
    %c0_i32_2 = arith.constant 0 : i32
    return %c0_i32, %c0_i32_0, %c0_i32_1 : i32, i32, i32
  }
  func.func @transform_6(%arg0: i32) -> (i32, i32, i32) {
    %c0_i32 = arith.constant 0 : i32
    %c0_i32_0 = arith.constant 0 : i32
    %c0_i32_1 = arith.constant 0 : i32
    %c0_i32_2 = arith.constant 0 : i32
    return %c0_i32, %c0_i32_0, %c0_i32_1 : i32, i32, i32
  }
  func.func @transform_7(%arg0: i32) -> (i32, i32, i32) {
    %c0_i32 = arith.constant 0 : i32
    %c0_i32_0 = arith.constant 0 : i32
    %c0_i32_1 = arith.constant 0 : i32
    %c0_i32_2 = arith.constant 0 : i32
    return %c0_i32, %c0_i32_0, %c0_i32_1 : i32, i32, i32
  }
  func.func @transform_8(%arg0: i32) -> (i32, i32, i32) {
    %c0_i32 = arith.constant 0 : i32
    %c0_i32_0 = arith.constant 0 : i32
    %c0_i32_1 = arith.constant 0 : i32
    %c0_i32_2 = arith.constant 0 : i32
    return %c0_i32, %c0_i32_0, %c0_i32_1 : i32, i32, i32
  }
  func.func @transform_9(%arg0: i32) -> (i32, i32, i32) {
    %c0_i32 = arith.constant 0 : i32
    %c0_i32_0 = arith.constant 0 : i32
    %c0_i32_1 = arith.constant 0 : i32
    %c0_i32_2 = arith.constant 0 : i32
    return %c0_i32, %c0_i32_0, %c0_i32_1 : i32, i32, i32
  }
  func.func @transform_10(%arg0: i32) -> (i32, i32, i32) {
    %c0_i32 = arith.constant 0 : i32
    %c0_i32_0 = arith.constant 0 : i32
    %c0_i32_1 = arith.constant 0 : i32
    %c0_i32_2 = arith.constant 0 : i32
    return %c0_i32, %c0_i32_0, %c0_i32_1 : i32, i32, i32
  }
  func.func @transform_11(%arg0: i32) -> (i32, i32, i32) {
    %c0_i32 = arith.constant 0 : i32
    %c0_i32_0 = arith.constant 0 : i32
    %c0_i32_1 = arith.constant 0 : i32
    %c0_i32_2 = arith.constant 0 : i32
    return %c0_i32, %c0_i32_0, %c0_i32_1 : i32, i32, i32
  }
  func.func @transform_12(%arg0: i32) -> (i32, i32, i32) {
    %c0_i32 = arith.constant 0 : i32
    %c0_i32_0 = arith.constant 0 : i32
    %c0_i32_1 = arith.constant 0 : i32
    %c0_i32_2 = arith.constant 0 : i32
    return %c0_i32, %c0_i32_0, %c0_i32_1 : i32, i32, i32
  }
  func.func @transform_13(%arg0: i32) -> (i32, i32, i32) {
    %c0_i32 = arith.constant 0 : i32
    %c0_i32_0 = arith.constant 0 : i32
    %c0_i32_1 = arith.constant 0 : i32
    %c0_i32_2 = arith.constant 0 : i32
    return %c0_i32, %c0_i32_0, %c0_i32_1 : i32, i32, i32
  }
  func.func @transform_14(%arg0: i32) -> (i32, i32, i32) {
    %c0_i32 = arith.constant 0 : i32
    %c0_i32_0 = arith.constant 0 : i32
    %c0_i32_1 = arith.constant 0 : i32
    %c0_i32_2 = arith.constant 0 : i32
    return %c0_i32, %c0_i32_0, %c0_i32_1 : i32, i32, i32
  }
  func.func @transform_15(%arg0: i32) -> (i32, i32, i32) {
    %c0_i32 = arith.constant 0 : i32
    %c0_i32_0 = arith.constant 0 : i32
    %c0_i32_1 = arith.constant 0 : i32
    %c0_i32_2 = arith.constant 0 : i32
    return %c0_i32, %c0_i32_0, %c0_i32_1 : i32, i32, i32
  }
  func.func @transform_16(%arg0: i32) -> (i32, i32, i32) {
    %c0_i32 = arith.constant 0 : i32
    %c0_i32_0 = arith.constant 0 : i32
    %c0_i32_1 = arith.constant 0 : i32
    %c0_i32_2 = arith.constant 0 : i32
    return %c0_i32, %c0_i32_0, %c0_i32_1 : i32, i32, i32
  }
  func.func @transform_17(%arg0: i32) -> (i32, i32, i32) {
    %c0_i32 = arith.constant 0 : i32
    %c0_i32_0 = arith.constant 0 : i32
    %c0_i32_1 = arith.constant 0 : i32
    %c0_i32_2 = arith.constant 0 : i32
    return %c0_i32, %c0_i32_0, %c0_i32_1 : i32, i32, i32
  }
  func.func @transform_18(%arg0: i32) -> (i32, i32, i32) {
    %c0_i32 = arith.constant 0 : i32
    %c0_i32_0 = arith.constant 0 : i32
    %c0_i32_1 = arith.constant 0 : i32
    %c0_i32_2 = arith.constant 0 : i32
    return %c0_i32, %c0_i32_0, %c0_i32_1 : i32, i32, i32
  }
  func.func @transform_19(%arg0: i32) -> (i32, i32, i32) {
    %c0_i32 = arith.constant 0 : i32
    %c0_i32_0 = arith.constant 0 : i32
    %c0_i32_1 = arith.constant 0 : i32
    %c0_i32_2 = arith.constant 0 : i32
    return %c0_i32, %c0_i32_0, %c0_i32_1 : i32, i32, i32
  }
  func.func @transform_20(%arg0: i32) -> (i32, i32, i32) {
    %c0_i32 = arith.constant 0 : i32
    %c0_i32_0 = arith.constant 0 : i32
    %c0_i32_1 = arith.constant 0 : i32
    %c0_i32_2 = arith.constant 0 : i32
    return %c0_i32, %c0_i32_0, %c0_i32_1 : i32, i32, i32
  }
  func.func @transform_21(%arg0: i32) -> (i32, i32, i32) {
    %c0_i32 = arith.constant 0 : i32
    %c0_i32_0 = arith.constant 0 : i32
    %c0_i32_1 = arith.constant 0 : i32
    %c0_i32_2 = arith.constant 0 : i32
    return %c0_i32, %c0_i32_0, %c0_i32_1 : i32, i32, i32
  }
  func.func @transform_22(%arg0: i32) -> (i32, i32, i32) {
    %c0_i32 = arith.constant 0 : i32
    %c0_i32_0 = arith.constant 0 : i32
    %c0_i32_1 = arith.constant 0 : i32
    %c0_i32_2 = arith.constant 0 : i32
    return %c0_i32, %c0_i32_0, %c0_i32_1 : i32, i32, i32
  }
  func.func @transform_23(%arg0: i32) -> (i32, i32, i32) {
    %c0_i32 = arith.constant 0 : i32
    %c0_i32_0 = arith.constant 0 : i32
    %c0_i32_1 = arith.constant 0 : i32
    %c0_i32_2 = arith.constant 0 : i32
    return %c0_i32, %c0_i32_0, %c0_i32_1 : i32, i32, i32
  }
  func.func @transform_24(%arg0: i32) -> (i32, i32, i32) {
    %c0_i32 = arith.constant 0 : i32
    %c0_i32_0 = arith.constant 0 : i32
    %c0_i32_1 = arith.constant 0 : i32
    %c0_i32_2 = arith.constant 0 : i32
    return %c0_i32, %c0_i32_0, %c0_i32_1 : i32, i32, i32
  }
  func.func @transform_25(%arg0: i32) -> (i32, i32, i32) {
    %c0_i32 = arith.constant 0 : i32
    %c0_i32_0 = arith.constant 0 : i32
    %c0_i32_1 = arith.constant 0 : i32
    %c0_i32_2 = arith.constant 0 : i32
    return %c0_i32, %c0_i32_0, %c0_i32_1 : i32, i32, i32
  }
  func.func @transform_26(%arg0: i32) -> (i32, i32, i32) {
    %c0_i32 = arith.constant 0 : i32
    %c0_i32_0 = arith.constant 0 : i32
    %c0_i32_1 = arith.constant 0 : i32
    %c0_i32_2 = arith.constant 0 : i32
    return %c0_i32, %c0_i32_0, %c0_i32_1 : i32, i32, i32
  }
  func.func @transform_27(%arg0: i32) -> (i32, i32, i32) {
    %c0_i32 = arith.constant 0 : i32
    %c0_i32_0 = arith.constant 0 : i32
    %c0_i32_1 = arith.constant 0 : i32
    %c0_i32_2 = arith.constant 0 : i32
    return %c0_i32, %c0_i32_0, %c0_i32_1 : i32, i32, i32
  }
  func.func @transform_28(%arg0: i32) -> (i32, i32, i32) {
    %c0_i32 = arith.constant 0 : i32
    %c0_i32_0 = arith.constant 0 : i32
    %c0_i32_1 = arith.constant 0 : i32
    %c0_i32_2 = arith.constant 0 : i32
    return %c0_i32, %c0_i32_0, %c0_i32_1 : i32, i32, i32
  }
  func.func @transform_29(%arg0: i32) -> (i32, i32, i32) {
    %c0_i32 = arith.constant 0 : i32
    %c0_i32_0 = arith.constant 0 : i32
    %c0_i32_1 = arith.constant 0 : i32
    %c0_i32_2 = arith.constant 0 : i32
    return %c0_i32, %c0_i32_0, %c0_i32_1 : i32, i32, i32
  }
  func.func @transform_30(%arg0: i32) -> (i32, i32, i32) {
    %c0_i32 = arith.constant 0 : i32
    %c0_i32_0 = arith.constant 0 : i32
    %c0_i32_1 = arith.constant 0 : i32
    %c0_i32_2 = arith.constant 0 : i32
    return %c0_i32, %c0_i32_0, %c0_i32_1 : i32, i32, i32
  }
  func.func @transform_31(%arg0: i32) -> (i32, i32, i32) {
    %c0_i32 = arith.constant 0 : i32
    %c0_i32_0 = arith.constant 0 : i32
    %c0_i32_1 = arith.constant 0 : i32
    %c0_i32_2 = arith.constant 0 : i32
    return %c0_i32, %c0_i32_0, %c0_i32_1 : i32, i32, i32
  }
  func.func @transform_32(%arg0: i32) -> (i32, i32, i32) {
    %c0_i32 = arith.constant 0 : i32
    %c0_i32_0 = arith.constant 0 : i32
    %c0_i32_1 = arith.constant 0 : i32
    %c0_i32_2 = arith.constant 0 : i32
    return %c0_i32, %c0_i32_0, %c0_i32_1 : i32, i32, i32
  }
  func.func @transform_33(%arg0: i32) -> (i32, i32, i32) {
    %c0_i32 = arith.constant 0 : i32
    %c0_i32_0 = arith.constant 0 : i32
    %c0_i32_1 = arith.constant 0 : i32
    %c0_i32_2 = arith.constant 0 : i32
    return %c0_i32, %c0_i32_0, %c0_i32_1 : i32, i32, i32
  }
}

</mosaic_0001>

<bundles_post_ra>
// kernel: dual_attention.1
= control target key start
LH: loop header
LB: loop body
LE: loop exit
PB: predicated region body
PF: predicated region fallthrough
CT: control target
= control target key end

     0   :  { %s10444_s6 = smov 1   ;;  %s10445_s10 = smov 2   ;;  %s11670_s0 = inlined_call_operand.smem [shape: u32[34], index: -1, kind: input, shape index: {}] }
   0x1   :  { %s10500_s5 = sld [smem:[%s11670_s0]]   ;;  %s10446_s14 = smov 3  }
   0x2   :  { %s10505_s9 = sld [smem:[%s11670_s0 + %s10444_s6]]   ;;  %s10447_s18 = smov 4  }
   0x3   :  { %s10510_s13 = sld [smem:[%s11670_s0 + %s10445_s10]]   ;;  %s10448_s22 = smov 5  }
   0x4   :  { %s10515_s17 = sld [smem:[%s11670_s0 + %s10446_s14]]   ;;  %s10449_s26 = smov 6  }
   0x5   :  { %s10520_s21 = sld [smem:[%s11670_s0 + %s10447_s18]]   ;;  %s10450_s30 = smov 7  }
   0x6   :  { %s10525_s25 = sld [smem:[%s11670_s0 + %s10448_s22]]   ;;  %s10451_s4 = smov 8  }
   0x7   :  { %s10530_s29 = sld [smem:[%s11670_s0 + %s10449_s26]]   ;;  %s10452_s10 = smov 9  }
   0x8   :  { %s10535_s3 = sld [smem:[%s11670_s0 + %s10450_s30]]   ;;  %s10453_s15 = smov 10  }
   0x9   :  { %s10540_s8 = sld [smem:[%s11670_s0 + %s10451_s4]]   ;;  %s10454_s20 = smov 11  }
   0xa   :  { %s10545_s14 = sld [smem:[%s11670_s0 + %s10452_s10]]   ;;  %s10455_s26 = smov 12  }
   0xb   :  { %s10550_s19 = sld [smem:[%s11670_s0 + %s10453_s15]]   ;;  %s10456_s1 = smov 13  }
   0xc   :  { %s10555_s24 = sld [smem:[%s11670_s0 + %s10454_s20]]   ;;  %s10457_s7 = smov 14  }
   0xd   :  { %s10560_s30 = sld [smem:[%s11670_s0 + %s10455_s26]]   ;;  %s10458_s15 = smov 15  }
   0xe   :  { %s10565_s6 = sld [smem:[%s11670_s0 + %s10456_s1]]   ;;  %s10459_s22 = smov 16  }
   0xf   :  { %s10570_s12 = sld [smem:[%s11670_s0 + %s10457_s7]]   ;;  %s10460_s28 = smov 17  }
  0x10   :  { %s10575_s20 = sld [smem:[%s11670_s0 + %s10458_s15]]   ;;  %s10461_s7 = smov 18  }
  0x11   :  { %s10580_s27 = sld [smem:[%s11670_s0 + %s10459_s22]]   ;;  %s10462_s15 = smov 19  }
  0x12   :  { %s10585_s4 = sld [smem:[%s11670_s0 + %s10460_s28]]   ;;  %s10463_s22 = smov 20  }
  0x13   :  { %s10464_s28 = smov 21  }
  0x15   :  { %11704 = sst [smem:[#allocation12_spill]] %s10570_s12 }
  0x16   :  { %11705 = sst [smem:[#allocation13_spill]] %s10575_s20 }
  0x17   :  { %11706 = sst [smem:[#allocation14_spill]] %s10580_s27 }
  0x18   :  { %11707 = sst [smem:[#allocation15_spill]] %s10585_s4 }
  0x19   :  { %s10590_s12 = sld [smem:[%s11670_s0 + %s10461_s7]]   ;;  %s10465_s7 = smov 22  }
  0x1a   :  { %s10595_s20 = sld [smem:[%s11670_s0 + %s10462_s15]]   ;;  %s10466_s15 = smov 23  }
  0x1b   :  { %s10600_s27 = sld [smem:[%s11670_s0 + %s10463_s22]]   ;;  %s10467_s22 = smov 24  }
  0x1c   :  { %s10605_s4 = sld [smem:[%s11670_s0 + %s10464_s28]]   ;;  %s10468_s28 = smov 25  }
  0x1f   :  { %11708 = sst [smem:[#allocation16_spill]] %s10590_s12 }
  0x20   :  { %11709 = sst [smem:[#allocation17_spill]] %s10595_s20 }
  0x21   :  { %11710 = sst [smem:[#allocation18_spill]] %s10600_s27 }
  0x22   :  { %11711 = sst [smem:[#allocation19_spill]] %s10605_s4 }
  0x23   :  { %s10610_s12 = sld [smem:[%s11670_s0 + %s10465_s7]]   ;;  %s10469_s7 = smov 26  }
  0x24   :  { %s10615_s20 = sld [smem:[%s11670_s0 + %s10466_s15]]   ;;  %s10470_s15 = smov 27  }
  0x25   :  { %s10620_s27 = sld [smem:[%s11670_s0 + %s10467_s22]]   ;;  %s10471_s22 = smov 28  }
  0x26   :  { %s10625_s4 = sld [smem:[%s11670_s0 + %s10468_s28]]   ;;  %s10472_s28 = smov 29  }
  0x29   :  { %11712 = sst [smem:[#allocation20_spill]] %s10610_s12 }
  0x2a   :  { %11713 = sst [smem:[#allocation21_spill]] %s10615_s20 }
  0x2b   :  { %11714 = sst [smem:[#allocation22_spill]] %s10620_s27 }
  0x2c   :  { %11715 = sst [smem:[#allocation23_spill]] %s10625_s4 }
  0x2d   :  { %s10630_s12 = sld [smem:[%s11670_s0 + %s10469_s7]]   ;;  %s10473_s7 = smov 30  }
  0x2e   :  { %s10635_s20 = sld [smem:[%s11670_s0 + %s10470_s15]]   ;;  %s10474_s15 = smov 31  }
  0x2f   :  { %s10640_s27 = sld [smem:[%s11670_s0 + %s10471_s22]]   ;;  %s10475_s22 = smov 32  }
  0x30   :  { %s10645_s4 = sld [smem:[%s11670_s0 + %s10472_s28]]   ;;  %s10476_s28 = smov 33  }
  0x33   :  { %11716 = sst [smem:[#allocation24_spill]] %s10630_s12 }
  0x34   :  { %11717 = sst [smem:[#allocation25_spill]] %s10635_s20 }
  0x35   :  { %11718 = sst [smem:[#allocation26_spill]] %s10640_s27 }
  0x36   :  { %11719 = sst [smem:[#allocation27_spill]] %s10645_s4 }
  0x37   :  { %s10650_s12 = sld [smem:[%s11670_s0 + %s10473_s7]]  }
  0x38   :  { %s10655_s20 = sld [smem:[%s11670_s0 + %s10474_s15]]  }
  0x39   :  { %s10660_s27 = sld [smem:[%s11670_s0 + %s10475_s22]]  }
  0x3a   :  { %s10665_s4 = sld [smem:[%s11670_s0 + %s10476_s28]]  }
  0x3d   :  { %11720 = sst [smem:[#allocation28_spill]] %s10650_s12 }
  0x3e   :  { %11721 = sst [smem:[#allocation29_spill]] %s10655_s20 }
  0x3f   :  { %11722 = sst [smem:[#allocation30_spill]] %s10660_s27 }
  0x40   :  { %73 = vsyncpa [#allocation3], 0 }
  0x41   :  { %74 = vsyncpa [#allocation5], 0  ;;  %v145_v0 = vld [vmem:[%s10520_s21] sm:$0xff]  ;;  %v146_v1 = vld [vmem:[%s10520_s21 + $0x8] sm:$0xff]  ;;  %vm161_vm0 = vcmask 261120  }
  0x42   :  { %v140_v2 = vld [vmem:[%s10510_s13] sm:$0xff]  ;;  %v9962_v3 = vpack.c.bf16 %v146_v1, %v145_v0  ;;  %v141_v4 = vld [vmem:[%s10510_s13 + $0x8] sm:$0xff]  ;;  %v147_v5 = vld [vmem:[%s10520_s21 + $0x10] sm:$0xff] }
  0x43   :  { %v148_v6 = vld [vmem:[%s10520_s21 + $0x18] sm:$0xff]  ;;  %v9954_v7 = vpack.c.bf16 %v141_v4, %v140_v2  ;;  %v142_v9 = vld [vmem:[%s10510_s13 + $0x10] sm:$0xff]  ;;  %v10676_v11 = vld [vmem:[%s10505_s9] sm:$0xff] }
  0x44   :  { %v9966_v8 = vpack.c.bf16 %v148_v6, %v147_v5  ;;  %v143_v10 = vld [vmem:[%s10510_s13 + $0x18] sm:$0xff]  ;;  %9963 = vmatprep.subr.bf16.mxu1 %v9962_v3  ;;  %9365 = vmatprep.mubr.msk.f32.mxu1 %vm161_vm0, %v10676_v11  ;;  %v10681_v13 = vld [vmem:[%s10500_s5] sm:$0xff] }
  0x45   :  { %v9958_v12 = vpack.c.bf16 %v143_v10, %v142_v9  ;;  %9965 = vmatpush3.bf16.msra.mxu1 %v9962_v3  ;;  %9955 = vmatprep.subr.bf16.mxu0 %v9954_v7 }
  0x46   :  { %75 = vsyncpa [#allocation8], 0  ;;  %9957 = vmatpush3.bf16.msra.mxu0 %v9954_v7  ;;  %9967 = vmatprep.subr.bf16.mxu1 %v9966_v8  ;;  %v10686_v14 = vld [vmem:[%s10505_s9 + $0x8] sm:$0xff]  ;;  %v10477_v16 = vmov 0.0   ;;  %vm10478_vm1 = vmmov 0   ;;  %vm330_vm2 = vcmask 64512  }
  0x47   :  { %9959 = vmatprep.subr.bf16.mxu0 %v9958_v12  ;;  %9354 = vmatprep.mubr.msk.f32.mxu0 %vm161_vm0, %v10681_v13  ;;  %v10689_v15 = vld [vmem:[%s10500_s5 + $0x8] sm:$0xff]  ;;  %v8799_v17 = vld [vmem:[%s10525_s25] ss:$0 sm:$0xff]  ;;  %s11697_s0 = smov 96   ;;  %s11699_s7 = smov 120   ;;  %vm3986_vm3 = vcmask 523264  }
  0x48   :  { %v8796_v19 = vld [vmem:[%s10515_s17] ss:$0 sm:$0xff]  ;;  %s11693_s10 = smov 88   ;;  %s11695_s11 = smov 112  }
  0x49   :  { %9969 = vmatpush3.bf16.msra.mxu1 %v9966_v8  ;;  %s11691_s15 = smov 80   ;;  %s11689_s16 = smov 104  }
  0x4a   :  { %9961 = vmatpush3.bf16.msra.mxu0 %v9958_v12  ;;  %9383 = vmatprep.subr.mxu1 %v10477_v16  ;;  %s11687_s18 = smov 72   ;;  %s11725_s22 = sld [smem:[#allocation13_spill]] }
  0x4b   :  { %9368 = vmatprep.subr.mxu0 %v10477_v16  ;;  %s11726_s23 = sld [smem:[#allocation22_spill]]  ;;  %s11727_s26 = sld [smem:[#allocation16_spill]] }
  0x4c   :  { %9366 = vmatmul.mubr.msk.f32.vlgmr.msra.gmra.mrb[0].mxu1 %vm161_vm0, %v10686_v14  ;;  %s11728_s28 = sld [smem:[#allocation24_spill]]  ;;  %s11729_s1 = sld [smem:[#allocation20_spill]] }
  0x4d   :  { %9355 = vmatmul.mubr.msk.f32.vlgmr.msra.gmra.mrb[0].mxu0 %vm161_vm0, %v10689_v15  ;;  %9385 = vmatprep.mubr.msk.f32.mxu1 %vm10478_vm1, %v10477_v16  ;;  %s11730_s2 = sld [smem:[#allocation21_spill]]  ;;  %s11742_s12 = smov 88  }
  0x4e   :  { %9370 = vmatprep.mubr.msk.f32.mxu0 %vm10478_vm1, %v10477_v16  ;;  %s11743_s27 = smov 80   ;;  %s11744_s20 = smov 104  }
 0x11f   :  { %v9367_v18 = vpop.f32.mrb[0].mxu1 }
 0x120   :  { %v10703_v20 = vadd.f32 %v9367_v18, %v8799_v17  ;;  %v321_v21 = vpop.f32.mrb[1].mxu1  ;;  %v9356_v22 = vpop.f32.mrb[0].mxu0 }
 0x121   :  { %v10705_v23 = vadd.f32 %v8799_v17, %v321_v21  ;;  %v234_v24 = vpop.f32.mrb[1].mxu0  ;;  %v10722_v26 = vadd.f32 %v9356_v22, %v8796_v19 }
 0x122   :  { %583 = vrot.lane.b32.xlu1 %v10703_v20, %s11697_s0  ;;  %v10709_v25 = vadd.f32 %v8796_v19, %v234_v24 }
 0x123   :  { %9369 = vmatpush3.xpose.msk.msra.mxu0 %vm330_vm2, %v10705_v23 }
 0x124   :  { %9373 = vmatprep.subr.mxu0 %v10477_v16 }
 0x126   :  { %739 = vrot.lane.b32.xlu1 %v10703_v20, %s11699_s7  ;;  %9371 = vmatmul.mubr.msk.f32.vlgmr.msra.gmra.mrb[2].mxu0 %vm330_vm2, %v10709_v25 }
 0x127   :  { %9374 = vmatpush3.xpose.msk.msra.mxu0 %vm330_vm2, %v10703_v20  ;;  %9375 = vmatprep.mubr.msk.f32.mxu0 %vm10478_vm1, %v10477_v16 }
 0x128   :  { %9378 = vmatprep.subr.mxu0 %v10477_v16 }
 0x12a   :  { %9376 = vmatmul.mubr.msk.f32.vlgmr.msra.gmra.mrb[4].mxu0 %vm330_vm2, %v10722_v26 }
 0x12b   :  { %9380 = vmatprep.mubr.msk.f32.mxu0 %vm10478_vm1, %v10477_v16 }
 0x194   :  { %v584_v27 = vpop.permute.xlu1 %583 }
 0x195   :  { %9384 = vmatpush3.msra.mxu1 %v584_v27 }
 0x196   :  { %9393 = vmatprep.subr.mxu1 %v10477_v16 }
 0x198   :  { %v740_v36 = vpop.permute.xlu1 %739 }
 0x1f9   :  { %v403_v28 = vpop.f32.mrb[2].mxu0 }
 0x1fa   :  { %v483_v29 = vmul.f32 0.35355338, %v403_v28  ;;  %v9372_v30 = vpop.f32.mrb[3].mxu0 }
 0x1fc   :  { %v485_v31 = vsel %vm330_vm2, %v483_v29, -inf }
 0x1fd   :  { %486 = vmax.xlane.f32.xlu1 %v485_v31  ;;  %v479_v32 = vpop.f32.mrb[4].mxu0 }
 0x1fe   :  { %v484_v33 = vmul.f32 0.35355338, %v479_v32  ;;  %v9377_v34 = vpop.f32.mrb[5].mxu0 }
 0x200   :  { %v488_v35 = vsel %vm330_vm2, %v484_v33, -inf }
 0x201   :  { %489 = vmax.xlane.f32.xlu0 %v488_v35  ;;  %v151_v35 = vld [vmem:[%s10530_s29 + $0x8] sm:$0xff] }
 0x20e   :  { %507 = vrot.lane.b32.xlu1 %v10705_v23, %s11697_s0 }
 0x212   :  { %659 = vrot.lane.b32.xlu1 %v10709_v25, %s11699_s7 }
 0x28a   :  { %v487_v37 = vpop.xlane.xlu1 %486 }
 0x28b   :  { %v491_v44 = vsub.f32 %v483_v29, %v487_v37 }
 0x28d   :  { %v493_v45 = vmul.f32 1.442695, %v491_v44 }
 0x28e   :  { %v508_v38 = vpop.permute.xlu1 %507  ;;  %v490_v39 = vpop.xlane.xlu0 %489 }
 0x28f   :  { %v492_v40 = vsub.f32 %v484_v33, %v490_v39  ;;  %9379 = vmatpush3.msra.mxu0 %v508_v38 }
 0x290   :  { %9388 = vmatprep.subr.mxu0 %v10477_v16 }
 0x291   :  { %v495_v41 = vmul.f32 1.442695, %v492_v40 }
 0x292   :  { %v660_v56 = vpop.permute.xlu1 %659 }
 0x293   :  { %10186 = vpow2.f32 %v495_v41 }
 0x294   :  { %10188 = vpow2.f32 %v493_v45 }
 0x29d   :  { %v10187_v42 = vpop.eup %10186 }
 0x29e   :  { %v500_v43 = vsel %vm330_vm2, %v10187_v42, 0.0  ;;  %v10189_v46 = vpop.eup %10188 }
 0x29f   :  { %501 = vadd.xlane.f32.xlu0 %v500_v43  ;;  %v497_v47 = vsel %vm330_vm2, %v10189_v46, 0.0 }
 0x2b5   :  { %737 = vrot.lane.b32.xlu0 %v10722_v26, %s11699_s7 }
 0x2d4   :  { %498 = vadd.xlane.f32.xlu0 %v497_v47 }
 0x2ea   :  { %661 = vrot.lane.b32.xlu0 %v10705_v23, %s11699_s7 }
 0x32c   :  { %v502_v48 = vpop.xlane.xlu0 %501 }
 0x32d   :  { %10190 = vrcp.f32 %v502_v48 }
 0x330   :  { %v738_v51 = vpop.permute.xlu0 %737 }
 0x337   :  { %v10191_v49 = vpop.eup %10190 }
 0x338   :  { %v506_v50 = vmul.f32 %v10191_v49, %v10187_v42 }
 0x33a   :  { %9386 = vmatmul.mubr.msk.f32.vlgmr.msra.gmra.mrb[2].mxu1 %vm330_vm2, %v506_v50 }
 0x33b   :  { %9394 = vmatpush3.xpose.msk.msra.mxu1 %vm330_vm2, %v740_v36  ;;  %9395 = vmatprep.mubr.msk.f32.mxu1 %vm10478_vm1, %v10477_v16  ;;  %v150_v36 = vld [vmem:[%s10530_s29] sm:$0xff] }
 0x33c   :  { %9403 = vmatprep.subr.mxu1 %v10477_v16 }
 0x33e   :  { %9396 = vmatmul.mubr.msk.f32.vlgmr.msra.gmra.mrb[4].mxu1 %vm330_vm2, %v738_v51 }
 0x33f   :  { %9405 = vmatprep.mubr.msk.f32.mxu1 %vm10478_vm1, %v10477_v16 }
 0x361   :  { %v499_v52 = vpop.xlane.xlu0 %498 }
 0x362   :  { %10192 = vrcp.f32 %v499_v52 }
 0x365   :  { %v662_v55 = vpop.permute.xlu0 %661 }
 0x36c   :  { %v10193_v53 = vpop.eup %10192 }
 0x36d   :  { %v505_v54 = vmul.f32 %v10193_v53, %v10189_v46 }
 0x36f   :  { %9381 = vmatmul.mubr.msk.f32.vlgmr.msra.gmra.mrb[6].mxu0 %vm330_vm2, %v505_v54 }
 0x370   :  { %9389 = vmatpush3.xpose.msk.msra.mxu0 %vm330_vm2, %v662_v55  ;;  %9390 = vmatprep.mubr.msk.f32.mxu0 %vm10478_vm1, %v10477_v16 }
 0x371   :  { %9398 = vmatprep.subr.mxu0 %v10477_v16 }
 0x373   :  { %9391 = vmatmul.mubr.msk.f32.vlgmr.msra.gmra.mrb[8].mxu0 %vm330_vm2, %v660_v56 }
 0x374   :  { %9400 = vmatprep.mubr.msk.f32.mxu0 %vm10478_vm1, %v10477_v16 }
 0x40d   :  { %v10759_v57 = vpop.f32.mrb[2].mxu1 }
 0x40e   :  { %v9387_v58 = vpop.f32.mrb[3].mxu1 }
 0x411   :  { %v811_v59 = vpop.f32.mrb[4].mxu1 }
 0x412   :  { %v816_v60 = vmul.f32 0.35355338, %v811_v59  ;;  %v9397_v61 = vpop.f32.mrb[5].mxu1 }
 0x413   :  { %v152_v61 = vld [vmem:[%s10530_s29 + $0x10] sm:$0xff] }
 0x414   :  { %v820_v62 = vsel %vm330_vm2, %v816_v60, -inf }
 0x415   :  { %821 = vmax.xlane.f32.xlu1 %v820_v62 }
 0x426   :  { %915 = vrot.lane.b32.xlu1 %v10703_v20, %s11693_s10 }
 0x42a   :  { %1153 = vrot.lane.b32.xlu1 %v10709_v25, %s11695_s11 }
 0x42e   :  { %1233 = vrot.lane.b32.xlu1 %v10703_v20, %s11695_s11 }
 0x432   :  { %1231 = vrot.lane.b32.xlu1 %v10722_v26, %s11695_s11 }
 0x442   :  { %v10770_v63 = vpop.f32.mrb[6].mxu0 }
 0x443   :  { %v9382_v0 = vpop.f32.mrb[7].mxu0 }
 0x446   :  { %v733_v1 = vpop.f32.mrb[8].mxu0 }
 0x447   :  { %v9392_v2 = vpop.f32.mrb[9].mxu0  ;;  %v815_v3 = vmul.f32 0.35355338, %v733_v1 }
 0x449   :  { %v817_v4 = vsel %vm330_vm2, %v815_v3, -inf }
 0x456   :  { %818 = vmax.xlane.f32.xlu1 %v817_v4 }
 0x467   :  { %839 = vrot.lane.b32.xlu1 %v10705_v23, %s11693_s10 }
 0x46b   :  { %1409 = vrot.lane.b32.xlu1 %v10703_v20, %s11691_s15 }
 0x46f   :  { %1570 = vrot.lane.b32.xlu1 %v10705_v23, %s11689_s16 }
 0x473   :  { %1648 = vrot.lane.b32.xlu1 %v10703_v20, %s11689_s16 }
 0x477   :  { %1568 = vrot.lane.b32.xlu1 %v10709_v25, %s11689_s16 }
 0x47b   :  { %1646 = vrot.lane.b32.xlu1 %v10722_v26, %s11689_s16 }
 0x4a2   :  { %v822_v5 = vpop.xlane.xlu1 %821 }
 0x4a3   :  { %v824_v6 = vsub.f32 %v816_v60, %v822_v5 }
 0x4a5   :  { %v827_v7 = vmul.f32 1.442695, %v824_v6 }
 0x4a6   :  { %v916_v8 = vpop.permute.xlu1 %915 }
 0x4a7   :  { %10194 = vpow2.f32 %v827_v7  ;;  %9404 = vmatpush3.msra.mxu1 %v916_v8 }
 0x4a8   :  { %9418 = vmatprep.subr.mxu1 %v10477_v16 }
 0x4aa   :  { %v1154_v12 = vpop.permute.xlu1 %1153 }
 0x4ae   :  { %v1234_v17 = vpop.permute.xlu1 %1233 }
 0x4b1   :  { %v10195_v9 = vpop.eup %10194 }
 0x4b2   :  { %v832_v10 = vsel %vm330_vm2, %v10195_v9, 0.0  ;;  %v1232_v18 = vpop.permute.xlu1 %1231 }
 0x4b3   :  { %833 = vadd.xlane.f32.xlu0 %v832_v10 }
 0x4c9   :  { %1155 = vrot.lane.b32.xlu0 %v10705_v23, %s11695_s11 }
 0x4e3   :  { %v819_v19 = vpop.xlane.xlu1 %818 }
 0x4e4   :  { %v823_v21 = vsub.f32 %v815_v3, %v819_v19 }
 0x4e6   :  { %v825_v22 = vmul.f32 1.442695, %v823_v21 }
 0x4e7   :  { %v840_v24 = vpop.permute.xlu1 %839 }
 0x4e8   :  { %10196 = vpow2.f32 %v825_v22  ;;  %9399 = vmatpush3.msra.mxu0 %v840_v24 }
 0x4e9   :  { %9408 = vmatprep.subr.mxu0 %v151_v35 }
 0x4eb   :  { %v1410_v31 = vpop.permute.xlu1 %1409 }
 0x4f2   :  { %v10197_v25 = vpop.eup %10196 }
 0x4f3   :  { %v829_v26 = vsel %vm330_vm2, %v10197_v25, 0.0 }
 0x4f4   :  { %830 = vadd.xlane.f32.xlu0 %v829_v26 }
 0x540   :  { %v834_v27 = vpop.xlane.xlu0 %833 }
 0x541   :  { %10198 = vrcp.f32 %v834_v27 }
 0x544   :  { %v1156_v30 = vpop.permute.xlu0 %1155 }
 0x54b   :  { %v10199_v28 = vpop.eup %10198 }
 0x54c   :  { %v838_v29 = vmul.f32 %v10199_v28, %v10195_v9 }
 0x54e   :  { %9406 = vmatmul.mubr.msk.f32.vlgmr.msra.gmra.mrb[6].mxu1 %vm330_vm2, %v838_v29 }
 0x54f   :  { %9419 = vmatpush3.xpose.msk.msra.mxu1 %vm330_vm2, %v1156_v30  ;;  %9420 = vmatprep.mubr.msk.f32.mxu1 %vm10478_vm1, %v10477_v16 }
 0x550   :  { %9423 = vmatprep.subr.mxu1 %v10477_v16 }
 0x552   :  { %9421 = vmatmul.mubr.msk.f32.vlgmr.msra.gmra.mrb[8].mxu1 %vm330_vm2, %v1154_v12 }
 0x553   :  { %9424 = vmatpush3.xpose.msk.msra.mxu1 %vm330_vm2, %v1234_v17  ;;  %9425 = vmatprep.mubr.msk.f32.mxu1 %vm10478_vm1, %v10477_v16 }
 0x554   :  { %9433 = vmatprep.subr.mxu1 %v10477_v16 }
 0x556   :  { %9426 = vmatmul.mubr.msk.f32.vlgmr.msra.gmra.mrb[10].mxu1 %vm330_vm2, %v1232_v18 }
 0x557   :  { %9434 = vmatpush3.msra.mxu1 %v1410_v31  ;;  %9435 = vmatprep.mubr.msk.f32.mxu1 %vm10478_vm1, %v10477_v16 }
 0x558   :  { %9443 = vmatprep.subr.mxu1 %v10477_v16 }
 0x581   :  { %v831_v32 = vpop.xlane.xlu0 %830 }
 0x582   :  { %10200 = vrcp.f32 %v831_v32 }
 0x58c   :  { %v10201_v33 = vpop.eup %10200 }
 0x58d   :  { %v837_v34 = vmul.f32 %v10201_v33, %v10197_v25 }
 0x58f   :  { %9401 = vmatmul.mubr.msk.f32.vlgmr.msra.gmra.mrb[10].mxu0 %vm330_vm2, %v837_v34 }
 0x590   :  { %9409 = vmatpush3.msra.mxu0 %v151_v35 }
 0x591   :  { %9413 = vmatprep.subr.mxu0 %v150_v36 }
 0x621   :  { %v987_v37 = vpop.f32.mrb[6].mxu1 }
 0x622   :  { %v9407_v38 = vpop.f32.mrb[7].mxu1 }
 0x625   :  { %v1227_v39 = vpop.f32.mrb[8].mxu1 }
 0x626   :  { %v1309_v40 = vmul.f32 0.35355338, %v1227_v39  ;;  %v9422_v41 = vpop.f32.mrb[9].mxu1 }
 0x628   :  { %v1311_v42 = vsel %vm330_vm2, %v1309_v40, -inf }
 0x629   :  { %v1305_v43 = vpop.f32.mrb[10].mxu1  ;;  %1312 = vmax.xlane.f32.xlu0 %v1311_v42 }
 0x62a   :  { %v1310_v44 = vmul.f32 0.35355338, %v1305_v43  ;;  %v9427_v45 = vpop.f32.mrb[11].mxu1 }
 0x62b   :  { %v1997_v45 = vld [vmem:[%s10550_s19 + $0x8] sm:$0xff] }
 0x62c   :  { %v1314_v46 = vsel %vm330_vm2, %v1310_v44, -inf }
 0x62d   :  { %1315 = vmax.xlane.f32.xlu0 %v1314_v46 }
 0x662   :  { %v911_v47 = vpop.f32.mrb[10].mxu0 }
 0x663   :  { %v9402_v48 = vpop.f32.mrb[11].mxu0  ;;  %9410 = vmatprep.mubr.msk.f32.mxu0 %vm330_vm2, %v911_v47  ;;  %v1991_v47 = vld [vmem:[%s10540_s8] sm:$0xff] }
 0x664   :  { %9411 = vmatmul.mubr.msk.f32.vlgmr.msra.gmra.mrb[12].mxu0 %vm330_vm2, %v987_v37  ;;  %v1992_v48 = vld [vmem:[%s10540_s8 + $0x8] sm:$0xff] }
 0x665   :  { %9415 = vmatprep.mubr.msk.f32.mxu0 %vm330_vm2, %v10770_v63  ;;  %9414 = vmatpush3.msra.mxu0 %v150_v36  ;;  %v1571_v63 = vpop.permute.xlu1 %1570 }
 0x666   :  { %9428 = vmatprep.subr.mxu0 %v10477_v16 }
 0x669   :  { %v1649_v3 = vpop.permute.xlu1 %1648 }
 0x66c   :  { %9416 = vmatmul.mubr.msk.f32.vlgmr.msra.gmra.mrb[12].mxu0 %vm330_vm2, %v10759_v57 }
 0x66d   :  { %9430 = vmatprep.mubr.msk.f32.mxu0 %vm10478_vm1, %v10477_v16  ;;  %v1569_v5 = vpop.permute.xlu1 %1568 }
 0x671   :  { %v1647_v10 = vpop.permute.xlu1 %1646 }
 0x6b6   :  { %v1313_v49 = vpop.xlane.xlu0 %1312 }
 0x6b7   :  { %v1317_v50 = vsub.f32 %v1309_v40, %v1313_v49  ;;  %v153_v40 = vld [vmem:[%s10530_s29 + $0x18] sm:$0xff]  ;;  %v9970_v49 = vpack.c.bf16 %v1992_v48, %v1991_v47 }
 0x6b9   :  { %v1319_v51 = vmul.f32 1.442695, %v1317_v50  ;;  %v1993_v50 = vld [vmem:[%s10540_s8 + $0x10] sm:$0xff] }
 0x6ba   :  { %v1316_v52 = vpop.xlane.xlu0 %1315 }
 0x6bb   :  { %10202 = vpow2.f32 %v1319_v51  ;;  %v1318_v53 = vsub.f32 %v1310_v44, %v1316_v52  ;;  %v1994_v51 = vld [vmem:[%s10540_s8 + $0x18] sm:$0xff] }
 0x6bc   :  { %v9974_v52 = vpack.c.bf16 %v1994_v51, %v1993_v50 }
 0x6bd   :  { %v1321_v54 = vmul.f32 1.442695, %v1318_v53  ;;  %v1998_v53 = vld [vmem:[%s10550_s19 + $0x10] sm:$0xff] }
 0x6bf   :  { %10204 = vpow2.f32 %v1321_v54  ;;  %v1999_v54 = vld [vmem:[%s10550_s19 + $0x18] sm:$0xff] }
 0x6c5   :  { %v10203_v55 = vpop.eup %10202 }
 0x6c6   :  { %v1323_v56 = vsel %vm330_vm2, %v10203_v55, 0.0 }
 0x6c7   :  { %1324 = vadd.xlane.f32.xlu0 %v1323_v56 }
 0x6c9   :  { %v10205_v58 = vpop.eup %10204 }
 0x6ca   :  { %v1326_v59 = vsel %vm330_vm2, %v10205_v58, 0.0 }
 0x6cb   :  { %1327 = vadd.xlane.f32.xlu0 %v1326_v59 }
 0x6e1   :  { %1333 = vrot.lane.b32.xlu0 %v10705_v23, %s11691_s15 }
 0x754   :  { %v1325_v57 = vpop.xlane.xlu0 %1324 }
 0x755   :  { %10206 = vrcp.f32 %v1325_v57  ;;  %v10878_v57 = vld [vmem:[%s10535_s3] ss:$0 sm:$0xff] }
 0x758   :  { %v1328_v60 = vpop.xlane.xlu0 %1327 }
 0x759   :  { %10208 = vrcp.f32 %v1328_v60 }
 0x75c   :  { %v1334_v62 = vpop.permute.xlu0 %1333 }
 0x75d   :  { %9429 = vmatpush3.msra.mxu0 %v1334_v62 }
 0x75e   :  { %9438 = vmatprep.subr.mxu0 %v152_v61 }
 0x75f   :  { %v10207_v0 = vpop.eup %10206 }
 0x760   :  { %v1331_v1 = vmul.f32 %v10207_v0, %v10203_v55  ;;  %v9982_v55 = vpack.c.bf16 %v1999_v54, %v1998_v53  ;;  %v8835_v0 = vld [vmem:[%s10545_s14] ss:$0 sm:$0xff] }
 0x762   :  { %9431 = vmatmul.mubr.msk.f32.vlgmr.msra.gmra.mrb[14].mxu0 %vm330_vm2, %v1331_v1 }
 0x763   :  { %v10209_v2 = vpop.eup %10208  ;;  %9439 = vmatpush3.msra.mxu0 %v152_v61 }
 0x764   :  { %v1332_v4 = vmul.f32 %v10209_v2, %v10205_v58  ;;  %9448 = vmatprep.subr.mxu0 %v10477_v16 }
 0x766   :  { %9436 = vmatmul.mubr.msk.f32.vlgmr.msra.gmra.mrb[12].mxu1 %vm330_vm2, %v1332_v4 }
 0x767   :  { %9444 = vmatpush3.xpose.msk.msra.mxu1 %vm330_vm2, %v1571_v63  ;;  %9445 = vmatprep.mubr.msk.f32.mxu1 %vm10478_vm1, %v10477_v16 }
 0x768   :  { %9453 = vmatprep.subr.mxu1 %v10477_v16 }
 0x76a   :  { %9446 = vmatmul.mubr.msk.f32.vlgmr.msra.gmra.mrb[14].mxu1 %vm330_vm2, %v1569_v5 }
 0x76b   :  { %9455 = vmatprep.mubr.msk.f32.mxu1 %vm10478_vm1, %v10477_v16 }
 0x835   :  { %v1405_v6 = vpop.f32.mrb[14].mxu0 }
 0x836   :  { %v9432_v7 = vpop.f32.mrb[15].mxu0  ;;  %9440 = vmatprep.mubr.msk.f32.mxu0 %vm330_vm2, %v1405_v6 }
 0x839   :  { %v1481_v8 = vpop.f32.mrb[12].mxu1 }
 0x83a   :  { %v9437_v9 = vpop.f32.mrb[13].mxu1  ;;  %9441 = vmatmul.mubr.msk.f32.vlgmr.msra.gmra.mrb[12].mxu0 %vm330_vm2, %v1481_v8 }
 0x83b   :  { %9449 = vmatpush3.xpose.msk.msra.mxu0 %vm330_vm2, %v1649_v3  ;;  %9450 = vmatprep.mubr.msk.f32.mxu0 %vm10478_vm1, %v10477_v16 }
 0x83c   :  { %9458 = vmatprep.subr.mxu0 %v10477_v16 }
 0x83d   :  { %v1642_v12 = vpop.f32.mrb[14].mxu1 }
 0x83e   :  { %v1724_v17 = vmul.f32 0.35355338, %v1642_v12  ;;  %v9447_v18 = vpop.f32.mrb[15].mxu1  ;;  %9451 = vmatmul.mubr.msk.f32.vlgmr.msra.gmra.mrb[16].mxu0 %vm330_vm2, %v1647_v10 }
 0x83f   :  { %9460 = vmatprep.mubr.msk.f32.mxu0 %vm10478_vm1, %v10477_v16 }
 0x840   :  { %v1726_v19 = vsel %vm330_vm2, %v1724_v17, -inf }
 0x841   :  { %1727 = vmax.xlane.f32.xlu1 %v1726_v19 }
 0x8ce   :  { %v1728_v21 = vpop.xlane.xlu1 %1727 }
 0x8cf   :  { %v1732_v22 = vsub.f32 %v1724_v17, %v1728_v21 }
 0x8d1   :  { %v1734_v24 = vmul.f32 1.442695, %v1732_v22 }
 0x8d3   :  { %10210 = vpow2.f32 %v1734_v24 }
 0x8dd   :  { %v10211_v29 = vpop.eup %10210 }
 0x8de   :  { %v1738_v30 = vsel %vm330_vm2, %v10211_v29, 0.0 }
 0x911   :  { %v1720_v25 = vpop.f32.mrb[16].mxu0 }
 0x912   :  { %v1725_v26 = vmul.f32 0.35355338, %v1720_v25  ;;  %v9452_v27 = vpop.f32.mrb[17].mxu0 }
 0x914   :  { %v1729_v28 = vsel %vm330_vm2, %v1725_v26, -inf }
 0x915   :  { %1730 = vmax.xlane.f32.xlu0 %v1729_v28 }
 0x919   :  { %1739 = vadd.xlane.f32.xlu0 %v1738_v30 }
 0x92f   :  { %1748 = vrot.lane.b32.xlu0 %v10705_v23, %s11687_s18 }
 0x9a2   :  { %v1731_v31 = vpop.xlane.xlu0 %1730 }
 0x9a3   :  { %v1733_v32 = vsub.f32 %v1725_v26, %v1731_v31 }
 0x9a5   :  { %v1736_v33 = vmul.f32 1.442695, %v1733_v32 }
 0x9a6   :  { %v1740_v34 = vpop.xlane.xlu0 %1739 }
 0x9a7   :  { %10212 = vpow2.f32 %v1736_v33 }
 0x9a8   :  { %10214 = vrcp.f32 %v1740_v34 }
 0x9aa   :  { %v1749_v35 = vpop.permute.xlu0 %1748 }
 0x9ab   :  { %9454 = vmatpush3.msra.mxu1 %v1749_v35 }
 0x9ac   :  { %9971 = vmatprep.subr.bf16.mxu1 %v9970_v49 }
 0x9b1   :  { %v10213_v36 = vpop.eup %10212 }
 0x9b2   :  { %v10215_v37 = vpop.eup %10214  ;;  %v1741_v38 = vsel %vm330_vm2, %v10213_v36, 0.0 }
 0x9b3   :  { %1742 = vadd.xlane.f32.xlu1 %v1741_v38  ;;  %v1746_v39 = vmul.f32 %v10215_v37, %v10211_v29 }
 0x9b5   :  { %9456 = vmatmul.mubr.msk.f32.vlgmr.msra.gmra.mrb[16].mxu1 %vm330_vm2, %v1746_v39 }
 0x9b6   :  { %9476 = vmatprep.mubr.msk.f32.mxu1 %vm161_vm0, %v10676_v11  ;;  %9973 = vmatpush3.bf16.msra.mxu1 %v9970_v49 }
 0x9b7   :  { %9975 = vmatprep.subr.bf16.mxu1 %v9974_v52 }
 0x9ba   :  { %9977 = vmatpush3.bf16.msra.mxu1 %v9974_v52 }
 0x9bb   :  { %9490 = vmatprep.subr.mxu1 %v10477_v16 }
 0x9bd   :  { %9477 = vmatmul.mubr.msk.f32.vlgmr.msra.gmra.mrb[18].mxu1 %vm161_vm0, %v10686_v14 }
 0x9be   :  { %9492 = vmatprep.mubr.msk.f32.mxu1 %vm10478_vm1, %v10477_v16 }
 0x9c4   :  { %1824 = vrot.lane.b32.xlu1 %v10703_v20, %s11687_s18  ;;  %v1996_v20 = vld [vmem:[%s10550_s19] sm:$0xff] }
 0x9c5   :  { %v9978_v46 = vpack.c.bf16 %v1997_v45, %v1996_v20 }
 0xa40   :  { %v1743_v23 = vpop.xlane.xlu1 %1742 }
 0xa41   :  { %10216 = vrcp.f32 %v1743_v23 }
 0xa44   :  { %v1825_v41 = vpop.permute.xlu1 %1824 }
 0xa45   :  { %9459 = vmatpush3.msra.mxu0 %v1825_v41 }
 0xa46   :  { %9463 = vmatprep.subr.mxu0 %v153_v40 }
 0xa4b   :  { %v10217_v42 = vpop.eup %10216 }
 0xa4c   :  { %v1747_v43 = vmul.f32 %v10217_v42, %v10213_v36 }
 0xa4e   :  { %9461 = vmatmul.mubr.msk.f32.vlgmr.msra.gmra.mrb[18].mxu0 %vm330_vm2, %v1747_v43 }
 0xa4f   :  { %9464 = vmatpush3.msra.mxu0 %v153_v40 }
 0xa50   :  { %9979 = vmatprep.subr.bf16.mxu0 %v9978_v46 }
 0xa88   :  { %v1820_v11 = vpop.f32.mrb[16].mxu1 }
 0xa89   :  { %v9457_v44 = vpop.f32.mrb[17].mxu1  ;;  %9465 = vmatprep.mubr.msk.f32.mxu0 %vm330_vm2, %v1820_v11 }
 0xa90   :  { %v9478_v14 = vpop.f32.mrb[18].mxu1 }
 0xa91   :  { %v2078_v59 = vpop.f32.mrb[19].mxu1  ;;  %v10902_v4 = vadd.f32 %v9478_v14, %v8835_v0 }
 0xb21   :  { %v1896_v56 = vpop.f32.mrb[18].mxu0 }
 0xb22   :  { %v9462_v58 = vpop.f32.mrb[19].mxu0  ;;  %9466 = vmatmul.mubr.msk.f32.vlgmr.msra.gmra.mrb[12].mxu0 %vm330_vm2, %v1896_v56 }
 0xb23   :  { %9981 = vmatpush3.bf16.msra.mxu0 %v9978_v46  ;;  %9487 = vmatprep.mubr.msk.f32.mxu0 %vm161_vm0, %v10681_v13  ;;  %v8838_v13 = vld [vmem:[%s10555_s24] ss:$0 sm:$0xff] }
 0xb24   :  { %9983 = vmatprep.subr.bf16.mxu0 %v9982_v55 }
 0xb27   :  { %9985 = vmatpush3.bf16.msra.mxu0 %v9982_v55 }
 0xb28   :  { %9500 = vmatprep.subr.mxu0 %v10477_v16 }
 0xb2a   :  { %9488 = vmatmul.mubr.msk.f32.vlgmr.msra.gmra.mrb[20].mxu0 %vm161_vm0, %v10689_v15  ;;  %v10889_v15 = vadd.f32 %v8835_v0, %v2078_v59 }
 0xb2b   :  { %9502 = vmatprep.mubr.msk.f32.mxu0 %vm10478_vm1, %v10477_v16 }
 0xbf5   :  { %v10880_v60 = vpop.f32.mrb[12].mxu0 }
 0xbf6   :  { %v1972_v61 = vpop.f32.mrb[13].mxu0 }
 0xbf7   :  { %v10883_v62 = vadd.f32 %v10878_v57, %v1972_v61 }
 0xbfd   :  { %v9489_v63 = vpop.f32.mrb[20].mxu0 }
 0xbfe   :  { %v2159_v1 = vpop.f32.mrb[21].mxu0  ;;  %v10894_v3 = vadd.f32 %v9489_v63, %v8838_v13 }
 0xbff   :  { %v10887_v2 = vadd.f32 %v8838_v13, %v2159_v1 }
 0xc01   :  { %9491 = vmatpush3.xpose.msk.msra.mxu1 %vm330_vm2, %v10887_v2 }
 0xc02   :  { %9495 = vmatprep.subr.mxu1 %v10477_v16 }
 0xc04   :  { %9493 = vmatmul.mubr.msk.f32.vlgmr.msra.gmra.mrb[20].mxu1 %vm330_vm2, %v10889_v15 }
 0xc05   :  { %9496 = vmatpush3.xpose.msk.msra.mxu1 %vm330_vm2, %v10894_v3  ;;  %9497 = vmatprep.mubr.msk.f32.mxu1 %vm10478_vm1, %v10477_v16 }
 0xc06   :  { %9505 = vmatprep.subr.mxu1 %v10477_v16 }
 0xc08   :  { %9498 = vmatmul.mubr.msk.f32.vlgmr.msra.gmra.mrb[22].mxu1 %vm330_vm2, %v10902_v4 }
 0xc09   :  { %9507 = vmatprep.mubr.msk.f32.mxu1 %vm10478_vm1, %v10477_v16 }
 0xcd7   :  { %v2240_v5 = vpop.f32.mrb[20].mxu1 }
 0xcd8   :  { %v9494_v6 = vpop.f32.mrb[21].mxu1  ;;  %v2320_v22 = vmul.f32 0.35355338, %v2240_v5 }
 0xcda   :  { %v2322_v24 = vsel %vm330_vm2, %v2320_v22, -inf }
 0xcdb   :  { %v2316_v7 = vpop.f32.mrb[22].mxu1 }
 0xcdc   :  { %v2321_v8 = vmul.f32 0.35355338, %v2316_v7  ;;  %v9499_v9 = vpop.f32.mrb[23].mxu1 }
 0xcde   :  { %v2325_v10 = vsel %vm330_vm2, %v2321_v8, -inf }
 0xcdf   :  { %2326 = vmax.xlane.f32.xlu1 %v2325_v10 }
 0xcf0   :  { %2576 = vrot.lane.b32.xlu1 %v10894_v3, %s11699_s7 }
 0xcf4   :  { %2574 = vrot.lane.b32.xlu1 %v10902_v4, %s11699_s7 }
 0xd6c   :  { %v2327_v12 = vpop.xlane.xlu1 %2326 }
 0xd6d   :  { %v2329_v17 = vsub.f32 %v2321_v8, %v2327_v12 }
 0xd6f   :  { %v2332_v18 = vmul.f32 1.442695, %v2329_v17 }
 0xd70   :  { %v2577_v28 = vpop.permute.xlu1 %2576 }
 0xd71   :  { %10218 = vpow2.f32 %v2332_v18 }
 0xd74   :  { %v2575_v30 = vpop.permute.xlu1 %2574 }
 0xd7b   :  { %v10219_v19 = vpop.eup %10218 }
 0xd7c   :  { %v2337_v21 = vsel %vm330_vm2, %v10219_v19, 0.0 }
 0xd7d   :  { %2338 = vadd.xlane.f32.xlu0 %v2337_v21 }
 0xd93   :  { %2420 = vrot.lane.b32.xlu0 %v10894_v3, %s11697_s0 }
 0xdb2   :  { %2323 = vmax.xlane.f32.xlu0 %v2322_v24 }
 0xdc8   :  { %2344 = vrot.lane.b32.xlu0 %v10887_v2, %s11697_s0  ;;  %s11736_s0 = sld [smem:[#allocation19_spill]] }
 0xdcc   :  { %2496 = vrot.lane.b32.xlu0 %v10889_v15, %s11699_s7 }
 0xe0a   :  { %v2339_v25 = vpop.xlane.xlu0 %2338 }
 0xe0b   :  { %10220 = vrcp.f32 %v2339_v25 }
 0xe0e   :  { %v2421_v26 = vpop.permute.xlu0 %2420 }
 0xe0f   :  { %9506 = vmatpush3.msra.mxu1 %v2421_v26 }
 0xe10   :  { %9515 = vmatprep.subr.mxu1 %v10477_v16 }
 0xe15   :  { %v10221_v27 = vpop.eup %10220 }
 0xe16   :  { %v2343_v29 = vmul.f32 %v10221_v27, %v10219_v19 }
 0xe18   :  { %9508 = vmatmul.mubr.msk.f32.vlgmr.msra.gmra.mrb[24].mxu1 %vm330_vm2, %v2343_v29  ;;  %v2001_v29 = vld [vmem:[%s10560_s30] sm:$0xff] }
 0xe19   :  { %9516 = vmatpush3.xpose.msk.msra.mxu1 %vm330_vm2, %v2577_v28  ;;  %9517 = vmatprep.mubr.msk.f32.mxu1 %vm10478_vm1, %v10477_v16  ;;  %v2002_v28 = vld [vmem:[%s10560_s30 + $0x8] sm:$0xff] }
 0xe1a   :  { %9525 = vmatprep.subr.mxu1 %v10477_v16 }
 0xe1c   :  { %9518 = vmatmul.mubr.msk.f32.vlgmr.msra.gmra.mrb[26].mxu1 %vm330_vm2, %v2575_v30 }
 0xe1d   :  { %9527 = vmatprep.mubr.msk.f32.mxu1 %vm10478_vm1, %v10477_v16 }
 0xe3f   :  { %v2324_v31 = vpop.xlane.xlu0 %2323 }
 0xe40   :  { %v2328_v32 = vsub.f32 %v2320_v22, %v2324_v31 }
 0xe42   :  { %v2330_v33 = vmul.f32 1.442695, %v2328_v32 }
 0xe43   :  { %v2345_v34 = vpop.permute.xlu0 %2344 }
 0xe44   :  { %10222 = vpow2.f32 %v2330_v33  ;;  %9501 = vmatpush3.msra.mxu0 %v2345_v34 }
 0xe45   :  { %9510 = vmatprep.subr.mxu0 %v10477_v16 }
 0xe47   :  { %v2497_v42 = vpop.permute.xlu0 %2496 }
 0xe4e   :  { %v10223_v35 = vpop.eup %10222 }
 0xe4f   :  { %v2334_v36 = vsel %vm330_vm2, %v10223_v35, 0.0 }
 0xe50   :  { %2335 = vadd.xlane.f32.xlu1 %v2334_v36 }
 0xe61   :  { %2498 = vrot.lane.b32.xlu1 %v10887_v2, %s11699_s7  ;;  %s11738_s7 = sld [smem:[#allocation27_spill]] }
 0xedd   :  { %v2336_v37 = vpop.xlane.xlu1 %2335 }
 0xede   :  { %10224 = vrcp.f32 %v2336_v37 }
 0xee1   :  { %v2499_v23 = vpop.permute.xlu1 %2498 }
 0xee8   :  { %v10225_v38 = vpop.eup %10224 }
 0xee9   :  { %v2342_v39 = vmul.f32 %v10225_v38, %v10223_v35 }
 0xeeb   :  { %9503 = vmatmul.mubr.msk.f32.vlgmr.msra.gmra.mrb[22].mxu0 %vm330_vm2, %v2342_v39  ;;  %v10936_v40 = vpop.f32.mrb[24].mxu1 }
 0xeec   :  { %9511 = vmatpush3.xpose.msk.msra.mxu0 %vm330_vm2, %v2499_v23  ;;  %v9509_v41 = vpop.f32.mrb[25].mxu1  ;;  %9512 = vmatprep.mubr.msk.f32.mxu0 %vm10478_vm1, %v10477_v16 }
 0xeed   :  { %9520 = vmatprep.subr.mxu0 %v10477_v16 }
 0xeef   :  { %9513 = vmatmul.mubr.msk.f32.vlgmr.msra.gmra.mrb[24].mxu0 %vm330_vm2, %v2497_v42  ;;  %v2648_v43 = vpop.f32.mrb[26].mxu1  ;;  %v2003_v42 = vld [vmem:[%s10560_s30 + $0x10] sm:$0xff] }
 0xef0   :  { %v2653_v11 = vmul.f32 0.35355338, %v2648_v43  ;;  %v9519_v44 = vpop.f32.mrb[27].mxu1  ;;  %9522 = vmatprep.mubr.msk.f32.mxu0 %vm10478_vm1, %v10477_v16 }
 0xef2   :  { %v2657_v20 = vsel %vm330_vm2, %v2653_v11, -inf }
 0xef3   :  { %2658 = vmax.xlane.f32.xlu1 %v2657_v20 }
 0xf04   :  { %2992 = vrot.lane.b32.xlu1 %v10887_v2, %s11695_s11 }
 0xf08   :  { %2990 = vrot.lane.b32.xlu1 %v10889_v15, %s11695_s11 }
 0xf0c   :  { %3068 = vrot.lane.b32.xlu1 %v10902_v4, %s11695_s11 }
 0xf80   :  { %v2659_v45 = vpop.xlane.xlu1 %2658 }
 0xf81   :  { %v2661_v46 = vsub.f32 %v2653_v11, %v2659_v45 }
 0xf83   :  { %v2664_v47 = vmul.f32 1.442695, %v2661_v46 }
 0xf84   :  { %v2993_v14 = vpop.permute.xlu1 %2992 }
 0xf85   :  { %10226 = vpow2.f32 %v2664_v47 }
 0xf88   :  { %v2991_v13 = vpop.permute.xlu1 %2990 }
 0xf8c   :  { %v3069_v0 = vpop.permute.xlu1 %3068 }
 0xf8f   :  { %v10227_v48 = vpop.eup %10226 }
 0xf90   :  { %v2669_v49 = vsel %vm330_vm2, %v10227_v48, 0.0 }
 0xf91   :  { %2670 = vadd.xlane.f32.xlu0 %v2669_v49 }
 0xfa7   :  { %2752 = vrot.lane.b32.xlu0 %v10894_v3, %s11693_s10 }
 0xfab   :  { %3070 = vrot.lane.b32.xlu0 %v10894_v3, %s11695_s11  ;;  %s11735_s11 = sld [smem:[#allocation18_spill]] }
 0xfbe   :  { %v10957_v50 = vpop.f32.mrb[22].mxu0 }
 0xfbf   :  { %v9504_v51 = vpop.f32.mrb[23].mxu0 }
 0xfc2   :  { %v2570_v52 = vpop.f32.mrb[24].mxu0 }
 0xfc3   :  { %v9514_v53 = vpop.f32.mrb[25].mxu0  ;;  %v2652_v54 = vmul.f32 0.35355338, %v2570_v52 }
 0xfc5   :  { %v2654_v55 = vsel %vm330_vm2, %v2652_v54, -inf }
 0xfca   :  { %2655 = vmax.xlane.f32.xlu0 %v2654_v55 }
 0xfe0   :  { %2676 = vrot.lane.b32.xlu0 %v10887_v2, %s11693_s10  ;;  %s11734_s10 = sld [smem:[#allocation25_spill]] }
 0xfe4   :  { %3170 = vrot.lane.b32.xlu0 %v10887_v2, %s11691_s15 }
 0xfe8   :  { %3407 = vrot.lane.b32.xlu0 %v10887_v2, %s11689_s16 }
 0xfec   :  { %3485 = vrot.lane.b32.xlu0 %v10894_v3, %s11689_s16 }
 0xff0   :  { %3405 = vrot.lane.b32.xlu0 %v10889_v15, %s11689_s16 }
 0xff4   :  { %3483 = vrot.lane.b32.xlu0 %v10902_v4, %s11689_s16  ;;  %s11732_s16 = sld [smem:[#allocation23_spill]] }
0x101e   :  { %v2671_v56 = vpop.xlane.xlu0 %2670 }
0x101f   :  { %10228 = vrcp.f32 %v2671_v56 }
0x1022   :  { %v2753_v58 = vpop.permute.xlu0 %2752 }
0x1023   :  { %9526 = vmatpush3.msra.mxu1 %v2753_v58 }
0x1024   :  { %9540 = vmatprep.subr.mxu1 %v10477_v16 }
0x1026   :  { %v3071_v63 = vpop.permute.xlu0 %3070 }
0x1029   :  { %v10229_v59 = vpop.eup %10228 }
0x102a   :  { %v2675_v61 = vmul.f32 %v10229_v59, %v10227_v48 }
0x102c   :  { %9528 = vmatmul.mubr.msk.f32.vlgmr.msra.gmra.mrb[28].mxu1 %vm330_vm2, %v2675_v61 }
0x102d   :  { %9541 = vmatpush3.xpose.msk.msra.mxu1 %vm330_vm2, %v2993_v14  ;;  %9542 = vmatprep.mubr.msk.f32.mxu1 %vm10478_vm1, %v10477_v16 }
0x102e   :  { %9545 = vmatprep.subr.mxu1 %v10477_v16 }
0x1030   :  { %9543 = vmatmul.mubr.msk.f32.vlgmr.msra.gmra.mrb[30].mxu1 %vm330_vm2, %v2991_v13 }
0x1031   :  { %9546 = vmatpush3.xpose.msk.msra.mxu1 %vm330_vm2, %v3071_v63  ;;  %9547 = vmatprep.mubr.msk.f32.mxu1 %vm10478_vm1, %v10477_v16 }
0x1032   :  { %9555 = vmatprep.subr.mxu1 %v10477_v16 }
0x1034   :  { %9548 = vmatmul.mubr.msk.f32.vlgmr.msra.gmra.mrb[32].mxu1 %vm330_vm2, %v3069_v0 }
0x1035   :  { %9557 = vmatprep.mubr.msk.f32.mxu1 %vm10478_vm1, %v10477_v16 }
0x1057   :  { %v2656_v1 = vpop.xlane.xlu0 %2655 }
0x1058   :  { %v2660_v15 = vsub.f32 %v2652_v54, %v2656_v1 }
0x105a   :  { %v2662_v4 = vmul.f32 1.442695, %v2660_v15 }
0x105b   :  { %v2677_v5 = vpop.permute.xlu0 %2676 }
0x105c   :  { %10230 = vpow2.f32 %v2662_v4  ;;  %9521 = vmatpush3.msra.mxu0 %v2677_v5 }
0x105d   :  { %9530 = vmatprep.subr.mxu0 %v2002_v28 }
0x105f   :  { %v3171_v43 = vpop.permute.xlu0 %3170 }
0x1063   :  { %v3408_v45 = vpop.permute.xlu0 %3407 }
0x1066   :  { %v10231_v6 = vpop.eup %10230 }
0x1067   :  { %v2666_v7 = vsel %vm330_vm2, %v10231_v6, 0.0 }
0x1068   :  { %2667 = vadd.xlane.f32.xlu1 %v2666_v7  ;;  %v1990_v7 = vadd.f32 %v10880_v60, %v10878_v57  ;;  %v10347_v60 = vld [vmem:[%s10500_s5] sm:$0xff] }
0x10f5   :  { %v2668_v8 = vpop.xlane.xlu1 %2667 }
0x10f6   :  { %10232 = vrcp.f32 %v2668_v8  ;;  %v10346_v8 = vld [vmem:[%s10500_s5 + $0x8] sm:$0xff]  ;;  %s11723_s5 = sld [smem:[#allocation14_spill]] }
0x10ff   :  { %v2824_v9 = vpop.f32.mrb[28].mxu1 }
0x1100   :  { %v10233_v10 = vpop.eup %10232  ;;  %v9529_v12 = vpop.f32.mrb[29].mxu1 }
0x1101   :  { %v2674_v17 = vmul.f32 %v10233_v10, %v10231_v6 }
0x1103   :  { %9523 = vmatmul.mubr.msk.f32.vlgmr.msra.gmra.mrb[26].mxu0 %vm330_vm2, %v2674_v17  ;;  %v3064_v18 = vpop.f32.mrb[30].mxu1 }
0x1104   :  { %v3146_v19 = vmul.f32 0.35355338, %v3064_v18  ;;  %v9544_v21 = vpop.f32.mrb[31].mxu1  ;;  %9531 = vmatpush3.msra.mxu0 %v2002_v28  ;;  %v2004_v28 = vld [vmem:[%s10560_s30 + $0x18] sm:$0xff] }
0x1105   :  { %9535 = vmatprep.subr.mxu0 %v2001_v29 }
0x1106   :  { %v3148_v22 = vsel %vm330_vm2, %v3146_v19, -inf }
0x1107   :  { %3149 = vmax.xlane.f32.xlu1 %v3148_v22  ;;  %v3142_v24 = vpop.f32.mrb[32].mxu1 }
0x1108   :  { %v3147_v25 = vmul.f32 0.35355338, %v3142_v24  ;;  %v9549_v26 = vpop.f32.mrb[33].mxu1 }
0x110a   :  { %v3151_v27 = vsel %vm330_vm2, %v3147_v25, -inf }
0x110b   :  { %3152 = vmax.xlane.f32.xlu1 %v3151_v27 }
0x1194   :  { %v3150_v30 = vpop.xlane.xlu1 %3149 }
0x1195   :  { %v3154_v31 = vsub.f32 %v3146_v19, %v3150_v30 }
0x1197   :  { %v3156_v32 = vmul.f32 1.442695, %v3154_v31 }
0x1198   :  { %v3153_v33 = vpop.xlane.xlu1 %3152 }
0x1199   :  { %10234 = vpow2.f32 %v3156_v32  ;;  %v3155_v34 = vsub.f32 %v3147_v25, %v3153_v33  ;;  %v3846_v25 = vadd.f32 %v10347_v60, %v10883_v62 }
0x119b   :  { %v3158_v35 = vmul.f32 1.442695, %v3155_v34  ;;  %v3848_v26 = vsel %vm161_vm0, %v3846_v25, 0.0 }
0x119d   :  { %10236 = vpow2.f32 %v3158_v35 }
0x11a3   :  { %v10235_v36 = vpop.eup %10234 }
0x11a4   :  { %v3160_v37 = vsel %vm330_vm2, %v10235_v36, 0.0 }
0x11a5   :  { %3161 = vadd.xlane.f32.xlu1 %v3160_v37 }
0x11a7   :  { %v10237_v38 = vpop.eup %10236 }
0x11a8   :  { %v3163_v39 = vsel %vm330_vm2, %v10237_v38, 0.0 }
0x11a9   :  { %3164 = vadd.xlane.f32.xlu1 %v3163_v39 }
0x11ba   :  { %3246 = vrot.lane.b32.xlu1 %v10894_v3, %s11691_s15  ;;  %s11733_s15 = sld [smem:[#allocation17_spill]] }
0x11d6   :  { %v2748_v23 = vpop.f32.mrb[26].mxu0 }
0x11d7   :  { %v9524_v41 = vpop.f32.mrb[27].mxu0  ;;  %9532 = vmatprep.mubr.msk.f32.mxu0 %vm330_vm2, %v2748_v23 }
0x11d8   :  { %9533 = vmatmul.mubr.msk.f32.vlgmr.msra.gmra.mrb[28].mxu0 %vm330_vm2, %v2824_v9  ;;  %v3847_v9 = vadd.f32 %v10346_v8, %v1990_v7 }
0x11d9   :  { %9537 = vmatprep.mubr.msk.f32.mxu0 %vm330_vm2, %v10957_v50  ;;  %9536 = vmatpush3.msra.mxu0 %v2001_v29 }
0x11da   :  { %9550 = vmatprep.subr.mxu0 %v10477_v16  ;;  %v3851_v10 = vsel %vm161_vm0, %v3847_v9, 0.0 }
0x11e0   :  { %9538 = vmatmul.mubr.msk.f32.vlgmr.msra.gmra.mrb[28].mxu0 %vm330_vm2, %v10936_v40  ;;  %v3486_v40 = vpop.permute.xlu0 %3485 }
0x11e1   :  { %9551 = vmatpush3.msra.mxu0 %v3171_v43  ;;  %9552 = vmatprep.mubr.msk.f32.mxu0 %vm10478_vm1, %v10477_v16 }
0x11e2   :  { %9560 = vmatprep.subr.mxu0 %v2003_v42 }
0x11e4   :  { %v3406_v50 = vpop.permute.xlu0 %3405 }
0x11e8   :  { %v3484_v55 = vpop.permute.xlu0 %3483 }
0x1232   :  { %v3162_v11 = vpop.xlane.xlu1 %3161 }
0x1233   :  { %10238 = vrcp.f32 %v3162_v11 }
0x1236   :  { %v3165_v44 = vpop.xlane.xlu1 %3164 }
0x1237   :  { %10240 = vrcp.f32 %v3165_v44  ;;  %v10348_v44 = vld [vmem:[%s10505_s9 + $0x8] sm:$0xff] }
0x123a   :  { %v3247_v20 = vpop.permute.xlu1 %3246 }
0x123b   :  { %9556 = vmatpush3.msra.mxu1 %v3247_v20 }
0x123c   :  { %9565 = vmatprep.subr.mxu1 %v10477_v16 }
0x123d   :  { %v10239_v46 = vpop.eup %10238 }
0x123e   :  { %v3168_v47 = vmul.f32 %v10239_v46, %v10235_v36 }
0x1240   :  { %9553 = vmatmul.mubr.msk.f32.vlgmr.msra.gmra.mrb[30].mxu0 %vm330_vm2, %v3168_v47 }
0x1241   :  { %v10241_v48 = vpop.eup %10240  ;;  %9561 = vmatpush3.msra.mxu0 %v2003_v42 }
0x1242   :  { %v3169_v49 = vmul.f32 %v10241_v48, %v10237_v38  ;;  %9570 = vmatprep.subr.mxu0 %v10477_v16  ;;  %v8873_v38 = vld [vmem:[%s10565_s6] ss:$0 sm:$0xff] }
0x1244   :  { %9558 = vmatmul.mubr.msk.f32.vlgmr.msra.gmra.mrb[34].mxu1 %vm330_vm2, %v3169_v49 }
0x1245   :  { %9566 = vmatpush3.xpose.msk.msra.mxu1 %vm330_vm2, %v3408_v45  ;;  %9567 = vmatprep.mubr.msk.f32.mxu1 %vm10478_vm1, %v10477_v16  ;;  %v10349_v45 = vld [vmem:[%s10505_s9] sm:$0xff]  ;;  %s11724_s9 = sld [smem:[#allocation12_spill]] }
0x1246   :  { %9575 = vmatprep.subr.mxu1 %v10477_v16 }
0x1248   :  { %9568 = vmatmul.mubr.msk.f32.vlgmr.msra.gmra.mrb[36].mxu1 %vm330_vm2, %v3406_v50 }
0x1249   :  { %9577 = vmatprep.mubr.msk.f32.mxu1 %vm10478_vm1, %v10477_v16 }
0x1313   :  { %v3242_v51 = vpop.f32.mrb[30].mxu0 }
0x1314   :  { %v9554_v52 = vpop.f32.mrb[31].mxu0  ;;  %9562 = vmatprep.mubr.msk.f32.mxu0 %vm330_vm2, %v3242_v51 }
0x1315   :  { %v3830_v52 = vld [vmem:[%s11723_s5] sm:$0xff] }
0x1317   :  { %v3318_v53 = vpop.f32.mrb[34].mxu1 }
0x1318   :  { %v9559_v54 = vpop.f32.mrb[35].mxu1  ;;  %9563 = vmatmul.mubr.msk.f32.vlgmr.msra.gmra.mrb[28].mxu0 %vm330_vm2, %v3318_v53  ;;  %v3831_v53 = vld [vmem:[%s11723_s5 + $0x8] sm:$0xff] }
0x1319   :  { %9571 = vmatpush3.xpose.msk.msra.mxu0 %vm330_vm2, %v3486_v40  ;;  %9572 = vmatprep.mubr.msk.f32.mxu0 %vm10478_vm1, %v10477_v16  ;;  %v3832_v54 = vld [vmem:[%s11723_s5 + $0x10] sm:$0xff] }
0x131a   :  { %9580 = vmatprep.subr.mxu0 %v10477_v16 }
0x131b   :  { %v3479_v56 = vpop.f32.mrb[36].mxu1 }
0x131c   :  { %v3561_v58 = vmul.f32 0.35355338, %v3479_v56  ;;  %v9569_v14 = vpop.f32.mrb[37].mxu1  ;;  %9573 = vmatmul.mubr.msk.f32.vlgmr.msra.gmra.mrb[32].mxu0 %vm330_vm2, %v3484_v55  ;;  %v9986_v55 = vpack.c.bf16 %v3831_v53, %v3830_v52  ;;  %v3833_v56 = vld [vmem:[%s11723_s5 + $0x18] sm:$0xff]  ;;  %v8885_v53 = vld [vmem:[%s11730_s2] ss:$0 sm:$0xff] }
0x131d   :  { %9582 = vmatprep.mubr.msk.f32.mxu0 %vm10478_vm1, %v10477_v16 }
0x131e   :  { %v3563_v59 = vsel %vm330_vm2, %v3561_v58, -inf }
0x131f   :  { %3564 = vmax.xlane.f32.xlu1 %v3563_v59 }
0x13ac   :  { %v3565_v61 = vpop.xlane.xlu1 %3564 }
0x13ad   :  { %v3569_v13 = vsub.f32 %v3561_v58, %v3565_v61  ;;  %v9990_v58 = vpack.c.bf16 %v3833_v56, %v3832_v54  ;;  %v4121_v56 = vld [vmem:[%s11728_s28 + $0x10] sm:$0xff] }
0x13af   :  { %v3571_v63 = vmul.f32 1.442695, %v3569_v13 }
0x13b1   :  { %10242 = vpow2.f32 %v3571_v63 }
0x13bb   :  { %v10243_v5 = vpop.eup %10242 }
0x13bc   :  { %v3575_v6 = vsel %vm330_vm2, %v10243_v5, 0.0 }
0x13ef   :  { %v3557_v0 = vpop.f32.mrb[32].mxu0 }
0x13f0   :  { %v3562_v1 = vmul.f32 0.35355338, %v3557_v0  ;;  %v9574_v15 = vpop.f32.mrb[33].mxu0 }
0x13f2   :  { %v3566_v4 = vsel %vm330_vm2, %v3562_v1, -inf }
0x13f3   :  { %3567 = vmax.xlane.f32.xlu0 %v3566_v4 }
0x13f7   :  { %3576 = vadd.xlane.f32.xlu0 %v3575_v6 }
0x140d   :  { %3585 = vrot.lane.b32.xlu0 %v10887_v2, %s11687_s18 }
0x142c   :  { %3852 = vadd.xlane.f32.xlu0 %v3851_v10 }
0x1480   :  { %v3568_v12 = vpop.xlane.xlu0 %3567 }
0x1481   :  { %v3570_v17 = vsub.f32 %v3562_v1, %v3568_v12 }
0x1483   :  { %v3573_v18 = vmul.f32 1.442695, %v3570_v17 }
0x1484   :  { %v3577_v19 = vpop.xlane.xlu0 %3576 }
0x1485   :  { %10244 = vpow2.f32 %v3573_v18  ;;  %v8874_v18 = vld [vmem:[%s11724_s9] ss:$0 sm:$0xff] }
0x1486   :  { %10246 = vrcp.f32 %v3577_v19 }
0x1488   :  { %v3586_v21 = vpop.permute.xlu0 %3585 }
0x1489   :  { %9576 = vmatpush3.msra.mxu1 %v3586_v21 }
0x148a   :  { %9987 = vmatprep.subr.bf16.mxu1 %v9986_v55 }
0x148f   :  { %v10245_v22 = vpop.eup %10244 }
0x1490   :  { %v10247_v2 = vpop.eup %10246  ;;  %v3578_v24 = vsel %vm330_vm2, %v10245_v22, 0.0 }
0x1491   :  { %3579 = vadd.xlane.f32.xlu1 %v3578_v24  ;;  %v3583_v57 = vmul.f32 %v10247_v2, %v10243_v5  ;;  %v8875_v2 = vld [vmem:[%s11725_s22] ss:$0 sm:$0xff] }
0x1493   :  { %9578 = vmatmul.mubr.msk.f32.vlgmr.msra.gmra.mrb[38].mxu1 %vm330_vm2, %v3583_v57 }
0x1494   :  { %9989 = vmatpush3.bf16.msra.mxu1 %v9986_v55 }
0x1495   :  { %9991 = vmatprep.subr.bf16.mxu1 %v9990_v58 }
0x1498   :  { %9993 = vmatpush3.bf16.msra.mxu1 %v9990_v58  ;;  %v4122_v58 = vld [vmem:[%s11728_s28 + $0x18] sm:$0xff] }
0x14a2   :  { %3661 = vrot.lane.b32.xlu1 %v10894_v3, %s11687_s18  ;;  %s11731_s18 = sld [smem:[#allocation15_spill]] }
0x14b9   :  { %v3853_v34 = vpop.xlane.xlu0 %3852 }
0x14ba   :  { %v3856_v36 = vmul.f32 0.03125, %v3853_v34  ;;  %v3838_v34 = vld [vmem:[%s11727_s26 + $0x18] sm:$0xff] }
0x14bc   :  { %v3858_v23 = vsub.f32 %v3847_v9, %v3856_v36  ;;  %v3839_v36 = vld [vmem:[%s11727_s26 + $0x20] sm:$0xff] }
0x14be   :  { %v3860_v48 = vmul.f32 %v3858_v23, %v3858_v23 }
0x14c0   :  { %v3864_v50 = vsel %vm161_vm0, %v3860_v48, 0.0 }
0x14c6   :  { %3849 = vadd.xlane.f32.xlu1 %v3848_v26  ;;  %v4114_v26 = vld [vmem:[%s11726_s23] sm:$0xff] }
0x151e   :  { %v3580_v27 = vpop.xlane.xlu1 %3579 }
0x151f   :  { %10248 = vrcp.f32 %v3580_v27  ;;  %v4115_v27 = vld [vmem:[%s11726_s23 + $0x8] sm:$0xff] }
0x1522   :  { %v3662_v29 = vpop.permute.xlu1 %3661 }
0x1523   :  { %9581 = vmatpush3.msra.mxu0 %v3662_v29  ;;  %v4116_v29 = vld [vmem:[%s11726_s23 + $0x10] sm:$0xff] }
0x1524   :  { %9585 = vmatprep.subr.mxu0 %v2004_v28 }
0x1529   :  { %v10249_v30 = vpop.eup %10248 }
0x152a   :  { %v3584_v31 = vmul.f32 %v10249_v30, %v10245_v22  ;;  %v4117_v30 = vld [vmem:[%s11726_s23 + $0x18] sm:$0xff] }
0x152c   :  { %9583 = vmatmul.mubr.msk.f32.vlgmr.msra.gmra.mrb[34].mxu0 %vm330_vm2, %v3584_v31  ;;  %v10014_v31 = vpack.c.bf16 %v4117_v30, %v4116_v29 }
0x152d   :  { %9586 = vmatpush3.msra.mxu0 %v2004_v28  ;;  %v10010_v28 = vpack.c.bf16 %v4115_v27, %v4114_v26 }
0x152f   :  { %10011 = vmatprep.subr.bf16.mxu1 %v10010_v28 }
0x1553   :  { %v3850_v35 = vpop.xlane.xlu1 %3849 }
0x1554   :  { %v3855_v37 = vmul.f32 0.03125, %v3850_v35 }
0x1556   :  { %v3857_v43 = vsub.f32 %v3846_v25, %v3855_v37  ;;  %v3840_v37 = vld [vmem:[%s11727_s26 + $0x28] sm:$0xff] }
0x1558   :  { %v3859_v49 = vmul.f32 %v3857_v43, %v3857_v43 }
0x155a   :  { %v3861_v51 = vsel %vm161_vm0, %v3859_v49, 0.0  ;;  %v8884_v49 = vld [vmem:[%s11729_s1] ss:$0 sm:$0xff] }
0x1566   :  { %v3657_v32 = vpop.f32.mrb[38].mxu1 }
0x1567   :  { %v9579_v3 = vpop.f32.mrb[39].mxu1  ;;  %9587 = vmatprep.mubr.msk.f32.mxu0 %vm330_vm2, %v3657_v32  ;;  %v3835_v32 = vld [vmem:[%s11727_s26] sm:$0xff] }
0x1568   :  { %v3836_v3 = vld [vmem:[%s11727_s26 + $0x8] sm:$0xff] }
0x15ff   :  { %v3733_v62 = vpop.f32.mrb[34].mxu0 }
0x1600   :  { %v9584_v33 = vpop.f32.mrb[35].mxu0  ;;  %9588 = vmatmul.mubr.msk.f32.vlgmr.msra.gmra.mrb[28].mxu0 %vm330_vm2, %v3733_v62  ;;  %v3837_v62 = vld [vmem:[%s11727_s26 + $0x10] sm:$0xff] }
0x1601   :  { %v9994_v33 = vpack.c.bf16 %v3836_v3, %v3835_v32  ;;  %v9998_v35 = vpack.c.bf16 %v3838_v34, %v3837_v62  ;;  %v8889_v62 = vld [vmem:[%s11734_s10] ss:$0 sm:$0xff] }
0x1603   :  { %9995 = vmatprep.subr.bf16.mxu0 %v9994_v33 }
0x1604   :  { %9997 = vmatpush3.bf16.msra.mxu0 %v9994_v33 }
0x1605   :  { %9999 = vmatprep.subr.bf16.mxu0 %v9998_v35 }
0x1608   :  { %10001 = vmatpush3.bf16.msra.mxu0 %v9998_v35 }
0x16d3   :  { %v9589_v39 = vpop.f32.mrb[28].mxu0 }
0x16d4   :  { %v3827_v41 = vadd.f32 %v9589_v39, %v8873_v38  ;;  %v3809_v42 = vpop.f32.mrb[29].mxu0  ;;  %v3841_v39 = vld [vmem:[%s11727_s26 + $0x30] sm:$0xff] }
0x16d5   :  { %v3826_v11 = vadd.f32 %v8873_v38, %v3809_v42  ;;  %v10002_v38 = vpack.c.bf16 %v3840_v37, %v3839_v36  ;;  %v4119_v42 = vld [vmem:[%s11728_s28] sm:$0xff] }
0x16d6   :  { %v4131_v20 = vadd.f32 %v10348_v44, %v3827_v41 }
0x16d7   :  { %v4130_v46 = vadd.f32 %v10349_v45, %v3826_v11  ;;  %10003 = vmatprep.subr.bf16.mxu0 %v10002_v38 }
0x16d8   :  { %v4135_v47 = vsel %vm161_vm0, %v4131_v20, 0.0  ;;  %10005 = vmatpush3.bf16.msra.mxu0 %v10002_v38 }
0x16d9   :  { %4136 = vadd.xlane.f32.xlu1 %v4135_v47  ;;  %v4132_v40 = vsel %vm161_vm0, %v4130_v46, 0.0 }
0x16da   :  { %4133 = vadd.xlane.f32.xlu0 %v4132_v40 }
0x16dd   :  { %3865 = vadd.xlane.f32.xlu1 %v3864_v50 }
0x16de   :  { %3862 = vadd.xlane.f32.xlu0 %v3861_v51 }
0x1766   :  { %v4137_v14 = vpop.xlane.xlu1 %4136 }
0x1767   :  { %v4139_v59 = vmul.f32 0.03125, %v4137_v14  ;;  %v4134_v61 = vpop.xlane.xlu0 %4133 }
0x1768   :  { %v4138_v13 = vmul.f32 0.03125, %v4134_v61  ;;  %v10022_v61 = vpack.c.bf16 %v4122_v58, %v4121_v56 }
0x1769   :  { %v11057_v63 = vsub.f32 %v4131_v20, %v4139_v59 }
0x176a   :  { %v11059_v0 = vsub.f32 %v4130_v46, %v4138_v13  ;;  %v3866_v1 = vpop.xlane.xlu1 %3865  ;;  %v4123_v13 = vld [vmem:[%s11728_s28 + $0x20] sm:$0xff] }
0x176b   :  { %v3868_v15 = vmul.f32 0.03125, %v3866_v1  ;;  %v3863_v4 = vpop.xlane.xlu0 %3862  ;;  %v4143_v5 = vmul.f32 %v11057_v63, %v11057_v63  ;;  %v4124_v1 = vld [vmem:[%s11728_s28 + $0x28] sm:$0xff] }
0x176c   :  { %v3867_v6 = vmul.f32 0.03125, %v3863_v4  ;;  %v4142_v7 = vmul.f32 %v11059_v0, %v11059_v0 }
0x176d   :  { %v3870_v8 = vadd.f32 1e-05, %v3868_v15  ;;  %v4147_v9 = vsel %vm161_vm0, %v4143_v5, 0.0 }
0x176e   :  { %v3869_v10 = vadd.f32 1e-05, %v3867_v6  ;;  %4148 = vadd.xlane.f32.xlu1 %v4147_v9  ;;  %v4144_v12 = vsel %vm161_vm0, %v4142_v7, 0.0  ;;  %v4125_v9 = vld [vmem:[%s11728_s28 + $0x30] sm:$0xff] }
0x176f   :  { %10250 = vrsqrt.f32 %v3870_v8  ;;  %4145 = vadd.xlane.f32.xlu0 %v4144_v12 }
0x1770   :  { %10252 = vrsqrt.f32 %v3869_v10  ;;  %v4126_v10 = vld [vmem:[%s11728_s28 + $0x38] sm:$0xff] }
0x1771   :  { %v10030_v12 = vpack.c.bf16 %v4126_v10, %v4125_v9 }
0x1779   :  { %v10251_v17 = vpop.eup %10250 }
0x177a   :  { %v10253_v19 = vpop.eup %10252  ;;  %v3874_v21 = vmul.f32 %v10251_v17, %v3858_v23  ;;  %v3842_v23 = vld [vmem:[%s11727_s26 + $0x38] sm:$0xff]  ;;  %v8886_v17 = vld [vmem:[%s11732_s16] ss:$0 sm:$0xff] }
0x177b   :  { %v3873_v22 = vmul.f32 %v10253_v19, %v3857_v43  ;;  %v10006_v41 = vpack.c.bf16 %v3842_v23, %v3841_v39  ;;  %v4120_v43 = vld [vmem:[%s11728_s28 + $0x8] sm:$0xff] }
0x177c   :  { %v3882_v24 = vmul.f32 %v8874_v18, %v3874_v21  ;;  %v10018_v11 = vpack.c.bf16 %v4120_v43, %v4119_v42 }
0x177d   :  { %v3881_v57 = vmul.f32 %v8874_v18, %v3873_v22  ;;  %10007 = vmatprep.subr.bf16.mxu0 %v10006_v41 }
0x177e   :  { %v11071_v25 = vadd.f32 %v8875_v2, %v3882_v24  ;;  %10009 = vmatpush3.bf16.msra.mxu0 %v10006_v41 }
0x177f   :  { %v11069_v60 = vadd.f32 %v8875_v2, %v3881_v57  ;;  %v8879_v57 = vld [vmem:[%s11733_s15] ss:$0 sm:$0xff] }
0x1781   :  { %9598 = vmatprep.mubr.msk.f32.mxu1 %vm161_vm0, %v11069_v60 }
0x1782   :  { %9599 = vmatmul.mubr.msk.f32.vlgmr.msra.gmra.mrb[40].mxu1 %vm161_vm0, %v11071_v25 }
0x1783   :  { %10013 = vmatpush3.bf16.msra.mxu1 %v10010_v28 }
0x1784   :  { %10015 = vmatprep.subr.bf16.mxu1 %v10014_v31 }
0x1787   :  { %10017 = vmatpush3.bf16.msra.mxu1 %v10014_v31 }
0x1788   :  { %10019 = vmatprep.subr.bf16.mxu1 %v10018_v11 }
0x17fb   :  { %v4149_v44 = vpop.xlane.xlu1 %4148 }
0x17fc   :  { %v4151_v20 = vmul.f32 0.03125, %v4149_v44  ;;  %v4146_v45 = vpop.xlane.xlu0 %4145 }
0x17fd   :  { %v4150_v46 = vmul.f32 0.03125, %v4146_v45 }
0x17fe   :  { %v4153_v47 = vadd.f32 1e-05, %v4151_v20 }
0x17ff   :  { %v4152_v48 = vadd.f32 1e-05, %v4150_v46 }
0x1800   :  { %10254 = vrsqrt.f32 %v4153_v47  ;;  %v8894_v47 = vld [vmem:[%s10510_s13 + $0x20] sm:$0xff] }
0x1801   :  { %10256 = vrsqrt.f32 %v4152_v48  ;;  %v8895_v48 = vld [vmem:[%s10510_s13 + $0x28] sm:$0xff] }
0x180a   :  { %v10255_v40 = vpop.eup %10254 }
0x180b   :  { %v10257_v50 = vpop.eup %10256  ;;  %v4157_v51 = vmul.f32 %v10255_v40, %v11057_v63  ;;  %v10026_v63 = vpack.c.bf16 %v4124_v1, %v4123_v13  ;;  %v10034_v40 = vpack.c.bf16 %v8895_v48, %v8894_v47 }
0x180c   :  { %v4156_v52 = vmul.f32 %v10257_v50, %v11059_v0  ;;  %v8876_v0 = vld [vmem:[%s11731_s18] ss:$0 sm:$0xff]  ;;  %v8897_v50 = vld [vmem:[%s10510_s13 + $0x38] sm:$0xff] }
0x180d   :  { %v4165_v54 = vmul.f32 %v8884_v49, %v4157_v51  ;;  %10035 = vmatprep.subr.bf16.mxu0 %v10034_v40 }
0x180e   :  { %v4164_v55 = vmul.f32 %v8884_v49, %v4156_v52  ;;  %v8896_v49 = vld [vmem:[%s10510_s13 + $0x30] sm:$0xff]  ;;  %s11737_s13 = sld [smem:[#allocation26_spill]] }
0x180f   :  { %v4173_v59 = vadd.f32 %v8885_v53, %v4165_v54  ;;  %v10038_v51 = vpack.c.bf16 %v8897_v50, %v8896_v49 }
0x1810   :  { %v4172_v14 = vadd.f32 %v8885_v53, %v4164_v55 }
0x1812   :  { %9628 = vmatprep.mubr.msk.f32.mxu1 %vm161_vm0, %v4172_v14 }
0x1813   :  { %9629 = vmatmul.mubr.msk.f32.vlgmr.msra.gmra.mrb[42].mxu1 %vm161_vm0, %v4173_v59 }
0x1814   :  { %10021 = vmatpush3.bf16.msra.mxu1 %v10018_v11 }
0x1815   :  { %10023 = vmatprep.subr.bf16.mxu1 %v10022_v61 }
0x1818   :  { %10025 = vmatpush3.bf16.msra.mxu1 %v10022_v61 }
0x1819   :  { %10027 = vmatprep.subr.bf16.mxu1 %v10026_v63 }
0x181c   :  { %10029 = vmatpush3.bf16.msra.mxu1 %v10026_v63 }
0x181d   :  { %10031 = vmatprep.subr.bf16.mxu1 %v10030_v12 }
0x1820   :  { %10033 = vmatpush3.bf16.msra.mxu1 %v10030_v12  ;;  %v8883_v12 = vld [vmem:[%s11736_s0] ss:$0 sm:$0xff]  ;;  %s11745_s0 = smov 72  }
0x1821   :  { %9672 = vmatprep.subr.mxu1 %v10477_v16 }
0x1855   :  { %v9600_v15 = vpop.f32.mrb[40].mxu1 }
0x1856   :  { %v3975_v4 = vadd.f32 %v9600_v15, %v8876_v0  ;;  %v3969_v5 = vpop.f32.mrb[41].mxu1 }
0x1857   :  { %v3970_v6 = vadd.f32 %v8876_v0, %v3969_v5 }
0x1858   :  { %v3979_v8 = vmax.f32 %v3975_v4, 0.0 }
0x1859   :  { %v3978_v7 = vmax.f32 %v3970_v6, 0.0 }
0x185b   :  { %9617 = vmatprep.mubr.msk.f32.mxu0 %vm3986_vm3, %v3978_v7  ;;  %v8882_v7 = vld [vmem:[%s11735_s11] ss:$0 sm:$0xff] }
0x185c   :  { %9618 = vmatmul.mubr.msk.f32.vlgmr.msra.gmra.mrb[36].mxu0 %vm3986_vm3, %v3979_v8 }
0x185d   :  { %10037 = vmatpush3.bf16.msra.mxu0 %v10034_v40 }
0x185e   :  { %10039 = vmatprep.subr.bf16.mxu0 %v10038_v51 }
0x1861   :  { %10041 = vmatpush3.bf16.msra.mxu0 %v10038_v51 }
0x18e6   :  { %v9630_v18 = vpop.f32.mrb[42].mxu1 }
0x18e7   :  { %v4258_v19 = vadd.f32 %v9630_v18, %v8886_v17  ;;  %v4252_v21 = vpop.f32.mrb[43].mxu1 }
0x18e8   :  { %v4253_v22 = vadd.f32 %v8886_v17, %v4252_v21 }
0x18e9   :  { %v4262_v24 = vmax.f32 %v4258_v19, 0.0 }
0x18ea   :  { %v4261_v2 = vmax.f32 %v4253_v22, 0.0  ;;  %v8899_v22 = vld [vmem:[%s10520_s21 + $0x20] sm:$0xff] }
0x18ec   :  { %9647 = vmatprep.mubr.msk.f32.mxu1 %vm3986_vm3, %v4261_v2  ;;  %v8900_v2 = vld [vmem:[%s10520_s21 + $0x28] sm:$0xff] }
0x18ed   :  { %9648 = vmatmul.mubr.msk.f32.vlgmr.msra.gmra.mrb[44].mxu1 %vm3986_vm3, %v4262_v24  ;;  %v10042_v24 = vpack.c.bf16 %v8900_v2, %v8899_v22 }
0x18ee   :  { %9674 = vmatprep.mubr.msk.f32.mxu1 %vm10478_vm1, %v10477_v16 }
0x18ef   :  { %10043 = vmatprep.subr.bf16.mxu0 %v10042_v24 }
0x192f   :  { %v9619_v26 = vpop.f32.mrb[36].mxu0 }
0x1930   :  { %v4065_v27 = vadd.f32 %v9619_v26, %v8879_v57  ;;  %v4059_v28 = vpop.f32.mrb[37].mxu0  ;;  %v8902_v26 = vld [vmem:[%s10520_s21 + $0x38] sm:$0xff] }
0x1931   :  { %v4060_v29 = vadd.f32 %v8879_v57, %v4059_v28  ;;  %v8901_v57 = vld [vmem:[%s10520_s21 + $0x30] sm:$0xff]  ;;  %s11739_s21 = smov 120  }
0x1932   :  { %v4069_v30 = vadd.f32 %v4065_v27, %v11071_v25  ;;  %v10046_v27 = vpack.c.bf16 %v8902_v26, %v8901_v57 }
0x1933   :  { %v4068_v31 = vadd.f32 %v4060_v29, %v11069_v60 }
0x1934   :  { %v4073_v32 = vsel %vm161_vm0, %v4069_v30, 0.0 }
0x1935   :  { %4074 = vadd.xlane.f32.xlu1 %v4073_v32  ;;  %v4070_v3 = vsel %vm161_vm0, %v4068_v31, 0.0 }
0x1936   :  { %4071 = vadd.xlane.f32.xlu0 %v4070_v3 }
0x19c0   :  { %v9649_v33 = vpop.f32.mrb[44].mxu1 }
0x19c1   :  { %v4347_v34 = vadd.f32 %v9649_v33, %v8889_v62  ;;  %v4341_v35 = vpop.f32.mrb[45].mxu1  ;;  %v8892_v33 = vld [vmem:[%s11737_s13] ss:$0 sm:$0xff] }
0x19c2   :  { %v4342_v36 = vadd.f32 %v8889_v62, %v4341_v35  ;;  %v4075_v37 = vpop.xlane.xlu1 %4074 }
0x19c3   :  { %v4077_v38 = vmul.f32 0.03125, %v4075_v37  ;;  %v4072_v39 = vpop.xlane.xlu0 %4071  ;;  %v4351_v23 = vadd.f32 %v4347_v34, %v4173_v59  ;;  %v8893_v37 = vld [vmem:[%s11738_s7] ss:$0 sm:$0xff] }
0x19c4   :  { %v4076_v25 = vmul.f32 0.03125, %v4072_v39  ;;  %v4350_v41 = vadd.f32 %v4342_v36, %v4172_v14 }
0x19c5   :  { %v4079_v60 = vsub.f32 %v4069_v30, %v4077_v38  ;;  %v4355_v42 = vsel %vm161_vm0, %v4351_v23, 0.0 }
0x19c6   :  { %v4078_v43 = vsub.f32 %v4068_v31, %v4076_v25  ;;  %4356 = vadd.xlane.f32.xlu1 %v4355_v42  ;;  %v4352_v11 = vsel %vm161_vm0, %v4350_v41, 0.0  ;;  %v8912_v42 = vld [vmem:[%s10525_s25 + $0x1] ss:$0 sm:$0xff]  ;;  %s11741_s25 = smov 112  }
0x19c7   :  { %4353 = vadd.xlane.f32.xlu0 %v4352_v11  ;;  %v4081_v44 = vmul.f32 %v4079_v60, %v4079_v60 }
0x19c8   :  { %v4080_v20 = vmul.f32 %v4078_v43, %v4078_v43 }
0x19c9   :  { %v4085_v45 = vsel %vm161_vm0, %v4081_v44, 0.0 }
0x19ca   :  { %4086 = vadd.xlane.f32.xlu1 %v4085_v45  ;;  %v4082_v46 = vsel %vm161_vm0, %v4080_v20, 0.0  ;;  %v8909_v20 = vld [vmem:[%s10515_s17 + $0x1] ss:$0 sm:$0xff]  ;;  %s11740_s17 = smov 96  }
0x19cb   :  { %4083 = vadd.xlane.f32.xlu0 %v4082_v46 }
0x1a53   :  { %v4357_v52 = vpop.xlane.xlu1 %4356 }
0x1a54   :  { %v4359_v53 = vmul.f32 0.03125, %v4357_v52  ;;  %v4354_v54 = vpop.xlane.xlu0 %4353 }
0x1a55   :  { %v4358_v55 = vmul.f32 0.03125, %v4354_v54 }
0x1a56   :  { %v4361_v56 = vsub.f32 %v4351_v23, %v4359_v53 }
0x1a57   :  { %v4360_v58 = vsub.f32 %v4350_v41, %v4358_v55  ;;  %v4087_v14 = vpop.xlane.xlu1 %4086 }
0x1a58   :  { %v4089_v59 = vmul.f32 0.03125, %v4087_v14  ;;  %v4084_v61 = vpop.xlane.xlu0 %4083  ;;  %v4363_v13 = vmul.f32 %v4361_v56, %v4361_v56 }
0x1a59   :  { %v4088_v1 = vmul.f32 0.03125, %v4084_v61  ;;  %v4362_v63 = vmul.f32 %v4360_v58, %v4360_v58 }
0x1a5a   :  { %v4091_v0 = vadd.f32 1e-05, %v4089_v59  ;;  %v4367_v15 = vsel %vm161_vm0, %v4363_v13, 0.0 }
0x1a5b   :  { %v4090_v4 = vadd.f32 1e-05, %v4088_v1  ;;  %4368 = vadd.xlane.f32.xlu1 %v4367_v15  ;;  %v4364_v5 = vsel %vm161_vm0, %v4362_v63, 0.0 }
0x1a5c   :  { %10258 = vrsqrt.f32 %v4091_v0  ;;  %4365 = vadd.xlane.f32.xlu0 %v4364_v5 }
0x1a5d   :  { %10260 = vrsqrt.f32 %v4090_v4 }
0x1a66   :  { %v10259_v6 = vpop.eup %10258 }
0x1a67   :  { %v10261_v8 = vpop.eup %10260  ;;  %v4095_v9 = vmul.f32 %v10259_v6, %v4079_v60 }
0x1a68   :  { %v4094_v10 = vmul.f32 %v10261_v8, %v4078_v43 }
0x1a69   :  { %v4103_v17 = vmul.f32 %v8882_v7, %v4095_v9 }
0x1a6a   :  { %v4102_v18 = vmul.f32 %v8882_v7, %v4094_v10 }
0x1a6b   :  { %v11132_v21 = vadd.f32 %v8883_v12, %v4103_v17 }
0x1a6c   :  { %v11130_v19 = vadd.f32 %v8883_v12, %v4102_v18 }
0x1a6e   :  { %9658 = vmatprep.mubr.msk.f32.mxu0 %vm161_vm0, %v11130_v19 }
0x1a6f   :  { %9659 = vmatmul.mubr.msk.f32.vlgmr.msra.gmra.mrb[38].mxu0 %vm161_vm0, %v11132_v21 }
0x1a70   :  { %10045 = vmatpush3.bf16.msra.mxu0 %v10042_v24 }
0x1a71   :  { %10047 = vmatprep.subr.bf16.mxu0 %v10046_v27 }
0x1a74   :  { %10049 = vmatpush3.bf16.msra.mxu0 %v10046_v27 }
0x1a75   :  { %9682 = vmatprep.subr.mxu0 %v10477_v16 }
0x1ae8   :  { %v4369_v28 = vpop.xlane.xlu1 %4368 }
0x1ae9   :  { %v4371_v29 = vmul.f32 0.03125, %v4369_v28  ;;  %v4366_v30 = vpop.xlane.xlu0 %4365 }
0x1aea   :  { %v4370_v31 = vmul.f32 0.03125, %v4366_v30 }
0x1aeb   :  { %v4373_v32 = vadd.f32 1e-05, %v4371_v29 }
0x1aec   :  { %v4372_v3 = vadd.f32 1e-05, %v4370_v31 }
0x1aed   :  { %10262 = vrsqrt.f32 %v4373_v32 }
0x1aee   :  { %10264 = vrsqrt.f32 %v4372_v3 }
0x1af7   :  { %v10263_v62 = vpop.eup %10262 }
0x1af8   :  { %v10265_v34 = vpop.eup %10264  ;;  %v4377_v35 = vmul.f32 %v10263_v62, %v4361_v56 }
0x1af9   :  { %v4376_v36 = vmul.f32 %v10265_v34, %v4360_v58 }
0x1afa   :  { %v4385_v38 = vmul.f32 %v8892_v33, %v4377_v35 }
0x1afb   :  { %v4384_v39 = vmul.f32 %v8892_v33, %v4376_v36 }
0x1afc   :  { %v11147_v25 = vadd.f32 %v8893_v37, %v4385_v38 }
0x1afd   :  { %v11145_v23 = vadd.f32 %v8893_v37, %v4384_v39 }
0x1aff   :  { %9669 = vmatprep.mubr.msk.f32.mxu0 %vm161_vm0, %v11145_v23 }
0x1b00   :  { %9670 = vmatmul.mubr.msk.f32.vlgmr.msra.gmra.mrb[40].mxu0 %vm161_vm0, %v11147_v25 }
0x1b01   :  { %9684 = vmatprep.mubr.msk.f32.mxu0 %vm10478_vm1, %v10477_v16 }
0x1b42   :  { %v9660_v41 = vpop.f32.mrb[38].mxu0 }
0x1b43   :  { %v4493_v60 = vpop.f32.mrb[39].mxu0  ;;  %v11174_v47 = vadd.f32 %v9660_v41, %v8909_v20 }
0x1b44   :  { %v11165_v46 = vadd.f32 %v8909_v20, %v4493_v60 }
0x1bd3   :  { %v9671_v43 = vpop.f32.mrb[40].mxu0 }
0x1bd4   :  { %v11156_v11 = vadd.f32 %v9671_v43, %v8912_v42  ;;  %v4580_v44 = vpop.f32.mrb[41].mxu0 }
0x1bd5   :  { %v11159_v45 = vadd.f32 %v8912_v42, %v4580_v44 }
0x1bd6   :  { %4999 = vrot.lane.b32.xlu1 %v11156_v11, %s11739_s21 }
0x1bd7   :  { %9673 = vmatpush3.xpose.msk.msra.mxu1 %vm330_vm2, %v11159_v45 }
0x1bd8   :  { %9677 = vmatprep.subr.mxu1 %v10477_v16 }
0x1bda   :  { %9675 = vmatmul.mubr.msk.f32.vlgmr.msra.gmra.mrb[46].mxu1 %vm330_vm2, %v11165_v46 }
0x1bdb   :  { %9678 = vmatpush3.xpose.msk.msra.mxu1 %vm330_vm2, %v11156_v11  ;;  %9679 = vmatprep.mubr.msk.f32.mxu1 %vm10478_vm1, %v10477_v16 }
0x1bdc   :  { %9687 = vmatprep.subr.mxu1 %v10477_v16 }
0x1bde   :  { %9680 = vmatmul.mubr.msk.f32.vlgmr.msra.gmra.mrb[48].mxu1 %vm330_vm2, %v11174_v47 }
0x1bdf   :  { %9689 = vmatprep.mubr.msk.f32.mxu1 %vm10478_vm1, %v10477_v16 }
0x1c48   :  { %v5000_v5 = vpop.permute.xlu1 %4999 }
0x1cad   :  { %v4661_v48 = vpop.f32.mrb[46].mxu1 }
0x1cae   :  { %v9676_v40 = vpop.f32.mrb[47].mxu1  ;;  %v4741_v53 = vmul.f32 0.35355338, %v4661_v48 }
0x1cb0   :  { %v4743_v54 = vsel %vm330_vm2, %v4741_v53, -inf }
0x1cb1   :  { %v4737_v49 = vpop.f32.mrb[48].mxu1 }
0x1cb2   :  { %v4742_v50 = vmul.f32 0.35355338, %v4737_v49  ;;  %v9681_v51 = vpop.f32.mrb[49].mxu1 }
0x1cb4   :  { %v4746_v52 = vsel %vm330_vm2, %v4742_v50, -inf }
0x1cb5   :  { %4747 = vmax.xlane.f32.xlu0 %v4746_v52 }
0x1ccb   :  { %4843 = vrot.lane.b32.xlu0 %v11156_v11, %s11740_s17 }
0x1cea   :  { %4744 = vmax.xlane.f32.xlu0 %v4743_v54 }
0x1d00   :  { %4767 = vrot.lane.b32.xlu0 %v11159_v45, %s11740_s17 }
0x1d04   :  { %4919 = vrot.lane.b32.xlu0 %v11165_v46, %s11739_s21 }
0x1d42   :  { %v4748_v55 = vpop.xlane.xlu0 %4747 }
0x1d43   :  { %v4750_v56 = vsub.f32 %v4742_v50, %v4748_v55 }
0x1d45   :  { %v4753_v58 = vmul.f32 1.442695, %v4750_v56 }
0x1d46   :  { %v4844_v14 = vpop.permute.xlu0 %4843 }
0x1d47   :  { %10266 = vpow2.f32 %v4753_v58  ;;  %9688 = vmatpush3.msra.mxu1 %v4844_v14 }
0x1d48   :  { %9697 = vmatprep.subr.mxu1 %v10477_v16 }
0x1d51   :  { %v10267_v59 = vpop.eup %10266 }
0x1d52   :  { %v4758_v61 = vsel %vm330_vm2, %v10267_v59, 0.0 }
0x1d53   :  { %4759 = vadd.xlane.f32.xlu1 %v4758_v61 }
0x1d64   :  { %4997 = vrot.lane.b32.xlu1 %v11174_v47, %s11739_s21 }
0x1d77   :  { %v4745_v13 = vpop.xlane.xlu0 %4744 }
0x1d78   :  { %v4749_v1 = vsub.f32 %v4741_v53, %v4745_v13 }
0x1d7a   :  { %v4751_v63 = vmul.f32 1.442695, %v4749_v1 }
0x1d7b   :  { %v4768_v0 = vpop.permute.xlu0 %4767 }
0x1d7c   :  { %10268 = vpow2.f32 %v4751_v63  ;;  %9683 = vmatpush3.msra.mxu0 %v4768_v0  ;;  %v8905_v0 = vld [vmem:[%s10530_s29 + $0x28] sm:$0xff] }
0x1d7d   :  { %9692 = vmatprep.subr.mxu0 %v10477_v16 }
0x1d7f   :  { %v4920_v22 = vpop.permute.xlu0 %4919 }
0x1d86   :  { %v10269_v15 = vpop.eup %10268 }
0x1d87   :  { %v4755_v4 = vsel %vm330_vm2, %v10269_v15, 0.0 }
0x1d88   :  { %4756 = vadd.xlane.f32.xlu1 %v4755_v4 }
0x1d99   :  { %4921 = vrot.lane.b32.xlu1 %v11159_v45, %s11739_s21 }
0x1de0   :  { %v4760_v6 = vpop.xlane.xlu1 %4759 }
0x1de1   :  { %10270 = vrcp.f32 %v4760_v6 }
0x1de4   :  { %v4998_v9 = vpop.permute.xlu1 %4997 }
0x1deb   :  { %v10271_v7 = vpop.eup %10270 }
0x1dec   :  { %v11197_v8 = vmul.f32 %v10271_v7, %v10267_v59 }
0x1dee   :  { %9690 = vmatmul.mubr.msk.f32.vlgmr.msra.gmra.mrb[50].mxu1 %vm330_vm2, %v11197_v8 }
0x1def   :  { %9698 = vmatpush3.xpose.msk.msra.mxu1 %vm330_vm2, %v5000_v5  ;;  %9699 = vmatprep.mubr.msk.f32.mxu1 %vm10478_vm1, %v10477_v16 }
0x1df0   :  { %9707 = vmatprep.subr.mxu1 %v10477_v16 }
0x1df2   :  { %9700 = vmatmul.mubr.msk.f32.vlgmr.msra.gmra.mrb[52].mxu1 %vm330_vm2, %v4998_v9 }
0x1df3   :  { %9709 = vmatprep.mubr.msk.f32.mxu1 %vm10478_vm1, %v10477_v16 }
0x1e15   :  { %v4757_v10 = vpop.xlane.xlu1 %4756 }
0x1e16   :  { %10272 = vrcp.f32 %v4757_v10 }
0x1e19   :  { %v4922_v18 = vpop.permute.xlu1 %4921 }
0x1e20   :  { %v10273_v12 = vpop.eup %10272 }
0x1e21   :  { %v11208_v17 = vmul.f32 %v10273_v12, %v10269_v15  ;;  %v8904_v15 = vld [vmem:[%s10530_s29 + $0x20] sm:$0xff] }
0x1e23   :  { %9685 = vmatmul.mubr.msk.f32.vlgmr.msra.gmra.mrb[42].mxu0 %vm330_vm2, %v11208_v17 }
0x1e24   :  { %9693 = vmatpush3.xpose.msk.msra.mxu0 %vm330_vm2, %v4922_v18  ;;  %9694 = vmatprep.mubr.msk.f32.mxu0 %vm10478_vm1, %v10477_v16 }
0x1e25   :  { %9702 = vmatprep.subr.mxu0 %v10477_v16 }
0x1e27   :  { %9695 = vmatmul.mubr.msk.f32.vlgmr.msra.gmra.mrb[44].mxu0 %vm330_vm2, %v4920_v22 }
0x1e28   :  { %9704 = vmatprep.mubr.msk.f32.mxu0 %vm10478_vm1, %v10477_v16 }
0x1ec1   :  { %v11219_v2 = vpop.f32.mrb[50].mxu1 }
0x1ec2   :  { %v9691_v24 = vpop.f32.mrb[51].mxu1 }
0x1ec5   :  { %v5071_v57 = vpop.f32.mrb[52].mxu1 }
0x1ec6   :  { %v5076_v26 = vmul.f32 0.35355338, %v5071_v57  ;;  %v9701_v27 = vpop.f32.mrb[53].mxu1 }
0x1ec7   :  { %v8906_v27 = vld [vmem:[%s10530_s29 + $0x30] sm:$0xff] }
0x1ec8   :  { %v5080_v28 = vsel %vm330_vm2, %v5076_v26, -inf }
0x1ec9   :  { %5081 = vmax.xlane.f32.xlu1 %v5080_v28 }
0x1eda   :  { %5417 = vrot.lane.b32.xlu1 %v11159_v45, %s11741_s25 }
0x1ede   :  { %5415 = vrot.lane.b32.xlu1 %v11165_v46, %s11741_s25 }
0x1ee2   :  { %5493 = vrot.lane.b32.xlu1 %v11174_v47, %s11741_s25 }
0x1ef6   :  { %v11228_v29 = vpop.f32.mrb[42].mxu0 }
0x1ef7   :  { %v9686_v30 = vpop.f32.mrb[43].mxu0 }
0x1efa   :  { %v4993_v31 = vpop.f32.mrb[44].mxu0 }
0x1efb   :  { %v9696_v32 = vpop.f32.mrb[45].mxu0  ;;  %v5075_v36 = vmul.f32 0.35355338, %v4993_v31 }
0x1efd   :  { %v5077_v37 = vsel %vm330_vm2, %v5075_v36, -inf }
0x1f56   :  { %v5082_v3 = vpop.xlane.xlu1 %5081 }
0x1f57   :  { %v5084_v62 = vsub.f32 %v5076_v26, %v5082_v3 }
0x1f59   :  { %v5087_v33 = vmul.f32 1.442695, %v5084_v62 }
0x1f5a   :  { %v5418_v41 = vpop.permute.xlu1 %5417 }
0x1f5b   :  { %10274 = vpow2.f32 %v5087_v33 }
0x1f5e   :  { %v5416_v43 = vpop.permute.xlu1 %5415 }
0x1f62   :  { %v5494_v20 = vpop.permute.xlu1 %5493 }
0x1f65   :  { %v10275_v34 = vpop.eup %10274 }
0x1f66   :  { %v5092_v35 = vsel %vm330_vm2, %v10275_v34, 0.0 }
0x1f67   :  { %5093 = vadd.xlane.f32.xlu0 %v5092_v35 }
0x1f7d   :  { %5177 = vrot.lane.b32.xlu0 %v11156_v11, %s11742_s12 }
0x1f81   :  { %5495 = vrot.lane.b32.xlu0 %v11156_v11, %s11741_s25 }
0x1fa0   :  { %5078 = vmax.xlane.f32.xlu0 %v5077_v37 }
0x1fb6   :  { %5101 = vrot.lane.b32.xlu0 %v11159_v45, %s11742_s12 }
0x1fba   :  { %5597 = vrot.lane.b32.xlu0 %v11159_v45, %s11743_s27 }
0x1fbe   :  { %5834 = vrot.lane.b32.xlu0 %v11159_v45, %s11744_s20 }
0x1fc2   :  { %5912 = vrot.lane.b32.xlu0 %v11156_v11, %s11744_s20 }
0x1fc6   :  { %5832 = vrot.lane.b32.xlu0 %v11165_v46, %s11744_s20 }
0x1fca   :  { %5910 = vrot.lane.b32.xlu0 %v11174_v47, %s11744_s20 }
0x1ff4   :  { %v5094_v38 = vpop.xlane.xlu0 %5093 }
0x1ff5   :  { %10276 = vrcp.f32 %v5094_v38 }
0x1ff8   :  { %v5178_v39 = vpop.permute.xlu0 %5177 }
0x1ff9   :  { %9708 = vmatpush3.msra.mxu1 %v5178_v39 }
0x1ffa   :  { %9722 = vmatprep.subr.mxu1 %v10477_v16 }
0x1ffc   :  { %v5496_v44 = vpop.permute.xlu0 %5495 }
0x1fff   :  { %v10277_v60 = vpop.eup %10276 }
0x2000   :  { %v11249_v42 = vmul.f32 %v10277_v60, %v10275_v34 }
0x2002   :  { %9710 = vmatmul.mubr.msk.f32.vlgmr.msra.gmra.mrb[54].mxu1 %vm330_vm2, %v11249_v42 }
0x2003   :  { %9723 = vmatpush3.xpose.msk.msra.mxu1 %vm330_vm2, %v5418_v41  ;;  %9724 = vmatprep.mubr.msk.f32.mxu1 %vm10478_vm1, %v10477_v16 }
0x2004   :  { %9727 = vmatprep.subr.mxu1 %v10477_v16 }
0x2006   :  { %9725 = vmatmul.mubr.msk.f32.vlgmr.msra.gmra.mrb[56].mxu1 %vm330_vm2, %v5416_v43 }
0x2007   :  { %9728 = vmatpush3.xpose.msk.msra.mxu1 %vm330_vm2, %v5496_v44  ;;  %9729 = vmatprep.mubr.msk.f32.mxu1 %vm10478_vm1, %v10477_v16 }
0x2008   :  { %9737 = vmatprep.subr.mxu1 %v10477_v16 }
0x200a   :  { %9730 = vmatmul.mubr.msk.f32.vlgmr.msra.gmra.mrb[58].mxu1 %vm330_vm2, %v5494_v20 }
0x200b   :  { %9739 = vmatprep.mubr.msk.f32.mxu1 %vm10478_vm1, %v10477_v16 }
0x202d   :  { %v5079_v46 = vpop.xlane.xlu0 %5078 }
0x202e   :  { %v5083_v47 = vsub.f32 %v5075_v36, %v5079_v46  ;;  %v5100_v36 = vadd.f32 %v11249_v42, %v11197_v8 }
0x2030   :  { %v5085_v48 = vmul.f32 1.442695, %v5083_v47 }
0x2031   :  { %v5102_v40 = vpop.permute.xlu0 %5101 }
0x2032   :  { %10278 = vpow2.f32 %v5085_v48  ;;  %9703 = vmatpush3.msra.mxu0 %v5102_v40 }
0x2033   :  { %9712 = vmatprep.subr.mxu0 %v8905_v0 }
0x2035   :  { %v5598_v28 = vpop.permute.xlu0 %5597 }
0x2039   :  { %v5835_v3 = vpop.permute.xlu0 %5834 }
0x203c   :  { %v10279_v49 = vpop.eup %10278 }
0x203d   :  { %v5089_v50 = vsel %vm330_vm2, %v10279_v49, 0.0  ;;  %v5913_v35 = vpop.permute.xlu0 %5912 }
0x203e   :  { %5090 = vadd.xlane.f32.xlu1 %v5089_v50 }
0x20cb   :  { %v5091_v51 = vpop.xlane.xlu1 %5090 }
0x20cc   :  { %10280 = vrcp.f32 %v5091_v51 }
0x20d5   :  { %v5249_v52 = vpop.f32.mrb[54].mxu1 }
0x20d6   :  { %v10281_v53 = vpop.eup %10280  ;;  %v9711_v54 = vpop.f32.mrb[55].mxu1 }
0x20d7   :  { %v5097_v55 = vmul.f32 %v10281_v53, %v10279_v49 }
0x20d9   :  { %9705 = vmatmul.mubr.msk.f32.vlgmr.msra.gmra.mrb[46].mxu0 %vm330_vm2, %v5097_v55  ;;  %v5489_v56 = vpop.f32.mrb[56].mxu1  ;;  %v5099_v62 = vadd.f32 %v5097_v55, %v11208_v17  ;;  %v5833_v17 = vpop.permute.xlu0 %5832 }
0x20da   :  { %v5571_v58 = vmul.f32 0.35355338, %v5489_v56  ;;  %v9726_v14 = vpop.f32.mrb[57].mxu1  ;;  %9713 = vmatpush3.msra.mxu0 %v8905_v0  ;;  %v8951_v0 = vld [vmem:[%s10540_s8 + $0x38] sm:$0xff] }
0x20db   :  { %9717 = vmatprep.subr.mxu0 %v8904_v15  ;;  %v8948_v14 = vld [vmem:[%s10540_s8 + $0x20] sm:$0xff] }
0x20dc   :  { %v5573_v59 = vsel %vm330_vm2, %v5571_v58, -inf }
0x20dd   :  { %5574 = vmax.xlane.f32.xlu1 %v5573_v59  ;;  %v5567_v61 = vpop.f32.mrb[58].mxu1  ;;  %v5911_v42 = vpop.permute.xlu0 %5910  ;;  %v8949_v59 = vld [vmem:[%s10540_s8 + $0x28] sm:$0xff] }
0x20de   :  { %v5572_v13 = vmul.f32 0.35355338, %v5567_v61  ;;  %v9731_v1 = vpop.f32.mrb[59].mxu1 }
0x20e0   :  { %v5576_v63 = vsel %vm330_vm2, %v5572_v13, -inf }
0x20e1   :  { %5577 = vmax.xlane.f32.xlu1 %v5576_v63  ;;  %v8950_v63 = vld [vmem:[%s10540_s8 + $0x30] sm:$0xff] }
0x216a   :  { %v5575_v4 = vpop.xlane.xlu1 %5574 }
0x216b   :  { %v5579_v5 = vsub.f32 %v5571_v58, %v5575_v4 }
0x216d   :  { %v5581_v6 = vmul.f32 1.442695, %v5579_v5 }
0x216e   :  { %v5578_v7 = vpop.xlane.xlu1 %5577 }
0x216f   :  { %10282 = vpow2.f32 %v5581_v6  ;;  %v5580_v9 = vsub.f32 %v5572_v13, %v5578_v7  ;;  %v10050_v13 = vpack.c.bf16 %v8949_v59, %v8948_v14 }
0x2171   :  { %v5583_v10 = vmul.f32 1.442695, %v5580_v9 }
0x2173   :  { %10284 = vpow2.f32 %v5583_v10 }
0x2179   :  { %v10283_v12 = vpop.eup %10282 }
0x217a   :  { %v5585_v18 = vsel %vm330_vm2, %v10283_v12, 0.0 }
0x217b   :  { %5586 = vadd.xlane.f32.xlu1 %v5585_v18 }
0x217d   :  { %v10285_v22 = vpop.eup %10284 }
0x217e   :  { %v5588_v24 = vsel %vm330_vm2, %v10285_v22, 0.0 }
0x217f   :  { %5589 = vadd.xlane.f32.xlu1 %v5588_v24 }
0x2190   :  { %5673 = vrot.lane.b32.xlu1 %v11156_v11, %s11743_s27 }
0x21ac   :  { %v5173_v57 = vpop.f32.mrb[46].mxu0 }
0x21ad   :  { %v9706_v26 = vpop.f32.mrb[47].mxu0  ;;  %9714 = vmatprep.mubr.msk.f32.mxu0 %vm330_vm2, %v5173_v57 }
0x21ae   :  { %9715 = vmatmul.mubr.msk.f32.vlgmr.msra.gmra.mrb[48].mxu0 %vm330_vm2, %v5249_v52 }
0x21af   :  { %9719 = vmatprep.mubr.msk.f32.mxu0 %vm330_vm2, %v11228_v29  ;;  %9718 = vmatpush3.msra.mxu0 %v8904_v15 }
0x21b0   :  { %9732 = vmatprep.subr.mxu0 %v10477_v16 }
0x21b6   :  { %9720 = vmatmul.mubr.msk.f32.vlgmr.msra.gmra.mrb[48].mxu0 %vm330_vm2, %v11219_v2 }
0x21b7   :  { %9733 = vmatpush3.msra.mxu0 %v5598_v28  ;;  %9734 = vmatprep.mubr.msk.f32.mxu0 %vm10478_vm1, %v10477_v16 }
0x21b8   :  { %9742 = vmatprep.subr.mxu0 %v8906_v27 }
0x2208   :  { %v5587_v30 = vpop.xlane.xlu1 %5586 }
0x2209   :  { %10286 = vrcp.f32 %v5587_v30 }
0x220c   :  { %v5590_v31 = vpop.xlane.xlu1 %5589 }
0x220d   :  { %10288 = vrcp.f32 %v5590_v31  ;;  %v8953_v31 = vld [vmem:[%s10550_s19 + $0x20] sm:$0xff] }
0x2210   :  { %v5674_v32 = vpop.permute.xlu1 %5673 }
0x2211   :  { %9738 = vmatpush3.msra.mxu1 %v5674_v32  ;;  %v8954_v32 = vld [vmem:[%s10550_s19 + $0x28] sm:$0xff] }
0x2212   :  { %9747 = vmatprep.subr.mxu1 %v10477_v16 }
0x2213   :  { %v10287_v29 = vpop.eup %10286 }
0x2214   :  { %v5593_v33 = vmul.f32 %v10287_v29, %v10283_v12  ;;  %v8907_v12 = vld [vmem:[%s10530_s29 + $0x38] sm:$0xff]  ;;  %v8955_v29 = vld [vmem:[%s10550_s19 + $0x30] sm:$0xff]  ;;  %s10486_s29 = smov [#allocation7]  }
0x2216   :  { %9735 = vmatmul.mubr.msk.f32.vlgmr.msra.gmra.mrb[50].mxu0 %vm330_vm2, %v5593_v33  ;;  %v11288_v2 = vadd.f32 %v5593_v33, %v5099_v62  ;;  %v8956_v62 = vld [vmem:[%s10550_s19 + $0x38] sm:$0xff] }
0x2217   :  { %v10289_v34 = vpop.eup %10288  ;;  %9743 = vmatpush3.msra.mxu0 %v8906_v27  ;;  %v10062_v33 = vpack.c.bf16 %v8956_v62, %v8955_v29 }
0x2218   :  { %v5594_v37 = vmul.f32 %v10289_v34, %v10285_v22  ;;  %9752 = vmatprep.subr.mxu0 %v10477_v16 }
0x221a   :  { %9740 = vmatmul.mubr.msk.f32.vlgmr.msra.gmra.mrb[60].mxu1 %vm330_vm2, %v5594_v37  ;;  %v11294_v38 = vadd.f32 %v5594_v37, %v5100_v36 }
0x221b   :  { %9748 = vmatpush3.xpose.msk.msra.mxu1 %vm330_vm2, %v5835_v3  ;;  %9749 = vmatprep.mubr.msk.f32.mxu1 %vm10478_vm1, %v10477_v16  ;;  %v10058_v3 = vpack.c.bf16 %v8954_v32, %v8953_v31 }
0x221c   :  { %9757 = vmatprep.subr.mxu1 %v10477_v16 }
0x221e   :  { %9750 = vmatmul.mubr.msk.f32.vlgmr.msra.gmra.mrb[62].mxu1 %vm330_vm2, %v5833_v17  ;;  %v8966_v17 = vld [vmem:[%s10555_s24 + $0x1] ss:$0 sm:$0xff] }
0x221f   :  { %9759 = vmatprep.mubr.msk.f32.mxu1 %vm10478_vm1, %v10477_v16 }
0x22e9   :  { %v5669_v8 = vpop.f32.mrb[50].mxu0 }
0x22ea   :  { %v9736_v39 = vpop.f32.mrb[51].mxu0  ;;  %9744 = vmatprep.mubr.msk.f32.mxu0 %vm330_vm2, %v5669_v8 }
0x22ed   :  { %v5745_v41 = vpop.f32.mrb[60].mxu1 }
0x22ee   :  { %v9741_v60 = vpop.f32.mrb[61].mxu1  ;;  %9745 = vmatmul.mubr.msk.f32.vlgmr.msra.gmra.mrb[48].mxu0 %vm330_vm2, %v5745_v41  ;;  %v8963_v41 = vld [vmem:[%s10545_s14 + $0x1] ss:$0 sm:$0xff] }
0x22ef   :  { %9753 = vmatpush3.xpose.msk.msra.mxu0 %vm330_vm2, %v5913_v35  ;;  %9754 = vmatprep.mubr.msk.f32.mxu0 %vm10478_vm1, %v10477_v16  ;;  %v11352_v35 = vld [vmem:[%s10535_s3 + $0x1] ss:$0 sm:$0xff]  ;;  %s8741_s3 = sshll.u32 %s10486_s29, 4  ;;  %s8742_s3 = int_to_ptr.vmem [resolvable:$true] %s8741_s3 }
0x22f0   :  { %9762 = vmatprep.subr.mxu0 %v10477_v16  ;;  %s10350_s8 = scalar_lea.vmem %s8742_s3, 256  ;;  %p10355_p1 = scmp.lt.s32.totalorder %s8742_s3, %s8742_s3 }
0x22f1   :  { %v5906_v43 = vpop.f32.mrb[62].mxu1  ;;  %p10351_p0 = scmp.ne.s32.totalorder %s8742_s3, %s10350_s8  ;;  %p10356_p2 = scmp.lt.s32.totalorder %s10350_s8, %s10350_s8 }
0x22f2   :  { %v5988_v44 = vmul.f32 0.35355338, %v5906_v43  ;;  %v9751_v20 = vpop.f32.mrb[63].mxu1  ;;  %9755 = vmatmul.mubr.msk.f32.vlgmr.msra.gmra.mrb[52].mxu0 %vm330_vm2, %v5911_v42 }
0x22f3   :  { %9764 = vmatprep.mubr.msk.f32.mxu0 %vm10478_vm1, %v10477_v16  ;;  %p10357_p3 = por %p10356_p2, %p10355_p1 }
0x22f4   :  { %v5990_v46 = vsel %vm330_vm2, %v5988_v44, -inf }
0x22f5   :  { %5991 = vmax.xlane.f32.xlu1 %v5990_v46  ;;  %p10358_p4 = pnand %p10357_p3, %p10351_p0 }
0x2382   :  { %v5992_v47 = vpop.xlane.xlu1 %5991 }
0x2383   :  { %v5996_v48 = vsub.f32 %v5988_v44, %v5992_v47 }
0x2385   :  { %v5998_v40 = vmul.f32 1.442695, %v5996_v48 }
0x2387   :  { %10290 = vpow2.f32 %v5998_v40 }
0x2391   :  { %v10291_v53 = vpop.eup %10290 }
0x2392   :  { %v6002_v54 = vsel %vm330_vm2, %v10291_v53, 0.0 }
0x23c5   :  { %v5984_v49 = vpop.f32.mrb[52].mxu0 }
0x23c6   :  { %v5989_v50 = vmul.f32 0.35355338, %v5984_v49  ;;  %v9756_v51 = vpop.f32.mrb[53].mxu0 }
0x23c8   :  { %v5993_v52 = vsel %vm330_vm2, %v5989_v50, -inf }
0x23c9   :  { %5994 = vmax.xlane.f32.xlu0 %v5993_v52 }
0x23cd   :  { %6003 = vadd.xlane.f32.xlu0 %v6002_v54 }
0x23e3   :  { %6014 = vrot.lane.b32.xlu0 %v11159_v45, %s11745_s0  ;;  %v10054_v45 = vpack.c.bf16 %v8951_v0, %v8950_v63 }
0x2456   :  { %v5995_v55 = vpop.xlane.xlu0 %5994 }
0x2457   :  { %v5997_v56 = vsub.f32 %v5989_v50, %v5995_v55 }
0x2459   :  { %v6000_v58 = vmul.f32 1.442695, %v5997_v56 }
0x245a   :  { %v6004_v61 = vpop.xlane.xlu0 %6003 }
0x245b   :  { %10292 = vpow2.f32 %v6000_v58 }
0x245c   :  { %10294 = vrcp.f32 %v6004_v61 }
0x245e   :  { %v6015_v1 = vpop.permute.xlu0 %6014 }
0x245f   :  { %9758 = vmatpush3.msra.mxu1 %v6015_v1 }
0x2460   :  { %10051 = vmatprep.subr.bf16.mxu1 %v10050_v13 }
0x2465   :  { %v10293_v15 = vpop.eup %10292 }
0x2466   :  { %v10295_v4 = vpop.eup %10294  ;;  %v6005_v5 = vsel %vm330_vm2, %v10293_v15, 0.0 }
0x2467   :  { %v6010_v6 = vmul.f32 %v10295_v4, %v10291_v53  ;;  %6006 = vadd.xlane.f32.xlu1 %v6005_v5 }
0x2469   :  { %9760 = vmatmul.mubr.msk.f32.vlgmr.msra.gmra.mrb[64].mxu1 %vm330_vm2, %v6010_v6  ;;  %v6012_v7 = vadd.f32 %v6010_v6, %v11288_v2 }
0x246a   :  { %10053 = vmatpush3.bf16.msra.mxu1 %v10050_v13  ;;  %9780 = vmatprep.mubr.msk.f32.mxu1 %vm161_vm0, %v11145_v23 }
0x246b   :  { %10055 = vmatprep.subr.bf16.mxu1 %v10054_v45  ;;  %v6257_v9 = vmul.f32 0.25, %v6012_v7 }
0x246d   :  { %8692 = vst.msk [vmem:[#allocation6] sm:$0xff] %vm330_vm2, %v6257_v9 }
0x246e   :  { %10057 = vmatpush3.bf16.msra.mxu1 %v10054_v45 }
0x246f   :  { %9794 = vmatprep.subr.mxu1 %v10477_v16 }
0x2471   :  { %9781 = vmatmul.mubr.msk.f32.vlgmr.msra.gmra.mrb[66].mxu1 %vm161_vm0, %v11147_v25 }
0x2472   :  { %9796 = vmatprep.mubr.msk.f32.mxu1 %vm10478_vm1, %v10477_v16 }
0x2478   :  { %6090 = vrot.lane.b32.xlu1 %v11156_v11, %s11745_s0 }
0x24f4   :  { %v6007_v10 = vpop.xlane.xlu1 %6006 }
0x24f5   :  { %10296 = vrcp.f32 %v6007_v10 }
0x24f8   :  { %v6091_v18 = vpop.permute.xlu1 %6090 }
0x24f9   :  { %9763 = vmatpush3.msra.mxu0 %v6091_v18 }
0x24fa   :  { %9767 = vmatprep.subr.mxu0 %v8907_v12 }
0x24ff   :  { %v10297_v22 = vpop.eup %10296 }
0x2500   :  { %v6011_v24 = vmul.f32 %v10297_v22, %v10293_v15 }
0x2502   :  { %9765 = vmatmul.mubr.msk.f32.vlgmr.msra.gmra.mrb[54].mxu0 %vm330_vm2, %v6011_v24  ;;  %v6013_v57 = vadd.f32 %v6011_v24, %v11294_v38 }
0x2503   :  { %9768 = vmatpush3.msra.mxu0 %v8907_v12 }
0x2504   :  { %v6258_v26 = vmul.f32 0.25, %v6013_v57  ;;  %10059 = vmatprep.subr.bf16.mxu0 %v10058_v3 }
0x2506   :  { %8693 = vst.msk [vmem:[#allocation6 + $0x8] sm:$0xff] %vm330_vm2, %v6258_v26 }
0x253c   :  { %v6086_v11 = vpop.f32.mrb[64].mxu1 }
0x253d   :  { %v9761_v27 = vpop.f32.mrb[65].mxu1  ;;  %9769 = vmatprep.mubr.msk.f32.mxu0 %vm330_vm2, %v6086_v11 }
0x2544   :  { %v9782_v28 = vpop.f32.mrb[66].mxu1 }
0x2545   :  { %v6352_v30 = vpop.f32.mrb[67].mxu1  ;;  %v11376_v44 = vadd.f32 %v9782_v28, %v8963_v41 }
0x2546   :  { %v11365_v42 = vadd.f32 %v8963_v41, %v6352_v30 }
0x25d5   :  { %v6162_v2 = vpop.f32.mrb[54].mxu0 }
0x25d6   :  { %v9766_v34 = vpop.f32.mrb[55].mxu0  ;;  %9770 = vmatmul.mubr.msk.f32.vlgmr.msra.gmra.mrb[48].mxu0 %vm330_vm2, %v6162_v2 }
0x25d7   :  { %10061 = vmatpush3.bf16.msra.mxu0 %v10058_v3  ;;  %9791 = vmatprep.mubr.msk.f32.mxu0 %vm161_vm0, %v11130_v19 }
0x25d8   :  { %10063 = vmatprep.subr.bf16.mxu0 %v10062_v33 }
0x25db   :  { %10065 = vmatpush3.bf16.msra.mxu0 %v10062_v33 }
0x25dc   :  { %9804 = vmatprep.subr.mxu0 %v10477_v16 }
0x25de   :  { %9792 = vmatmul.mubr.msk.f32.vlgmr.msra.gmra.mrb[56].mxu0 %vm161_vm0, %v11132_v21 }
0x25df   :  { %9806 = vmatprep.mubr.msk.f32.mxu0 %vm10478_vm1, %v10477_v16 }
0x26a9   :  { %v11354_v36 = vpop.f32.mrb[48].mxu0 }
0x26aa   :  { %v6238_v37 = vpop.f32.mrb[49].mxu0 }
0x26ab   :  { %v11357_v38 = vadd.f32 %v11352_v35, %v6238_v37 }
0x26b1   :  { %v9793_v8 = vpop.f32.mrb[56].mxu0 }
0x26b2   :  { %v6433_v39 = vpop.f32.mrb[57].mxu0  ;;  %v11368_v43 = vadd.f32 %v9793_v8, %v8966_v17 }
0x26b3   :  { %v11361_v60 = vadd.f32 %v8966_v17, %v6433_v39 }
0x26b5   :  { %9795 = vmatpush3.xpose.msk.msra.mxu1 %vm330_vm2, %v11361_v60 }
0x26b6   :  { %9799 = vmatprep.subr.mxu1 %v10477_v16 }
0x26b8   :  { %9797 = vmatmul.mubr.msk.f32.vlgmr.msra.gmra.mrb[68].mxu1 %vm330_vm2, %v11365_v42 }
0x26b9   :  { %9800 = vmatpush3.xpose.msk.msra.mxu1 %vm330_vm2, %v11368_v43  ;;  %9801 = vmatprep.mubr.msk.f32.mxu1 %vm10478_vm1, %v10477_v16 }
0x26ba   :  { %9809 = vmatprep.subr.mxu1 %v10477_v16 }
0x26bc   :  { %9802 = vmatmul.mubr.msk.f32.vlgmr.msra.gmra.mrb[70].mxu1 %vm330_vm2, %v11376_v44 }
0x26bd   :  { %9811 = vmatprep.mubr.msk.f32.mxu1 %vm10478_vm1, %v10477_v16 }
0x278b   :  { %v6514_v20 = vpop.f32.mrb[68].mxu1 }
0x278c   :  { %v9798_v46 = vpop.f32.mrb[69].mxu1  ;;  %v6594_v55 = vmul.f32 0.35355338, %v6514_v20 }
0x278e   :  { %v6596_v56 = vsel %vm330_vm2, %v6594_v55, -inf }
0x278f   :  { %v6590_v47 = vpop.f32.mrb[70].mxu1 }
0x2790   :  { %v6595_v48 = vmul.f32 0.35355338, %v6590_v47  ;;  %v9803_v40 = vpop.f32.mrb[71].mxu1 }
0x2792   :  { %v6599_v49 = vsel %vm330_vm2, %v6595_v48, -inf }
0x2793   :  { %6600 = vmax.xlane.f32.xlu1 %v6599_v49 }
0x27a4   :  { %6852 = vrot.lane.b32.xlu1 %v11368_v43, %s11739_s21 }
0x27a8   :  { %6850 = vrot.lane.b32.xlu1 %v11376_v44, %s11739_s21 }
0x2820   :  { %v6601_v50 = vpop.xlane.xlu1 %6600 }
0x2821   :  { %v6603_v51 = vsub.f32 %v6595_v48, %v6601_v50 }
0x2823   :  { %v6606_v52 = vmul.f32 1.442695, %v6603_v51 }
0x2824   :  { %v6853_v61 = vpop.permute.xlu1 %6852 }
0x2825   :  { %10298 = vpow2.f32 %v6606_v52 }
0x2828   :  { %v6851_v1 = vpop.permute.xlu1 %6850 }
0x282f   :  { %v10299_v53 = vpop.eup %10298 }
0x2830   :  { %v6611_v54 = vsel %vm330_vm2, %v10299_v53, 0.0 }
0x2831   :  { %6612 = vadd.xlane.f32.xlu0 %v6611_v54 }
0x2847   :  { %6696 = vrot.lane.b32.xlu0 %v11368_v43, %s11740_s17 }
0x2866   :  { %6597 = vmax.xlane.f32.xlu0 %v6596_v56 }
0x287c   :  { %6620 = vrot.lane.b32.xlu0 %v11361_v60, %s11740_s17 }
0x2880   :  { %6772 = vrot.lane.b32.xlu0 %v11365_v42, %s11739_s21 }
0x28be   :  { %v6613_v58 = vpop.xlane.xlu0 %6612 }
0x28bf   :  { %10300 = vrcp.f32 %v6613_v58 }
0x28c2   :  { %v6697_v14 = vpop.permute.xlu0 %6696 }
0x28c3   :  { %9810 = vmatpush3.msra.mxu1 %v6697_v14 }
0x28c4   :  { %9819 = vmatprep.subr.mxu1 %v10477_v16 }
0x28c9   :  { %v10301_v59 = vpop.eup %10300 }
0x28ca   :  { %v11397_v13 = vmul.f32 %v10301_v59, %v10299_v53 }
0x28cc   :  { %9812 = vmatmul.mubr.msk.f32.vlgmr.msra.gmra.mrb[72].mxu1 %vm330_vm2, %v11397_v13 }
0x28cd   :  { %9820 = vmatpush3.xpose.msk.msra.mxu1 %vm330_vm2, %v6853_v61  ;;  %9821 = vmatprep.mubr.msk.f32.mxu1 %vm10478_vm1, %v10477_v16 }
0x28ce   :  { %9829 = vmatprep.subr.mxu1 %v10477_v16 }
0x28d0   :  { %9822 = vmatmul.mubr.msk.f32.vlgmr.msra.gmra.mrb[74].mxu1 %vm330_vm2, %v6851_v1 }
0x28d1   :  { %9831 = vmatprep.mubr.msk.f32.mxu1 %vm10478_vm1, %v10477_v16 }
0x28f3   :  { %v6598_v63 = vpop.xlane.xlu0 %6597 }
0x28f4   :  { %v6602_v0 = vsub.f32 %v6594_v55, %v6598_v63 }
0x28f6   :  { %v6604_v15 = vmul.f32 1.442695, %v6602_v0 }
0x28f7   :  { %v6621_v4 = vpop.permute.xlu0 %6620 }
0x28f8   :  { %10302 = vpow2.f32 %v6604_v15  ;;  %9805 = vmatpush3.msra.mxu0 %v6621_v4  ;;  %v8959_v15 = vld [vmem:[%s10560_s30 + $0x28] sm:$0xff]  ;;  %v8958_v4 = vld [vmem:[%s10560_s30 + $0x20] sm:$0xff] }
0x28f9   :  { %9814 = vmatprep.subr.mxu0 %v10477_v16 }
0x28fb   :  { %v6773_v22 = vpop.permute.xlu0 %6772 }
0x2902   :  { %v10303_v5 = vpop.eup %10302 }
0x2903   :  { %v6608_v6 = vsel %vm330_vm2, %v10303_v5, 0.0 }
0x2904   :  { %6609 = vadd.xlane.f32.xlu1 %v6608_v6 }
0x2915   :  { %6774 = vrot.lane.b32.xlu1 %v11361_v60, %s11739_s21 }
0x2991   :  { %v6610_v45 = vpop.xlane.xlu1 %6609 }
0x2992   :  { %10304 = vrcp.f32 %v6610_v45 }
0x2995   :  { %v6775_v10 = vpop.permute.xlu1 %6774 }
0x299c   :  { %v10305_v7 = vpop.eup %10304 }
0x299d   :  { %v11412_v9 = vmul.f32 %v10305_v7, %v10303_v5 }
0x299f   :  { %9807 = vmatmul.mubr.msk.f32.vlgmr.msra.gmra.mrb[58].mxu0 %vm330_vm2, %v11412_v9  ;;  %v11416_v12 = vpop.f32.mrb[72].mxu1 }
0x29a0   :  { %9815 = vmatpush3.xpose.msk.msra.mxu0 %vm330_vm2, %v6775_v10  ;;  %v9813_v18 = vpop.f32.mrb[73].mxu1  ;;  %9816 = vmatprep.mubr.msk.f32.mxu0 %vm10478_vm1, %v10477_v16 }
0x29a1   :  { %9824 = vmatprep.subr.mxu0 %v10477_v16 }
0x29a3   :  { %9817 = vmatmul.mubr.msk.f32.vlgmr.msra.gmra.mrb[60].mxu0 %vm330_vm2, %v6773_v22  ;;  %v6924_v24 = vpop.f32.mrb[74].mxu1 }
0x29a4   :  { %v6929_v57 = vmul.f32 0.35355338, %v6924_v24  ;;  %v9823_v26 = vpop.f32.mrb[75].mxu1  ;;  %9826 = vmatprep.mubr.msk.f32.mxu0 %vm10478_vm1, %v10477_v16 }
0x29a6   :  { %v6933_v11 = vsel %vm330_vm2, %v6929_v57, -inf }
0x29a7   :  { %6934 = vmax.xlane.f32.xlu1 %v6933_v11 }
0x29b8   :  { %7270 = vrot.lane.b32.xlu1 %v11361_v60, %s11741_s25 }
0x29bc   :  { %7268 = vrot.lane.b32.xlu1 %v11365_v42, %s11741_s25 }
0x29c0   :  { %7346 = vrot.lane.b32.xlu1 %v11376_v44, %s11741_s25 }
0x2a34   :  { %v6935_v27 = vpop.xlane.xlu1 %6934 }
0x2a35   :  { %v6937_v28 = vsub.f32 %v6929_v57, %v6935_v27 }
0x2a37   :  { %v6940_v30 = vmul.f32 1.442695, %v6937_v28  ;;  %v8960_v28 = vld [vmem:[%s10560_s30 + $0x30] sm:$0xff] }
0x2a38   :  { %v7271_v8 = vpop.permute.xlu1 %7270 }
0x2a39   :  { %10306 = vpow2.f32 %v6940_v30 }
0x2a3c   :  { %v7269_v20 = vpop.permute.xlu1 %7268 }
0x2a43   :  { %v10307_v31 = vpop.eup %10306 }
0x2a44   :  { %v6945_v32 = vsel %vm330_vm2, %v10307_v31, 0.0 }
0x2a45   :  { %6946 = vadd.xlane.f32.xlu0 %v6945_v32 }
0x2a5b   :  { %7030 = vrot.lane.b32.xlu0 %v11368_v43, %s11742_s12 }
0x2a5f   :  { %7348 = vrot.lane.b32.xlu0 %v11368_v43, %s11741_s25 }
0x2a72   :  { %v11437_v3 = vpop.f32.mrb[58].mxu0 }
0x2a73   :  { %v9808_v29 = vpop.f32.mrb[59].mxu0 }
0x2a76   :  { %v6846_v62 = vpop.f32.mrb[60].mxu0 }
0x2a77   :  { %v9818_v33 = vpop.f32.mrb[61].mxu0  ;;  %v6928_v2 = vmul.f32 0.35355338, %v6846_v62 }
0x2a79   :  { %v6930_v34 = vsel %vm330_vm2, %v6928_v2, -inf }
0x2a7e   :  { %6931 = vmax.xlane.f32.xlu0 %v6930_v34 }
0x2a94   :  { %6954 = vrot.lane.b32.xlu0 %v11361_v60, %s11742_s12 }
0x2a98   :  { %7450 = vrot.lane.b32.xlu0 %v11361_v60, %s11743_s27 }
0x2a9c   :  { %7687 = vrot.lane.b32.xlu0 %v11361_v60, %s11744_s20 }
0x2aa0   :  { %7765 = vrot.lane.b32.xlu0 %v11368_v43, %s11744_s20 }
0x2aa4   :  { %7685 = vrot.lane.b32.xlu0 %v11365_v42, %s11744_s20 }
0x2aa8   :  { %7763 = vrot.lane.b32.xlu0 %v11376_v44, %s11744_s20  ;;  %v7347_v44 = vpop.permute.xlu1 %7346 }
0x2ad2   :  { %v6947_v37 = vpop.xlane.xlu0 %6946 }
0x2ad3   :  { %10308 = vrcp.f32 %v6947_v37 }
0x2ad6   :  { %v7031_v17 = vpop.permute.xlu0 %7030 }
0x2ad7   :  { %9830 = vmatpush3.msra.mxu1 %v7031_v17 }
0x2ad8   :  { %9844 = vmatprep.subr.mxu1 %v10477_v16 }
0x2ada   :  { %v7349_v42 = vpop.permute.xlu0 %7348 }
0x2add   :  { %v10309_v39 = vpop.eup %10308 }
0x2ade   :  { %v11453_v41 = vmul.f32 %v10309_v39, %v10307_v31 }
0x2ae0   :  { %9832 = vmatmul.mubr.msk.f32.vlgmr.msra.gmra.mrb[76].mxu1 %vm330_vm2, %v11453_v41  ;;  %v6953_v17 = vadd.f32 %v11453_v41, %v11397_v13 }
0x2ae1   :  { %9845 = vmatpush3.xpose.msk.msra.mxu1 %vm330_vm2, %v7271_v8  ;;  %9846 = vmatprep.mubr.msk.f32.mxu1 %vm10478_vm1, %v10477_v16 }
0x2ae2   :  { %9849 = vmatprep.subr.mxu1 %v10477_v16 }
0x2ae4   :  { %9847 = vmatmul.mubr.msk.f32.vlgmr.msra.gmra.mrb[78].mxu1 %vm330_vm2, %v7269_v20 }
0x2ae5   :  { %9850 = vmatpush3.xpose.msk.msra.mxu1 %vm330_vm2, %v7349_v42  ;;  %9851 = vmatprep.mubr.msk.f32.mxu1 %vm10478_vm1, %v10477_v16 }
0x2ae6   :  { %9859 = vmatprep.subr.mxu1 %v10477_v16 }
0x2ae8   :  { %9852 = vmatmul.mubr.msk.f32.vlgmr.msra.gmra.mrb[80].mxu1 %vm330_vm2, %v7347_v44 }
0x2ae9   :  { %9861 = vmatprep.mubr.msk.f32.mxu1 %vm10478_vm1, %v10477_v16 }
0x2b0b   :  { %v6932_v46 = vpop.xlane.xlu0 %6931 }
0x2b0c   :  { %v6936_v47 = vsub.f32 %v6928_v2, %v6932_v46 }
0x2b0e   :  { %v6938_v48 = vmul.f32 1.442695, %v6936_v47 }
0x2b0f   :  { %v6955_v40 = vpop.permute.xlu0 %6954 }
0x2b10   :  { %10310 = vpow2.f32 %v6938_v48  ;;  %9825 = vmatpush3.msra.mxu0 %v6955_v40 }
0x2b11   :  { %9834 = vmatprep.subr.mxu0 %v8959_v15 }
0x2b13   :  { %v7451_v30 = vpop.permute.xlu0 %7450 }
0x2b17   :  { %v7688_v62 = vpop.permute.xlu0 %7687 }
0x2b1a   :  { %v10311_v49 = vpop.eup %10310 }
0x2b1b   :  { %v6942_v50 = vsel %vm330_vm2, %v10311_v49, 0.0  ;;  %v7766_v37 = vpop.permute.xlu0 %7765 }
0x2b1c   :  { %6943 = vadd.xlane.f32.xlu1 %v6942_v50 }
0x2ba9   :  { %v6944_v51 = vpop.xlane.xlu1 %6943 }
0x2baa   :  { %10312 = vrcp.f32 %v6944_v51 }
0x2bb3   :  { %v7102_v52 = vpop.f32.mrb[76].mxu1 }
0x2bb4   :  { %v10313_v53 = vpop.eup %10312  ;;  %v9833_v54 = vpop.f32.mrb[77].mxu1 }
0x2bb5   :  { %v6950_v55 = vmul.f32 %v10313_v53, %v10311_v49 }
0x2bb7   :  { %9827 = vmatmul.mubr.msk.f32.vlgmr.msra.gmra.mrb[62].mxu0 %vm330_vm2, %v6950_v55  ;;  %v7342_v56 = vpop.f32.mrb[78].mxu1  ;;  %v6952_v33 = vadd.f32 %v6950_v55, %v11412_v9  ;;  %v7686_v9 = vpop.permute.xlu0 %7685 }
0x2bb8   :  { %v7424_v58 = vmul.f32 0.35355338, %v7342_v56  ;;  %v9848_v14 = vpop.f32.mrb[79].mxu1  ;;  %9835 = vmatpush3.msra.mxu0 %v8959_v15 }
0x2bb9   :  { %9839 = vmatprep.subr.mxu0 %v8958_v4 }
0x2bba   :  { %v7426_v59 = vsel %vm330_vm2, %v7424_v58, -inf }
0x2bbb   :  { %7427 = vmax.xlane.f32.xlu1 %v7426_v59  ;;  %v7420_v61 = vpop.f32.mrb[80].mxu1  ;;  %v7764_v44 = vpop.permute.xlu0 %7763 }
0x2bbc   :  { %v7425_v1 = vmul.f32 0.35355338, %v7420_v61  ;;  %v9853_v63 = vpop.f32.mrb[81].mxu1 }
0x2bbe   :  { %v7429_v0 = vsel %vm330_vm2, %v7425_v1, -inf }
0x2bbf   :  { %7430 = vmax.xlane.f32.xlu1 %v7429_v0 }
0x2c48   :  { %v7428_v5 = vpop.xlane.xlu1 %7427 }
0x2c49   :  { %v7432_v6 = vsub.f32 %v7424_v58, %v7428_v5 }
0x2c4b   :  { %v7434_v45 = vmul.f32 1.442695, %v7432_v6 }
0x2c4c   :  { %v7431_v7 = vpop.xlane.xlu1 %7430 }
0x2c4d   :  { %10314 = vpow2.f32 %v7434_v45  ;;  %v7433_v10 = vsub.f32 %v7425_v1, %v7431_v7 }
0x2c4f   :  { %v7436_v18 = vmul.f32 1.442695, %v7433_v10  ;;  %v8961_v10 = vld [vmem:[%s10560_s30 + $0x38] sm:$0xff] }
0x2c51   :  { %10316 = vpow2.f32 %v7436_v18 }
0x2c57   :  { %v10315_v22 = vpop.eup %10314 }
0x2c58   :  { %v7438_v24 = vsel %vm330_vm2, %v10315_v22, 0.0 }
0x2c59   :  { %7439 = vadd.xlane.f32.xlu1 %v7438_v24 }
0x2c5b   :  { %v10317_v57 = vpop.eup %10316 }
0x2c5c   :  { %v7441_v26 = vsel %vm330_vm2, %v10317_v57, 0.0 }
0x2c5d   :  { %7442 = vadd.xlane.f32.xlu1 %v7441_v26 }
0x2c6e   :  { %7526 = vrot.lane.b32.xlu1 %v11368_v43, %s11743_s27 }
0x2c8a   :  { %v7026_v11 = vpop.f32.mrb[62].mxu0 }
0x2c8b   :  { %v9828_v27 = vpop.f32.mrb[63].mxu0  ;;  %9836 = vmatprep.mubr.msk.f32.mxu0 %vm330_vm2, %v7026_v11 }
0x2c8c   :  { %9837 = vmatmul.mubr.msk.f32.vlgmr.msra.gmra.mrb[64].mxu0 %vm330_vm2, %v7102_v52 }
0x2c8d   :  { %9841 = vmatprep.mubr.msk.f32.mxu0 %vm330_vm2, %v11437_v3  ;;  %9840 = vmatpush3.msra.mxu0 %v8958_v4 }
0x2c8e   :  { %9854 = vmatprep.subr.mxu0 %v10477_v16 }
0x2c94   :  { %9842 = vmatmul.mubr.msk.f32.vlgmr.msra.gmra.mrb[64].mxu0 %vm330_vm2, %v11416_v12 }
0x2c95   :  { %9855 = vmatpush3.msra.mxu0 %v7451_v30  ;;  %9856 = vmatprep.mubr.msk.f32.mxu0 %vm10478_vm1, %v10477_v16 }
0x2c96   :  { %9864 = vmatprep.subr.mxu0 %v8960_v28 }
0x2ce6   :  { %v7440_v31 = vpop.xlane.xlu1 %7439 }
0x2ce7   :  { %10318 = vrcp.f32 %v7440_v31 }
0x2cea   :  { %v7443_v32 = vpop.xlane.xlu1 %7442 }
0x2ceb   :  { %10320 = vrcp.f32 %v7443_v32  ;;  %v9001_v32 = vld [vmem:[%s10565_s6 + $0x1] ss:$0 sm:$0xff] }
0x2cee   :  { %v7527_v29 = vpop.permute.xlu1 %7526 }
0x2cef   :  { %9860 = vmatpush3.msra.mxu1 %v7527_v29 }
0x2cf0   :  { %9869 = vmatprep.subr.mxu1 %v10477_v16 }
0x2cf1   :  { %v10319_v3 = vpop.eup %10318 }
0x2cf2   :  { %v7446_v2 = vmul.f32 %v10319_v3, %v10315_v22 }
0x2cf4   :  { %9857 = vmatmul.mubr.msk.f32.vlgmr.msra.gmra.mrb[66].mxu0 %vm330_vm2, %v7446_v2  ;;  %v11492_v12 = vadd.f32 %v7446_v2, %v6952_v33 }
0x2cf5   :  { %v10321_v34 = vpop.eup %10320  ;;  %9865 = vmatpush3.msra.mxu0 %v8960_v28 }
0x2cf6   :  { %v7447_v8 = vmul.f32 %v10321_v34, %v10317_v57  ;;  %9874 = vmatprep.subr.mxu0 %v10477_v16 }
0x2cf8   :  { %9862 = vmatmul.mubr.msk.f32.vlgmr.msra.gmra.mrb[82].mxu1 %vm330_vm2, %v7447_v8  ;;  %v11498_v39 = vadd.f32 %v7447_v8, %v6953_v17 }
0x2cf9   :  { %9870 = vmatpush3.xpose.msk.msra.mxu1 %vm330_vm2, %v7688_v62  ;;  %9871 = vmatprep.mubr.msk.f32.mxu1 %vm10478_vm1, %v10477_v16 }
0x2cfa   :  { %9879 = vmatprep.subr.mxu1 %v10477_v16 }
0x2cfc   :  { %9872 = vmatmul.mubr.msk.f32.vlgmr.msra.gmra.mrb[84].mxu1 %vm330_vm2, %v7686_v9 }
0x2cfd   :  { %9881 = vmatprep.mubr.msk.f32.mxu1 %vm10478_vm1, %v10477_v16 }
0x2dc7   :  { %v7522_v13 = vpop.f32.mrb[66].mxu0 }
0x2dc8   :  { %v9858_v41 = vpop.f32.mrb[67].mxu0  ;;  %9866 = vmatprep.mubr.msk.f32.mxu0 %vm330_vm2, %v7522_v13 }
0x2dcb   :  { %v7598_v20 = vpop.f32.mrb[82].mxu1 }
0x2dcc   :  { %v9863_v42 = vpop.f32.mrb[83].mxu1  ;;  %9867 = vmatmul.mubr.msk.f32.vlgmr.msra.gmra.mrb[64].mxu0 %vm330_vm2, %v7598_v20  ;;  %v9004_v20 = vld [vmem:[%s11723_s5 + $0x20] sm:$0xff] }
0x2dcd   :  { %9875 = vmatpush3.xpose.msk.msra.mxu0 %vm330_vm2, %v7766_v37  ;;  %9876 = vmatprep.mubr.msk.f32.mxu0 %vm10478_vm1, %v10477_v16  ;;  %v9005_v42 = vld [vmem:[%s11723_s5 + $0x28] sm:$0xff] }
0x2dce   :  { %9884 = vmatprep.subr.mxu0 %v10477_v16 }
0x2dcf   :  { %v7759_v46 = vpop.f32.mrb[84].mxu1 }
0x2dd0   :  { %v7841_v47 = vmul.f32 0.35355338, %v7759_v46  ;;  %v9873_v48 = vpop.f32.mrb[85].mxu1  ;;  %9877 = vmatmul.mubr.msk.f32.vlgmr.msra.gmra.mrb[68].mxu0 %vm330_vm2, %v7764_v44  ;;  %v9006_v44 = vld [vmem:[%s11723_s5 + $0x30] sm:$0xff]  ;;  %v9007_v46 = vld [vmem:[%s11723_s5 + $0x38] sm:$0xff] }
0x2dd1   :  { %9886 = vmatprep.mubr.msk.f32.mxu0 %vm10478_vm1, %v10477_v16  ;;  %v6256_v16 = vadd.f32 %v11354_v36, %v11352_v35  ;;  %v8138_v36 = vadd.f32 %v11357_v38, %v11130_v19 }
0x2dd2   :  { %v7843_v40 = vsel %vm330_vm2, %v7841_v47, -inf }
0x2dd3   :  { %7844 = vmax.xlane.f32.xlu1 %v7843_v40  ;;  %v8139_v14 = vadd.f32 %v6256_v16, %v11132_v21  ;;  %v8140_v45 = vsel %vm161_vm0, %v8138_v36, 0.0 }
0x2dd5   :  { %v8143_v59 = vsel %vm161_vm0, %v8139_v14, 0.0 }
0x2e60   :  { %v7845_v49 = vpop.xlane.xlu1 %7844 }
0x2e61   :  { %v7849_v50 = vsub.f32 %v7841_v47, %v7845_v49 }
0x2e63   :  { %v7851_v51 = vmul.f32 1.442695, %v7849_v50 }
0x2e65   :  { %10322 = vpow2.f32 %v7851_v51 }
0x2e6f   :  { %v10323_v56 = vpop.eup %10322 }
0x2e70   :  { %v7855_v58 = vsel %vm330_vm2, %v10323_v56, 0.0 }
0x2ea3   :  { %v7837_v52 = vpop.f32.mrb[68].mxu0 }
0x2ea4   :  { %v7842_v53 = vmul.f32 0.35355338, %v7837_v52  ;;  %v9878_v54 = vpop.f32.mrb[69].mxu0 }
0x2ea6   :  { %v7846_v55 = vsel %vm330_vm2, %v7842_v53, -inf }
0x2ea7   :  { %7847 = vmax.xlane.f32.xlu0 %v7846_v55 }
0x2eab   :  { %7856 = vadd.xlane.f32.xlu0 %v7855_v58 }
0x2ec1   :  { %7867 = vrot.lane.b32.xlu0 %v11361_v60, %s11745_s0 }
0x2ee0   :  { %8144 = vadd.xlane.f32.xlu0 %v8143_v59 }
0x2f34   :  { %v7848_v61 = vpop.xlane.xlu0 %7847 }
0x2f35   :  { %v7850_v1 = vsub.f32 %v7842_v53, %v7848_v61 }
0x2f37   :  { %v7853_v63 = vmul.f32 1.442695, %v7850_v1 }
0x2f38   :  { %v7857_v0 = vpop.xlane.xlu0 %7856 }
0x2f39   :  { %10324 = vpow2.f32 %v7853_v63  ;;  %v9020_v63 = vld [vmem:[%s11724_s9 + $0x1] ss:$0 sm:$0xff] }
0x2f3a   :  { %10326 = vrcp.f32 %v7857_v0 }
0x2f3c   :  { %v7868_v15 = vpop.permute.xlu0 %7867 }
0x2f3d   :  { %9880 = vmatpush3.msra.mxu1 %v7868_v15 }
0x2f43   :  { %v10325_v4 = vpop.eup %10324 }
0x2f44   :  { %v10327_v5 = vpop.eup %10326  ;;  %v7858_v60 = vsel %vm330_vm2, %v10325_v4, 0.0 }
0x2f45   :  { %v7863_v6 = vmul.f32 %v10327_v5, %v10323_v56  ;;  %7859 = vadd.xlane.f32.xlu1 %v7858_v60  ;;  %v9021_v5 = vld [vmem:[%s11725_s22 + $0x1] ss:$0 sm:$0xff] }
0x2f47   :  { %9882 = vmatmul.mubr.msk.f32.vlgmr.msra.gmra.mrb[86].mxu1 %vm330_vm2, %v7863_v6  ;;  %v7865_v21 = vadd.f32 %v7863_v6, %v11492_v12 }
0x2f49   :  { %v8110_v35 = vmul.f32 0.25, %v7865_v21 }
0x2f4b   :  { %8694 = vst.msk [vmem:[#allocation7] sm:$0xff] %vm330_vm2, %v8110_v35 }
0x2f56   :  { %7943 = vrot.lane.b32.xlu1 %v11368_v43, %s11745_s0 }
0x2f6d   :  { %v8145_v27 = vpop.xlane.xlu0 %8144 }
0x2f6e   :  { %v8147_v30 = vmul.f32 0.03125, %v8145_v27  ;;  %v9014_v27 = vld [vmem:[%s11727_s26 + $0x68] sm:$0xff] }
0x2f70   :  { %v8149_v62 = vsub.f32 %v8139_v14, %v8147_v30  ;;  %v9015_v30 = vld [vmem:[%s11727_s26 + $0x70] sm:$0xff] }
0x2f72   :  { %v8151_v8 = vmul.f32 %v8149_v62, %v8149_v62 }
0x2f74   :  { %v8155_v13 = vsel %vm161_vm0, %v8151_v8, 0.0 }
0x2f7a   :  { %8141 = vadd.xlane.f32.xlu1 %v8140_v45  ;;  %v9033_v45 = vld [vmem:[%s11726_s23 + $0x28] sm:$0xff] }
0x2fd2   :  { %v7860_v7 = vpop.xlane.xlu1 %7859 }
0x2fd3   :  { %10328 = vrcp.f32 %v7860_v7 }
0x2fd6   :  { %v7944_v18 = vpop.permute.xlu1 %7943 }
0x2fd7   :  { %9885 = vmatpush3.msra.mxu0 %v7944_v18  ;;  %v9035_v18 = vld [vmem:[%s11726_s23 + $0x38] sm:$0xff] }
0x2fd8   :  { %9889 = vmatprep.subr.mxu0 %v8961_v10 }
0x2fdd   :  { %v10329_v22 = vpop.eup %10328 }
0x2fde   :  { %v7864_v24 = vmul.f32 %v10329_v22, %v10325_v4 }
0x2fe0   :  { %9887 = vmatmul.mubr.msk.f32.vlgmr.msra.gmra.mrb[70].mxu0 %vm330_vm2, %v7864_v24  ;;  %v7866_v57 = vadd.f32 %v7864_v24, %v11498_v39  ;;  %v9009_v24 = vld [vmem:[%s11727_s26 + $0x40] sm:$0xff] }
0x2fe1   :  { %9890 = vmatpush3.msra.mxu0 %v8961_v10  ;;  %v9034_v10 = vld [vmem:[%s11726_s23 + $0x30] sm:$0xff] }
0x2fe2   :  { %v8111_v43 = vmul.f32 0.25, %v7866_v57  ;;  %v10094_v22 = vpack.c.bf16 %v9035_v18, %v9034_v10  ;;  %v9010_v57 = vld [vmem:[%s11727_s26 + $0x48] sm:$0xff] }
0x2fe4   :  { %8695 = vst.msk [vmem:[#allocation7 + $0x8] sm:$0xff] %vm330_vm2, %v8111_v43  ;;  %v9011_v43 = vld [vmem:[%s11727_s26 + $0x50] sm:$0xff] }
0x3007   :  { %v8142_v28 = vpop.xlane.xlu1 %8141 }
0x3008   :  { %v8146_v31 = vmul.f32 0.03125, %v8142_v28 }
0x300a   :  { %v8148_v2 = vsub.f32 %v8138_v36, %v8146_v31  ;;  %v9032_v36 = vld [vmem:[%s11726_s23 + $0x20] sm:$0xff]  ;;  %v9016_v31 = vld [vmem:[%s11727_s26 + $0x78] sm:$0xff] }
0x300b   :  { %v10090_v7 = vpack.c.bf16 %v9033_v45, %v9032_v36  ;;  %v9025_v36 = vld [vmem:[%s11733_s15 + $0x1] ss:$0 sm:$0xff] }
0x300c   :  { %v8150_v9 = vmul.f32 %v8148_v2, %v8148_v2  ;;  %v9053_v45 = vld [vmem:[%s11734_s10 + $0x1] ss:$0 sm:$0xff] }
0x300e   :  { %v8152_v41 = vsel %vm161_vm0, %v8150_v9, 0.0 }
0x301a   :  { %v7939_v19 = vpop.f32.mrb[86].mxu1 }
0x301b   :  { %v9883_v38 = vpop.f32.mrb[87].mxu1  ;;  %9891 = vmatprep.mubr.msk.f32.mxu0 %vm330_vm2, %v7939_v19  ;;  %v10074_v19 = vpack.c.bf16 %v9010_v57, %v9009_v24 }
0x301c   :  { %v9012_v38 = vld [vmem:[%s11727_s26 + $0x58] sm:$0xff] }
0x301d   :  { %10075 = vmatprep.subr.bf16.mxu0 %v10074_v19 }
0x30b3   :  { %v8015_v26 = vpop.f32.mrb[70].mxu0 }
0x30b4   :  { %v9888_v11 = vpop.f32.mrb[71].mxu0  ;;  %9892 = vmatmul.mubr.msk.f32.vlgmr.msra.gmra.mrb[64].mxu0 %vm330_vm2, %v8015_v26  ;;  %v10078_v26 = vpack.c.bf16 %v9012_v38, %v9011_v43 }
0x30b5   :  { %v9013_v11 = vld [vmem:[%s11727_s26 + $0x60] sm:$0xff]  ;;  %10077 = vmatpush3.bf16.msra.mxu0 %v10074_v19 }
0x30b6   :  { %10079 = vmatprep.subr.bf16.mxu0 %v10078_v26  ;;  %v10082_v28 = vpack.c.bf16 %v9014_v27, %v9013_v11 }
0x30b9   :  { %10081 = vmatpush3.bf16.msra.mxu0 %v10078_v26 }
0x30ba   :  { %10083 = vmatprep.subr.bf16.mxu0 %v10082_v28 }
0x30bd   :  { %10085 = vmatpush3.bf16.msra.mxu0 %v10082_v28 }
0x3187   :  { %v9893_v29 = vpop.f32.mrb[64].mxu0 }
0x3188   :  { %v8109_v3 = vadd.f32 %v9893_v29, %v9001_v32  ;;  %v8091_v33 = vpop.f32.mrb[65].mxu0  ;;  %v9037_v29 = vld [vmem:[%s11728_s28 + $0x40] sm:$0xff] }
0x3189   :  { %v8108_v12 = vadd.f32 %v9001_v32, %v8091_v33  ;;  %v10086_v32 = vpack.c.bf16 %v9016_v31, %v9015_v30 }
0x318a   :  { %v8429_v34 = vadd.f32 %v8109_v3, %v11147_v25  ;;  %v10066_v25 = vpack.c.bf16 %v9005_v42, %v9004_v20  ;;  %v9049_v20 = vld [vmem:[%s11730_s2 + $0x1] ss:$0 sm:$0xff] }
0x318b   :  { %v8428_v37 = vadd.f32 %v8108_v12, %v11145_v23  ;;  %v10070_v23 = vpack.c.bf16 %v9007_v46, %v9006_v44  ;;  %10087 = vmatprep.subr.bf16.mxu0 %v10086_v32  ;;  %v9039_v44 = vld [vmem:[%s11728_s28 + $0x50] sm:$0xff]  ;;  %v9040_v46 = vld [vmem:[%s11728_s28 + $0x58] sm:$0xff] }
0x318c   :  { %v8433_v17 = vsel %vm161_vm0, %v8429_v34, 0.0  ;;  %10067 = vmatprep.subr.bf16.mxu1 %v10066_v25  ;;  %10089 = vmatpush3.bf16.msra.mxu0 %v10086_v32 }
0x318d   :  { %8434 = vadd.xlane.f32.xlu1 %v8433_v17  ;;  %v8430_v39 = vsel %vm161_vm0, %v8428_v37, 0.0  ;;  %10069 = vmatpush3.bf16.msra.mxu1 %v10066_v25 }
0x318e   :  { %8431 = vadd.xlane.f32.xlu0 %v8430_v39  ;;  %10071 = vmatprep.subr.bf16.mxu1 %v10070_v23  ;;  %v9048_v39 = vld [vmem:[%s11729_s1 + $0x1] ss:$0 sm:$0xff] }
0x3191   :  { %8156 = vadd.xlane.f32.xlu1 %v8155_v13  ;;  %10073 = vmatpush3.bf16.msra.mxu1 %v10070_v23 }
0x3192   :  { %8153 = vadd.xlane.f32.xlu0 %v8152_v41  ;;  %10091 = vmatprep.subr.bf16.mxu1 %v10090_v7 }
0x321a   :  { %v8435_v47 = vpop.xlane.xlu1 %8434 }
0x321b   :  { %v8437_v48 = vmul.f32 0.03125, %v8435_v47  ;;  %v8432_v40 = vpop.xlane.xlu0 %8431 }
0x321c   :  { %v8436_v49 = vmul.f32 0.03125, %v8432_v40  ;;  %v9041_v40 = vld [vmem:[%s11728_s28 + $0x60] sm:$0xff] }
0x321d   :  { %v11551_v50 = vsub.f32 %v8429_v34, %v8437_v48  ;;  %v10102_v48 = vpack.c.bf16 %v9040_v46, %v9039_v44 }
0x321e   :  { %v11553_v51 = vsub.f32 %v8428_v37, %v8436_v49  ;;  %v8157_v52 = vpop.xlane.xlu1 %8156  ;;  %v9042_v49 = vld [vmem:[%s11728_s28 + $0x68] sm:$0xff] }
0x321f   :  { %v8159_v53 = vmul.f32 0.03125, %v8157_v52  ;;  %v8154_v54 = vpop.xlane.xlu0 %8153  ;;  %v8441_v55 = vmul.f32 %v11551_v50, %v11551_v50 }
0x3220   :  { %v8158_v56 = vmul.f32 0.03125, %v8154_v54  ;;  %v8440_v58 = vmul.f32 %v11553_v51, %v11553_v51 }
0x3221   :  { %v8161_v16 = vadd.f32 1e-05, %v8159_v53  ;;  %v8445_v14 = vsel %vm161_vm0, %v8441_v55, 0.0 }
0x3222   :  { %v8160_v59 = vadd.f32 1e-05, %v8158_v56  ;;  %8446 = vadd.xlane.f32.xlu1 %v8445_v14  ;;  %v8442_v61 = vsel %vm161_vm0, %v8440_v58, 0.0  ;;  %v9044_v14 = vld [vmem:[%s11728_s28 + $0x78] sm:$0xff] }
0x3223   :  { %10330 = vrsqrt.f32 %v8161_v16  ;;  %8443 = vadd.xlane.f32.xlu0 %v8442_v61  ;;  %v9043_v16 = vld [vmem:[%s11728_s28 + $0x70] sm:$0xff]  ;;  %v9050_v61 = vld [vmem:[%s11732_s16 + $0x1] ss:$0 sm:$0xff] }
0x3224   :  { %10332 = vrsqrt.f32 %v8160_v59  ;;  %v10110_v59 = vpack.c.bf16 %v9044_v14, %v9043_v16 }
0x322d   :  { %v10331_v1 = vpop.eup %10330 }
0x322e   :  { %v10333_v0 = vpop.eup %10332  ;;  %v8165_v15 = vmul.f32 %v10331_v1, %v8149_v62  ;;  %v9038_v62 = vld [vmem:[%s11728_s28 + $0x48] sm:$0xff] }
0x322f   :  { %v8164_v4 = vmul.f32 %v10333_v0, %v8148_v2  ;;  %v10098_v3 = vpack.c.bf16 %v9038_v62, %v9037_v29 }
0x3230   :  { %v8173_v60 = vmul.f32 %v9020_v63, %v8165_v15 }
0x3231   :  { %v8172_v6 = vmul.f32 %v9020_v63, %v8164_v4 }
0x3232   :  { %v11565_v35 = vadd.f32 %v9021_v5, %v8173_v60 }
0x3233   :  { %v11563_v21 = vadd.f32 %v9021_v5, %v8172_v6 }
0x3235   :  { %9902 = vmatprep.mubr.msk.f32.mxu1 %vm161_vm0, %v11563_v21 }
0x3236   :  { %9903 = vmatmul.mubr.msk.f32.vlgmr.msra.gmra.mrb[88].mxu1 %vm161_vm0, %v11565_v35 }
0x3237   :  { %10093 = vmatpush3.bf16.msra.mxu1 %v10090_v7 }
0x3238   :  { %10095 = vmatprep.subr.bf16.mxu1 %v10094_v22 }
0x323b   :  { %10097 = vmatpush3.bf16.msra.mxu1 %v10094_v22 }
0x323c   :  { %10099 = vmatprep.subr.bf16.mxu1 %v10098_v3 }
0x32af   :  { %v8447_v33 = vpop.xlane.xlu1 %8446 }
0x32b0   :  { %v8449_v2 = vmul.f32 0.03125, %v8447_v33  ;;  %v8444_v12 = vpop.xlane.xlu0 %8443 }
0x32b1   :  { %v8448_v34 = vmul.f32 0.03125, %v8444_v12 }
0x32b2   :  { %v8451_v37 = vadd.f32 1e-05, %v8449_v2 }
0x32b3   :  { %v8450_v17 = vadd.f32 1e-05, %v8448_v34 }
0x32b4   :  { %10334 = vrsqrt.f32 %v8451_v37 }
0x32b5   :  { %10336 = vrsqrt.f32 %v8450_v17 }
0x32be   :  { %v10335_v8 = vpop.eup %10334 }
0x32bf   :  { %v10337_v9 = vpop.eup %10336  ;;  %v8455_v13 = vmul.f32 %v10335_v8, %v11551_v50  ;;  %v10106_v50 = vpack.c.bf16 %v9042_v49, %v9041_v40 }
0x32c0   :  { %v8454_v41 = vmul.f32 %v10337_v9, %v11553_v51  ;;  %v9022_v51 = vld [vmem:[%s11731_s18 + $0x1] ss:$0 sm:$0xff] }
0x32c1   :  { %v8463_v42 = vmul.f32 %v9048_v39, %v8455_v13 }
0x32c2   :  { %v8462_v25 = vmul.f32 %v9048_v39, %v8454_v41 }
0x32c3   :  { %v8471_v47 = vadd.f32 %v9049_v20, %v8463_v42 }
0x32c4   :  { %v8470_v23 = vadd.f32 %v9049_v20, %v8462_v25 }
0x32c6   :  { %9932 = vmatprep.mubr.msk.f32.mxu1 %vm161_vm0, %v8470_v23 }
0x32c7   :  { %9933 = vmatmul.mubr.msk.f32.vlgmr.msra.gmra.mrb[90].mxu1 %vm161_vm0, %v8471_v47 }
0x32c8   :  { %10101 = vmatpush3.bf16.msra.mxu1 %v10098_v3 }
0x32c9   :  { %10103 = vmatprep.subr.bf16.mxu1 %v10102_v48 }
0x32cc   :  { %10105 = vmatpush3.bf16.msra.mxu1 %v10102_v48 }
0x32cd   :  { %10107 = vmatprep.subr.bf16.mxu1 %v10106_v50 }
0x32d0   :  { %10109 = vmatpush3.bf16.msra.mxu1 %v10106_v50 }
0x32d1   :  { %10111 = vmatprep.subr.bf16.mxu1 %v10110_v59 }
0x32d4   :  { %10113 = vmatpush3.bf16.msra.mxu1 %v10110_v59 }
0x3309   :  { %v9904_v52 = vpop.f32.mrb[88].mxu1 }
0x330a   :  { %v8266_v53 = vadd.f32 %v9904_v52, %v9022_v51  ;;  %v8260_v54 = vpop.f32.mrb[89].mxu1 }
0x330b   :  { %v8261_v55 = vadd.f32 %v9022_v51, %v8260_v54 }
0x330c   :  { %v8270_v58 = vmax.f32 %v8266_v53, 0.0 }
0x330d   :  { %v8269_v56 = vmax.f32 %v8261_v55, 0.0 }
0x330f   :  { %9921 = vmatprep.mubr.msk.f32.mxu0 %vm3986_vm3, %v8269_v56 }
0x3310   :  { %9922 = vmatmul.mubr.msk.f32.vlgmr.msra.gmra.mrb[72].mxu0 %vm3986_vm3, %v8270_v58 }
0x339a   :  { %v9934_v1 = vpop.f32.mrb[90].mxu1 }
0x339b   :  { %v8556_v63 = vadd.f32 %v9934_v1, %v9050_v61  ;;  %v8550_v0 = vpop.f32.mrb[91].mxu1 }
0x339c   :  { %v8551_v15 = vadd.f32 %v9050_v61, %v8550_v0 }
0x339d   :  { %v8560_v5 = vmax.f32 %v8556_v63, 0.0 }
0x339e   :  { %v8559_v4 = vmax.f32 %v8551_v15, 0.0 }
0x33a0   :  { %9951 = vmatprep.mubr.msk.f32.mxu1 %vm3986_vm3, %v8559_v4 }
0x33a1   :  { %9952 = vmatmul.mubr.msk.f32.vlgmr.msra.gmra.mrb[92].mxu1 %vm3986_vm3, %v8560_v5 }
0x33e3   :  { %v9923_v60 = vpop.f32.mrb[72].mxu0 }
0x33e4   :  { %v8349_v6 = vpop.f32.mrb[73].mxu0  ;;  %v8355_v10 = vadd.f32 %v9923_v60, %v9025_v36 }
0x33e5   :  { %v8350_v24 = vadd.f32 %v9025_v36, %v8349_v6 }
0x33e6   :  { %v8359_v38 = vadd.f32 %v8355_v10, %v11565_v35 }
0x33e7   :  { %v8358_v11 = vadd.f32 %v8350_v24, %v11563_v21 }
0x33e8   :  { %v8363_v28 = vsel %vm161_vm0, %v8359_v38, 0.0 }
0x33e9   :  { %v8360_v30 = vsel %vm161_vm0, %v8358_v11, 0.0 }
0x3474   :  { %v9953_v7 = vpop.f32.mrb[92].mxu1 }
0x3475   :  { %v8645_v18 = vadd.f32 %v9953_v7, %v9053_v45  ;;  %v8639_v22 = vpop.f32.mrb[93].mxu1 }
0x3476   :  { %v8640_v57 = vadd.f32 %v9053_v45, %v8639_v22 }
0x3477   :  { %v8649_v43 = vadd.f32 %v8645_v18, %v8471_v47 }
0x3478   :  { %v8648_v19 = vadd.f32 %v8640_v57, %v8470_v23 }
0x3479   :  { %v8653_v26 = vsel %vm161_vm0, %v8649_v43, 0.0 }
0x347a   :  { %8654 = vadd.xlane.f32.xlu1 %v8653_v26  ;;  %v8650_v27 = vsel %vm161_vm0, %v8648_v19, 0.0 }
0x347b   :  { %8651 = vadd.xlane.f32.xlu0 %v8650_v27 }
0x347e   :  { %8364 = vadd.xlane.f32.xlu1 %v8363_v28 }
0x347f   :  { %8361 = vadd.xlane.f32.xlu0 %v8360_v30 }
0x3507   :  { %v8655_v31 = vpop.xlane.xlu1 %8654 }
0x3508   :  { %v8657_v32 = vmul.f32 0.03125, %v8655_v31  ;;  %v8652_v29 = vpop.xlane.xlu0 %8651 }
0x3509   :  { %v8656_v62 = vmul.f32 0.03125, %v8652_v29 }
0x350a   :  { %v8659_v3 = vsub.f32 %v8649_v43, %v8657_v32 }
0x350b   :  { %v8658_v35 = vsub.f32 %v8648_v19, %v8656_v62  ;;  %v8365_v33 = vpop.xlane.xlu1 %8364 }
0x350c   :  { %v8367_v2 = vmul.f32 0.03125, %v8365_v33  ;;  %v8362_v12 = vpop.xlane.xlu0 %8361  ;;  %v8661_v21 = vmul.f32 %v8659_v3, %v8659_v3 }
0x350d   :  { %v8366_v34 = vmul.f32 0.03125, %v8362_v12  ;;  %v8660_v37 = vmul.f32 %v8658_v35, %v8658_v35 }
0x350e   :  { %v8369_v17 = vsub.f32 %v8359_v38, %v8367_v2  ;;  %v8665_v8 = vsel %vm161_vm0, %v8661_v21, 0.0 }
0x350f   :  { %v11612_v39 = vsub.f32 %v8358_v11, %v8366_v34  ;;  %8666 = vadd.xlane.f32.xlu1 %v8665_v8  ;;  %v8662_v9 = vsel %vm161_vm0, %v8660_v37, 0.0 }
0x3510   :  { %8663 = vadd.xlane.f32.xlu0 %v8662_v9  ;;  %v8371_v13 = vmul.f32 %v8369_v17, %v8369_v17 }
0x3511   :  { %v8370_v41 = vmul.f32 %v11612_v39, %v11612_v39 }
0x3512   :  { %v8375_v20 = vsel %vm161_vm0, %v8371_v13, 0.0 }
0x3513   :  { %8376 = vadd.xlane.f32.xlu1 %v8375_v20  ;;  %v8372_v42 = vsel %vm161_vm0, %v8370_v41, 0.0 }
0x3514   :  { %8373 = vadd.xlane.f32.xlu0 %v8372_v42 }
0x3515   :  { %10361 = shalt.err (!%p10358_p4)
}
0x3516   :  { %s10362_s14 = scalar_lea.hbm %s10665_s4, 256 }
0x3517   :  { %p10363_p5 = scmp.ne.s32.totalorder %s10665_s4, %s10362_s14  ;;  %p10366_p6 = scmp.lt.u32.totalorder %s10362_s14, %s10665_s4 }
0x3519   :  { %p10368_p7 = pnand %p10366_p6, %p10363_p5 }
0x351b   :  { %10371 = shalt.err (!%p10368_p7)
}
0x351c   :  { %s10487_s19 = smov 128   ;;  %s10488_s24 = smov 8   ;;  %v9056_v55 = vld [vmem:[%s11737_s13 + $0x1] ss:$0 sm:$0xff] }
0x351d   :  { %8747 = dma.vmem_to_hbm [thread:$0]  %s8742_s3, 256, %s10665_s4, [#allocation8], %s10487_s19, %s10487_s19, %s10488_s24  }
0x351e   :  { %v9057_v16 = vld [vmem:[%s11738_s7 + $0x1] ss:$0 sm:$0xff]  ;;  %s11746_s30 = sld [smem:[#allocation19_spill]]  ;;  %s10489_s6 = smov [#allocation4]  }
0x351f   :  { %s8717_s12 = sshll.u32 %s10489_s6, 4  ;;  %v9028_v63 = vld [vmem:[%s11735_s11 + $0x1] ss:$0 sm:$0xff]  ;;  %s10490_s20 = smov [#allocation6]   ;;  %s8718_s12 = int_to_ptr.vmem [resolvable:$true] %s8717_s12 }
0x3520   :  { %s8729_s27 = sshll.u32 %s10490_s20, 4  ;;  %s10491_s4 = smov [#allocation2]   ;;  %s11632_s27 = int_to_ptr.vmem [resolvable:$true] %s8729_s27 }
0x3521   :  { %s8705_s0 = sshll.u32 %s10491_s4, 4  ;;  %s10372_s7 = scalar_lea.vmem %s8718_s12, 256  ;;  %s11635_s0 = int_to_ptr.vmem [resolvable:$true] %s8705_s0 }
0x3522   :  { %p10373_p8 = scmp.ne.s32.totalorder %s8718_s12, %s10372_s7  ;;  %p10377_p9 = scmp.lt.s32.totalorder %s8718_s12, %s8718_s12 }
0x3523   :  { %p10378_p10 = scmp.lt.s32.totalorder %s10372_s7, %s10372_s7 }
0x3524   :  { %v9029_v60 = vld [vmem:[%s11746_s30 + $0x1] ss:$0 sm:$0xff] }
0x3525   :  { %p10379_p11 = por %p10378_p10, %p10377_p9 }
0x3527   :  { %p10380_p12 = pnand %p10379_p11, %p10373_p8 }
0x359c   :  { %v8667_v25 = vpop.xlane.xlu1 %8666 }
0x359d   :  { %v8669_v44 = vmul.f32 0.03125, %v8667_v25  ;;  %v8664_v46 = vpop.xlane.xlu0 %8663 }
0x359e   :  { %v8668_v23 = vmul.f32 0.03125, %v8664_v46 }
0x359f   :  { %v8671_v47 = vadd.f32 1e-05, %v8669_v44 }
0x35a0   :  { %v8670_v48 = vadd.f32 1e-05, %v8668_v23  ;;  %v8377_v40 = vpop.xlane.xlu1 %8376 }
0x35a1   :  { %10338 = vrsqrt.f32 %v8671_v47  ;;  %v8379_v49 = vmul.f32 0.03125, %v8377_v40  ;;  %v8374_v50 = vpop.xlane.xlu0 %8373 }
0x35a2   :  { %10340 = vrsqrt.f32 %v8670_v48  ;;  %v8378_v51 = vmul.f32 0.03125, %v8374_v50 }
0x35a3   :  { %v8381_v52 = vadd.f32 1e-05, %v8379_v49 }
0x35a4   :  { %v8380_v53 = vadd.f32 1e-05, %v8378_v51 }
0x35a5   :  { %10342 = vrsqrt.f32 %v8381_v52 }
0x35a6   :  { %10344 = vrsqrt.f32 %v8380_v53 }
0x35ab   :  { %v10339_v54 = vpop.eup %10338 }
0x35ac   :  { %v10341_v56 = vpop.eup %10340  ;;  %v8675_v58 = vmul.f32 %v10339_v54, %v8659_v3 }
0x35ad   :  { %v8674_v14 = vmul.f32 %v10341_v56, %v8658_v35 }
0x35ae   :  { %v8683_v59 = vmul.f32 %v9056_v55, %v8675_v58 }
0x35af   :  { %v10343_v61 = vpop.eup %10342  ;;  %v8682_v1 = vmul.f32 %v9056_v55, %v8674_v14 }
0x35b0   :  { %v10345_v0 = vpop.eup %10344  ;;  %v8691_v15 = vadd.f32 %v9057_v16, %v8683_v59  ;;  %v8385_v4 = vmul.f32 %v10343_v61, %v8369_v17 }
0x35b1   :  { %v8690_v5 = vadd.f32 %v9057_v16, %v8682_v1  ;;  %v8384_v6 = vmul.f32 %v10345_v0, %v11612_v39 }
0x35b2   :  { %8699 = vst.msk [vmem:[#allocation4 + $0x8] sm:$0xff] %vm161_vm0, %v8691_v15  ;;  %v8393_v36 = vmul.f32 %v9028_v63, %v8385_v4 }
0x35b3   :  { %8698 = vst.msk [vmem:[#allocation4] sm:$0xff] %vm161_vm0, %v8690_v5  ;;  %v8392_v45 = vmul.f32 %v9028_v63, %v8384_v6 }
0x35b4   :  { %10383 = shalt.err (!%p10380_p12)
}
0x35b5   :  { %s11747_s10 = sld [smem:[#allocation29_spill]] }
0x35bb   :  { %s10384_s11 = scalar_lea.hbm %s11747_s10, 256 }
0x35bc   :  { %p10385_p13 = scmp.ne.s32.totalorder %s11747_s10, %s10384_s11  ;;  %p10388_p0 = scmp.lt.u32.totalorder %s10384_s11, %s11747_s10 }
0x35be   :  { %p10390_p1 = pnand %p10388_p0, %p10385_p13 }
0x35c0   :  { %10393 = shalt.err (!%p10390_p1)
}
0x35c1   :  { %8723 = dma.vmem_to_hbm [thread:$0]  %s8718_s12, 256, %s11747_s10, [#allocation5], %s10487_s19, %s10487_s19, %s10488_s24   ;;  %v8401_v7 = vadd.f32 %v9029_v60, %v8393_v36  ;;  %v8400_v10 = vadd.f32 %v9029_v60, %v8392_v45 }
0x35c2   :  { %s10394_s15 = scalar_lea.vmem %s11632_s27, 256  ;;  %p10399_p3 = scmp.lt.s32.totalorder %s11632_s27, %s11632_s27 }
0x35c3   :  { %p10395_p2 = scmp.ne.s32.totalorder %s11632_s27, %s10394_s15  ;;  %p10400_p4 = scmp.lt.s32.totalorder %s10394_s15, %s10394_s15 }
0x35c5   :  { %p10401_p5 = por %p10400_p4, %p10399_p3 }
0x35c7   :  { %p10402_p6 = pnand %p10401_p5, %p10395_p2 }
0x35c9   :  { %10405 = shalt.err (!%p10402_p6)
}
0x35ca   :  { %s11748_s16 = sld [smem:[#allocation30_spill]] }
0x35d0   :  { %s10406_s18 = scalar_lea.hbm %s11748_s16, 256 }
0x35d1   :  { %p10407_p7 = scmp.ne.s32.totalorder %s11748_s16, %s10406_s18  ;;  %p10410_p8 = scmp.lt.u32.totalorder %s10406_s18, %s11748_s16 }
0x35d3   :  { %p10412_p9 = pnand %p10410_p8, %p10407_p7 }
0x35d5   :  { %10415 = shalt.err (!%p10412_p9)
}
0x35d6   :  { %8735 = dma.vmem_to_hbm [thread:$0]  %s11632_s27, 256, %s11748_s16, [#allocation5], %s10487_s19, %s10487_s19, %s10488_s24   ;;  %8697 = vst.msk [vmem:[#allocation2 + $0x8] sm:$0xff] %vm161_vm0, %v8401_v7  ;;  %8696 = vst.msk [vmem:[#allocation2] sm:$0xff] %vm161_vm0, %v8400_v10 }
0x35d7   :  { %s10416_s5 = scalar_lea.vmem %s11635_s0, 256  ;;  %p10421_p11 = scmp.lt.s32.totalorder %s11635_s0, %s11635_s0 }
0x35d8   :  { %p10417_p10 = scmp.ne.s32.totalorder %s11635_s0, %s10416_s5  ;;  %p10422_p12 = scmp.lt.s32.totalorder %s10416_s5, %s10416_s5 }
0x35da   :  { %p10423_p13 = por %p10422_p12, %p10421_p11 }
0x35dc   :  { %p10424_p0 = pnand %p10423_p13, %p10417_p10 }
0x35de   :  { %10427 = shalt.err (!%p10424_p0)
}
0x35df   :  { %s11749_s9 = sld [smem:[#allocation28_spill]] }
0x35e5   :  { %s10428_s22 = scalar_lea.hbm %s11749_s9, 256 }
0x35e6   :  { %p10429_p1 = scmp.ne.s32.totalorder %s11749_s9, %s10428_s22  ;;  %p10432_p2 = scmp.lt.u32.totalorder %s10428_s22, %s11749_s9 }
0x35e8   :  { %p10434_p3 = pnand %p10432_p2, %p10429_p1 }
0x35ea   :  { %10437 = shalt.err (!%p10434_p3)
}
0x35eb   :  { %8711 = dma.vmem_to_hbm [thread:$0]  %s11635_s0, 256, %s11749_s9, [#allocation3], %s10487_s19, %s10487_s19, %s10488_s24  }
0x35ec   :  { %10438 = dma.done.wait [#allocation3], 256  }
0x35ed   :  { %10439 = vsyncadd [#allocation3], 4294967040 }
0x35ee   :  { %10440 = dma.done.wait [#allocation5], 512  }
0x35ef   :  { %10441 = vsyncadd [#allocation5], 4294966784 }
0x35f0   :  { %10442 = dma.done.wait [#allocation8], 256  }
0x35f1   :  { %10443 = vsyncadd [#allocation8], 4294967040 }
0x35f2   :  { %8760 = vsyncpa [#allocation3], 1 }
0x35f3   :  { %8761 = vsyncpa [#allocation5], 1 }
0x35f4   :  { %8762 = vsyncpa [#allocation8], 1 }

</bundles_post_ra>
